<compile_context>
chip_gen: v7x
topology: tpu7x:2x2x1
jax: 0.10.0
libtpu: 0.0.40
codegen_flags: <defaults>
</compile_context>

<pallas_src>
import functools

import numpy as np

import jax
import jax.numpy as jnp
from jax import lax
from jax.experimental import pallas as pl
from jax.experimental.pallas import tpu as pltpu

EPS = 1e-5  # torch.nn.BatchNorm2d default eps


# ---------------------------------------------------------------------------
# Wrapper-side weight packing (plain XLA, tiny; the kernel only sees matrices)
# ---------------------------------------------------------------------------
def _reflect_index(i, n):
    if i < 0:
        i = -i
    if i >= n:
        i = 2 * (n - 1) - i
    return i


def _make_width_reflect_select(W, K):
    """S[dx, ox, x] = 1 iff reflect(x + dx - pad, W) == ox (static numpy)."""
    pad = K // 2
    S = np.zeros((K, W, W), np.float32)
    for dx in range(K):
        for x in range(W):
            S[dx, _reflect_index(x + dx - pad, W), x] = 1.0
    return S


def pack_conv_weights(w, W):
    """w: (K, K, Cin, Cout) taps -> (K, W*Cin, W*Cout) per-dy matrices.

    Row index o*Cin+ci = packed column of the (un-width-padded) input row,
    col index x*Cout+co = packed output column.  Reflection padding along W
    is folded into these matrices, so the kernel only pads along H.
    """
    K, _, Cin, Cout = w.shape
    S = jnp.asarray(_make_width_reflect_select(W, K))
    wm = jnp.einsum("dox,ydic->yoixc", S, w)
    return wm.reshape(K, W * Cin, W * Cout)


def _make_group_sum(cols, C):
    """G[i, j] = 1 iff i % C == j % C.  (1,cols) @ G = per-channel totals
    broadcast back to every width group of the packed layout (no reshapes)."""
    i = np.arange(cols)
    return jnp.asarray((i[:, None] % C == i[None, :] % C).astype(np.float32))


# ---------------------------------------------------------------------------
# The single fused kernel: whole batch + whole network in VMEM.
# ---------------------------------------------------------------------------
def _fused_resnet_kernel(x_ref, w0_ref, w1_0_ref, gb0_ref, wmats_ref, gbs_ref,
                         gsum_in_ref, gsum_lat_ref, o_ref, *,
                         K, H, W, N, Cin0, Clat, num_blocks):
    pad = K // 2
    cnt = float(N * H * W)

    def bn_relu(a, gamma_p, beta_p, gsum):
        # a: (N*H, cols) packed activation.  Two-pass batch statistics
        # (avoids E[x^2]-E[x]^2 cancellation), folded into scale/shift.
        s = jnp.sum(a, axis=0, keepdims=True)                        # (1, cols)
        mean_p = jnp.dot(s, gsum, preferred_element_type=jnp.float32) / cnt
        d = a - mean_p
        s2 = jnp.sum(d * d, axis=0, keepdims=True)
        var_p = jnp.dot(s2, gsum, preferred_element_type=jnp.float32) / cnt
        scale = gamma_p * lax.rsqrt(var_p + EPS)
        shift = beta_p - mean_p * scale
        return jnp.maximum(a * scale + shift, 0.0)

    def conv_same(a, get_wmat, cin):
        # a: (N*H, W*cin).  Height reflection pad in VMEM (sublane concat);
        # width reflection is already folded into the packed weights.
        a3 = a.reshape(N, H, W * cin)
        if pad:
            top = [a3[:, pad - i:pad - i + 1, :] for i in range(pad)]
            bot = [a3[:, H - 2 - i:H - 1 - i, :] for i in range(pad)]
            ap = jnp.concatenate(top + [a3] + bot, axis=1)           # (N, H+2p, W*cin)
        else:
            ap = a3
        acc = jnp.zeros((N * H, W * Clat), jnp.float32)
        for dy in range(K):                                          # static unroll
            lhs = ap[:, dy:dy + H, :].reshape(N * H, W * cin)
            acc = acc + jnp.dot(lhs, get_wmat(dy),
                                preferred_element_type=jnp.float32)
        return acc                                                   # (N*H, W*Clat)

    cur = x_ref[...].astype(jnp.float32)                             # (N*H, W*Cin0)
    wm = 0
    for b in range(num_blocks):
        if b == 0:
            # Residual: 1x1 conv as block-diagonal matmul (identity if C match)
            res = jnp.dot(cur, w0_ref[...], preferred_element_type=jnp.float32)
            gb = gb0_ref[...]
            act = bn_relu(cur, gb[0:1, :], gb[1:2, :], gsum_in_ref[...])
            h = conv_same(act, lambda dy: w1_0_ref[dy], Cin0)
        else:
            res = cur
            gb = gbs_ref[wm]
            act = bn_relu(cur, gb[0:1, :], gb[1:2, :], gsum_lat_ref[...])
            h = conv_same(act, lambda dy, j=wm: wmats_ref[j, dy], Clat)
            wm += 1
        gb = gbs_ref[wm]
        act = bn_relu(h, gb[0:1, :], gb[1:2, :], gsum_lat_ref[...])
        cur = conv_same(act, lambda dy, j=wm: wmats_ref[j, dy], Clat) + res
        wm += 1
        # TODO(synk): l1lam/topk/dropout branches after block num_blocks//2
        #             are identities at the default config.
    o_ref[...] = cur.astype(o_ref.dtype)


# ---------------------------------------------------------------------------
# Public forward: NCHW in / (NCHW out, residual) like the torch module.
# ---------------------------------------------------------------------------
def resnet1_forward(x_nchw, params, *, K, num_blocks):
    N, Cin0, H, W = x_nchw.shape
    Clat = params[0]["w1"].shape[-1]

    # NCHW -> packed lane-dense (N*H, W*C).
    x2d = jnp.transpose(x_nchw, (0, 2, 3, 1)).reshape(N * H, W * Cin0)

    if params[0]["w0"] is None:
        w0mat = jnp.eye(W * Cin0, dtype=jnp.float32)
    else:
        w0mat = jnp.kron(jnp.eye(W, dtype=jnp.float32), params[0]["w0"])

    def gb_pack(gamma, beta):
        return jnp.stack([jnp.tile(gamma, W), jnp.tile(beta, W)])

    wmat1_0 = pack_conv_weights(params[0]["w1"], W)
    gb0 = gb_pack(params[0]["gamma1"], params[0]["beta1"])

    wmats = [pack_conv_weights(params[0]["w2"], W)]
    gbs = [gb_pack(params[0]["gamma2"], params[0]["beta2"])]
    for b in range(1, num_blocks):
        wmats.append(pack_conv_weights(params[b]["w1"], W))
        gbs.append(gb_pack(params[b]["gamma1"], params[b]["beta1"]))
        wmats.append(pack_conv_weights(params[b]["w2"], W))
        gbs.append(gb_pack(params[b]["gamma2"], params[b]["beta2"]))
    wmats = jnp.stack(wmats)            # (2B-1, K, W*Clat, W*Clat)  ~2.6 MB
    gbs = jnp.stack(gbs)                # (2B-1, 2, W*Clat)

    gsum_in = _make_group_sum(W * Cin0, Cin0)
    gsum_lat = _make_group_sum(W * Clat, Clat)

    kernel = functools.partial(_fused_resnet_kernel, K=K, H=H, W=W, N=N,
                               Cin0=Cin0, Clat=Clat, num_blocks=num_blocks)

    def full(shape):
        return pl.BlockSpec(tuple(shape), lambda i, s=len(shape): (0,) * s)

    out2d = pl.pallas_call(
        kernel,
        out_shape=jax.ShapeDtypeStruct((N * H, W * Clat), jnp.float32),
        grid=(1,),
        in_specs=[
            full(x2d.shape), full(w0mat.shape), full(wmat1_0.shape),
            full(gb0.shape), full(wmats.shape), full(gbs.shape),
            full(gsum_in.shape), full(gsum_lat.shape),
        ],
        out_specs=full((N * H, W * Clat)),
        compiler_params=pltpu.CompilerParams(
            dimension_semantics=("arbitrary",)),
    )(x2d, w0mat, wmat1_0, gb0, wmats, gbs, gsum_in, gsum_lat)

    out = out2d.reshape(N, H, W, Clat).transpose(0, 3, 1, 2)
    return out, x_nchw


# ---------------------------------------------------------------------------
# Parameter construction (layout: w (K,K,Cin,Cout), w0 (Cin,Cout) or None)
# ---------------------------------------------------------------------------
def init_params(key, *, in_channels, latent_channels, num_blocks, K):
    params = []
    c_in = in_channels
    for b in range(num_blocks):
        kk = jax.random.split(jax.random.fold_in(key, b), 7)
        c_lat = latent_channels
        c_out = latent_channels
        bound1 = 1.0 / (c_in * K * K) ** 0.5
        bound2 = 1.0 / (c_lat * K * K) ** 0.5
        w1 = jax.random.uniform(kk[0], (K, K, c_in, c_lat), jnp.float32,
                                -bound1, bound1)
        w2 = jax.random.uniform(kk[1], (K, K, c_lat, c_out), jnp.float32,
                                -bound2, bound2)
        if c_in != c_out:
            bound0 = 1.0 / c_in ** 0.5
            w0 = jax.random.uniform(kk[2], (c_in, c_out), jnp.float32,
                                    -bound0, bound0)
        else:
            w0 = None
        params.append(dict(
            w0=w0, w1=w1, w2=w2,
            gamma1=jax.random.uniform(kk[3], (c_in,), jnp.float32, 0.5, 1.5),
            beta1=jax.random.uniform(kk[4], (c_in,), jnp.float32, -0.5, 0.5),
            gamma2=jax.random.uniform(kk[5], (c_lat,), jnp.float32, 0.5, 1.5),
            beta2=jax.random.uniform(kk[6], (c_lat,), jnp.float32, -0.5, 0.5),
        ))
        c_in = c_out
    return params


# ---------------------------------------------------------------------------
# Pure-JAX reference (correctness sanity check)
# ---------------------------------------------------------------------------
def ref_forward(x_nchw, params, *, K, num_blocks):
    def conv(x, w):
        pad = w.shape[0] // 2
        xp = (jnp.pad(x, ((0, 0), (pad, pad), (pad, pad), (0, 0)),
                      mode="reflect") if pad else x)
        return lax.conv_general_dilated(
            xp, w, (1, 1), "VALID",
            dimension_numbers=("NHWC", "HWIO", "NHWC"))

    def bn_relu(x, gamma, beta):
        m = jnp.mean(x, axis=(0, 1, 2))
        v = jnp.mean((x - m) ** 2, axis=(0, 1, 2))
        return jnp.maximum((x - m) / jnp.sqrt(v + EPS) * gamma + beta, 0.0)

    residual0 = x_nchw
    x = jnp.transpose(x_nchw, (0, 2, 3, 1))
    for n in range(num_blocks):
        p = params[n]
        if p["w0"] is None:
            res = x
        else:
            res = conv(x, p["w0"].reshape(1, 1, *p["w0"].shape))
        h = conv(bn_relu(x, p["gamma1"], p["beta1"]), p["w1"])
        x = conv(bn_relu(h, p["gamma2"], p["beta2"]), p["w2"]) + res
    return jnp.transpose(x, (0, 3, 1, 2)), residual0


if __name__ == "__main__":
    # Small shapes consistent with the module (NCHW, in_channels=2).
    N, C_IN, H, W = 2, 2, 8, 8
    LATENT = 16
    NUM_BLOCKS = 3
    KERNEL_SIZE = 7

    key = jax.random.PRNGKey(0)
    x = jax.random.normal(jax.random.fold_in(key, 123),
                          (N, C_IN, H, W), jnp.float32)
    params = init_params(key, in_channels=C_IN, latent_channels=LATENT,
                         num_blocks=NUM_BLOCKS, K=KERNEL_SIZE)

    @jax.jit
    def run(xin):
        return resnet1_forward(xin, params, K=KERNEL_SIZE,
                               num_blocks=NUM_BLOCKS)

    out, res = run(x)
    jax.block_until_ready(out)
    jax.block_until_ready(res)

    assert out.shape == (N, LATENT, H, W), out.shape
    assert res.shape == (N, C_IN, H, W), res.shape

    ref_out, ref_res = ref_forward(x, params, K=KERNEL_SIZE,
                                   num_blocks=NUM_BLOCKS)
    assert jnp.allclose(res, ref_res)
    err = float(jnp.max(jnp.abs(out - ref_out)))
    assert jnp.allclose(out, ref_out, atol=2e-3, rtol=2e-3), err

    print("KERNEL_OK")
</pallas_src>

<mosaic_0001>
module attributes {stable_mosaic.version = 11 : i64} {
  func.func @_fused_resnet_kernel(%arg0: i32, %arg1: memref<16x16xf32, #tpu.memory_space<vmem>>, %arg2: memref<16x128xf32, #tpu.memory_space<vmem>>, %arg3: memref<7x16x128xf32, #tpu.memory_space<vmem>>, %arg4: memref<2x16xf32, #tpu.memory_space<vmem>>, %arg5: memref<5x7x128x128xf32, #tpu.memory_space<vmem>>, %arg6: memref<5x2x128xf32, #tpu.memory_space<vmem>>, %arg7: memref<16x16xf32, #tpu.memory_space<vmem>>, %arg8: memref<128x128xf32, #tpu.memory_space<vmem>>, %arg9: memref<16x128xf32, #tpu.memory_space<vmem>>) attributes {dimension_semantics = [#tpu.dimension_semantics<arbitrary>], iteration_bounds = array<i64: 1>, scalar_prefetch = 0 : i64, scratch_operands = 0 : i64, tpu.core_type = #tpu.core_type<tc>, window_params = [{pipeline_mode = #tpu.pipeline_mode<synchronous>, transform_indices = @transform_0, window_bounds = array<i64: 16, 16>}, {pipeline_mode = #tpu.pipeline_mode<synchronous>, transform_indices = @transform_1, window_bounds = array<i64: 16, 128>}, {pipeline_mode = #tpu.pipeline_mode<synchronous>, transform_indices = @transform_2, window_bounds = array<i64: 7, 16, 128>}, {pipeline_mode = #tpu.pipeline_mode<synchronous>, transform_indices = @transform_3, window_bounds = array<i64: 2, 16>}, {pipeline_mode = #tpu.pipeline_mode<synchronous>, transform_indices = @transform_4, window_bounds = array<i64: 5, 7, 128, 128>}, {pipeline_mode = #tpu.pipeline_mode<synchronous>, transform_indices = @transform_5, window_bounds = array<i64: 5, 2, 128>}, {pipeline_mode = #tpu.pipeline_mode<synchronous>, transform_indices = @transform_6, window_bounds = array<i64: 16, 16>}, {pipeline_mode = #tpu.pipeline_mode<synchronous>, transform_indices = @transform_7, window_bounds = array<i64: 128, 128>}, {pipeline_mode = #tpu.pipeline_mode<synchronous>, transform_indices = @transform_8, window_bounds = array<i64: 16, 128>}]} {
    %c0 = arith.constant 0 : index
    %c0_0 = arith.constant 0 : index
    %0 = vector.load %arg1[%c0, %c0_0] : memref<16x16xf32, #tpu.memory_space<vmem>>, vector<16x16xf32>
    %c0_1 = arith.constant 0 : index
    %c0_2 = arith.constant 0 : index
    %1 = vector.load %arg2[%c0_1, %c0_2] : memref<16x128xf32, #tpu.memory_space<vmem>>, vector<16x128xf32>
    %cst = arith.constant dense<0.000000e+00> : vector<16x128xf32>
    %2 = tpu.matmul %0, %1, %cst {dimension_numbers = #tpu.dot_dimension_numbers<[1], [0], [0], [1], [0, 0, 1, 1], [], []>} : vector<16x16xf32>, vector<16x128xf32>, vector<16x128xf32> -> vector<16x128xf32>
    %c0_3 = arith.constant 0 : index
    %c0_4 = arith.constant 0 : index
    %3 = vector.load %arg4[%c0_3, %c0_4] : memref<2x16xf32, #tpu.memory_space<vmem>>, vector<2x16xf32>
    %4 = vector.extract_strided_slice %3 {offsets = [0, 0], sizes = [1, 16], strides = [1, 1]} : vector<2x16xf32> to vector<1x16xf32>
    %5 = vector.extract_strided_slice %3 {offsets = [1, 0], sizes = [1, 16], strides = [1, 1]} : vector<2x16xf32> to vector<1x16xf32>
    %c0_5 = arith.constant 0 : index
    %c0_6 = arith.constant 0 : index
    %6 = vector.load %arg7[%c0_5, %c0_6] : memref<16x16xf32, #tpu.memory_space<vmem>>, vector<16x16xf32>
    %cst_7 = arith.constant dense<0.000000e+00> : vector<16xf32>
    %7 = vector.multi_reduction <add>, %0, %cst_7 [0] : vector<16x16xf32> to vector<16xf32>
    %8 = vector.shape_cast %7 : vector<16xf32> to vector<1x16xf32>
    %cst_8 = arith.constant dense<0.000000e+00> : vector<1x16xf32>
    %9 = tpu.matmul %8, %6, %cst_8 {dimension_numbers = #tpu.dot_dimension_numbers<[1], [0], [0], [1], [0, 0, 1, 1], [], []>} : vector<1x16xf32>, vector<16x16xf32>, vector<1x16xf32> -> vector<1x16xf32>
    %cst_9 = arith.constant 1.280000e+02 : f32
    %10 = vector.broadcast %cst_9 : f32 to vector<1x16xf32>
    %11 = arith.divf %9, %10 : vector<1x16xf32>
    %12 = vector.broadcast %11 : vector<1x16xf32> to vector<16x16xf32>
    %13 = arith.subf %0, %12 : vector<16x16xf32>
    %14 = arith.mulf %13, %13 : vector<16x16xf32>
    %cst_10 = arith.constant dense<0.000000e+00> : vector<16xf32>
    %15 = vector.multi_reduction <add>, %14, %cst_10 [0] : vector<16x16xf32> to vector<16xf32>
    %16 = vector.shape_cast %15 : vector<16xf32> to vector<1x16xf32>
    %cst_11 = arith.constant dense<0.000000e+00> : vector<1x16xf32>
    %17 = tpu.matmul %16, %6, %cst_11 {dimension_numbers = #tpu.dot_dimension_numbers<[1], [0], [0], [1], [0, 0, 1, 1], [], []>} : vector<1x16xf32>, vector<16x16xf32>, vector<1x16xf32> -> vector<1x16xf32>
    %cst_12 = arith.constant 1.280000e+02 : f32
    %18 = vector.broadcast %cst_12 : f32 to vector<1x16xf32>
    %19 = arith.divf %17, %18 : vector<1x16xf32>
    %cst_13 = arith.constant 9.99999974E-6 : f32
    %20 = vector.broadcast %cst_13 : f32 to vector<1x16xf32>
    %21 = arith.addf %19, %20 : vector<1x16xf32>
    %22 = math.rsqrt %21 : vector<1x16xf32>
    %23 = arith.mulf %4, %22 : vector<1x16xf32>
    %24 = arith.mulf %11, %23 : vector<1x16xf32>
    %25 = arith.subf %5, %24 : vector<1x16xf32>
    %26 = vector.broadcast %23 : vector<1x16xf32> to vector<16x16xf32>
    %27 = arith.mulf %0, %26 : vector<16x16xf32>
    %28 = vector.broadcast %25 : vector<1x16xf32> to vector<16x16xf32>
    %29 = arith.addf %27, %28 : vector<16x16xf32>
    %cst_14 = arith.constant 0.000000e+00 : f32
    %30 = vector.broadcast %cst_14 : f32 to vector<16x16xf32>
    %31 = arith.maximumf %29, %30 : vector<16x16xf32>
    %32 = vector.shape_cast %31 : vector<16x16xf32> to vector<2x8x16xf32>
    %33 = vector.extract_strided_slice %32 {offsets = [0, 3, 0], sizes = [2, 1, 16], strides = [1, 1, 1]} : vector<2x8x16xf32> to vector<2x1x16xf32>
    %34 = vector.extract_strided_slice %32 {offsets = [0, 2, 0], sizes = [2, 1, 16], strides = [1, 1, 1]} : vector<2x8x16xf32> to vector<2x1x16xf32>
    %35 = vector.extract_strided_slice %32 {offsets = [0, 1, 0], sizes = [2, 1, 16], strides = [1, 1, 1]} : vector<2x8x16xf32> to vector<2x1x16xf32>
    %36 = vector.extract_strided_slice %32 {offsets = [0, 6, 0], sizes = [2, 1, 16], strides = [1, 1, 1]} : vector<2x8x16xf32> to vector<2x1x16xf32>
    %37 = vector.extract_strided_slice %32 {offsets = [0, 5, 0], sizes = [2, 1, 16], strides = [1, 1, 1]} : vector<2x8x16xf32> to vector<2x1x16xf32>
    %38 = vector.extract_strided_slice %32 {offsets = [0, 4, 0], sizes = [2, 1, 16], strides = [1, 1, 1]} : vector<2x8x16xf32> to vector<2x1x16xf32>
    %39 = tpu.concatenate %33, %34, %35, %32, %36, %37, %38 in 1 : vector<2x1x16xf32>, vector<2x1x16xf32>, vector<2x1x16xf32>, vector<2x8x16xf32>, vector<2x1x16xf32>, vector<2x1x16xf32>, vector<2x1x16xf32> -> vector<2x14x16xf32>
    %cst_15 = arith.constant 0.000000e+00 : f32
    %40 = vector.broadcast %cst_15 : f32 to vector<16x128xf32>
    %41 = vector.extract_strided_slice %39 {offsets = [0, 0, 0], sizes = [2, 8, 16], strides = [1, 1, 1]} : vector<2x14x16xf32> to vector<2x8x16xf32>
    %42 = vector.shape_cast %41 : vector<2x8x16xf32> to vector<16x16xf32>
    %c0_16 = arith.constant 0 : index
    %c0_17 = arith.constant 0 : index
    %c0_18 = arith.constant 0 : index
    %43 = vector.load %arg3[%c0_16, %c0_17, %c0_18] : memref<7x16x128xf32, #tpu.memory_space<vmem>>, vector<1x16x128xf32>
    %44 = vector.shape_cast %43 : vector<1x16x128xf32> to vector<16x128xf32>
    %cst_19 = arith.constant dense<0.000000e+00> : vector<16x128xf32>
    %45 = tpu.matmul %42, %44, %cst_19 {dimension_numbers = #tpu.dot_dimension_numbers<[1], [0], [0], [1], [0, 0, 1, 1], [], []>} : vector<16x16xf32>, vector<16x128xf32>, vector<16x128xf32> -> vector<16x128xf32>
    %46 = arith.addf %40, %45 : vector<16x128xf32>
    %47 = vector.extract_strided_slice %39 {offsets = [0, 1, 0], sizes = [2, 8, 16], strides = [1, 1, 1]} : vector<2x14x16xf32> to vector<2x8x16xf32>
    %48 = vector.shape_cast %47 : vector<2x8x16xf32> to vector<16x16xf32>
    %c1 = arith.constant 1 : index
    %c0_20 = arith.constant 0 : index
    %c0_21 = arith.constant 0 : index
    %49 = vector.load %arg3[%c1, %c0_20, %c0_21] : memref<7x16x128xf32, #tpu.memory_space<vmem>>, vector<1x16x128xf32>
    %50 = vector.shape_cast %49 : vector<1x16x128xf32> to vector<16x128xf32>
    %cst_22 = arith.constant dense<0.000000e+00> : vector<16x128xf32>
    %51 = tpu.matmul %48, %50, %cst_22 {dimension_numbers = #tpu.dot_dimension_numbers<[1], [0], [0], [1], [0, 0, 1, 1], [], []>} : vector<16x16xf32>, vector<16x128xf32>, vector<16x128xf32> -> vector<16x128xf32>
    %52 = arith.addf %46, %51 : vector<16x128xf32>
    %53 = vector.extract_strided_slice %39 {offsets = [0, 2, 0], sizes = [2, 8, 16], strides = [1, 1, 1]} : vector<2x14x16xf32> to vector<2x8x16xf32>
    %54 = vector.shape_cast %53 : vector<2x8x16xf32> to vector<16x16xf32>
    %c2 = arith.constant 2 : index
    %c0_23 = arith.constant 0 : index
    %c0_24 = arith.constant 0 : index
    %55 = vector.load %arg3[%c2, %c0_23, %c0_24] : memref<7x16x128xf32, #tpu.memory_space<vmem>>, vector<1x16x128xf32>
    %56 = vector.shape_cast %55 : vector<1x16x128xf32> to vector<16x128xf32>
    %cst_25 = arith.constant dense<0.000000e+00> : vector<16x128xf32>
    %57 = tpu.matmul %54, %56, %cst_25 {dimension_numbers = #tpu.dot_dimension_numbers<[1], [0], [0], [1], [0, 0, 1, 1], [], []>} : vector<16x16xf32>, vector<16x128xf32>, vector<16x128xf32> -> vector<16x128xf32>
    %58 = arith.addf %52, %57 : vector<16x128xf32>
    %59 = vector.extract_strided_slice %39 {offsets = [0, 3, 0], sizes = [2, 8, 16], strides = [1, 1, 1]} : vector<2x14x16xf32> to vector<2x8x16xf32>
    %60 = vector.shape_cast %59 : vector<2x8x16xf32> to vector<16x16xf32>
    %c3 = arith.constant 3 : index
    %c0_26 = arith.constant 0 : index
    %c0_27 = arith.constant 0 : index
    %61 = vector.load %arg3[%c3, %c0_26, %c0_27] : memref<7x16x128xf32, #tpu.memory_space<vmem>>, vector<1x16x128xf32>
    %62 = vector.shape_cast %61 : vector<1x16x128xf32> to vector<16x128xf32>
    %cst_28 = arith.constant dense<0.000000e+00> : vector<16x128xf32>
    %63 = tpu.matmul %60, %62, %cst_28 {dimension_numbers = #tpu.dot_dimension_numbers<[1], [0], [0], [1], [0, 0, 1, 1], [], []>} : vector<16x16xf32>, vector<16x128xf32>, vector<16x128xf32> -> vector<16x128xf32>
    %64 = arith.addf %58, %63 : vector<16x128xf32>
    %65 = vector.extract_strided_slice %39 {offsets = [0, 4, 0], sizes = [2, 8, 16], strides = [1, 1, 1]} : vector<2x14x16xf32> to vector<2x8x16xf32>
    %66 = vector.shape_cast %65 : vector<2x8x16xf32> to vector<16x16xf32>
    %c4 = arith.constant 4 : index
    %c0_29 = arith.constant 0 : index
    %c0_30 = arith.constant 0 : index
    %67 = vector.load %arg3[%c4, %c0_29, %c0_30] : memref<7x16x128xf32, #tpu.memory_space<vmem>>, vector<1x16x128xf32>
    %68 = vector.shape_cast %67 : vector<1x16x128xf32> to vector<16x128xf32>
    %cst_31 = arith.constant dense<0.000000e+00> : vector<16x128xf32>
    %69 = tpu.matmul %66, %68, %cst_31 {dimension_numbers = #tpu.dot_dimension_numbers<[1], [0], [0], [1], [0, 0, 1, 1], [], []>} : vector<16x16xf32>, vector<16x128xf32>, vector<16x128xf32> -> vector<16x128xf32>
    %70 = arith.addf %64, %69 : vector<16x128xf32>
    %71 = vector.extract_strided_slice %39 {offsets = [0, 5, 0], sizes = [2, 8, 16], strides = [1, 1, 1]} : vector<2x14x16xf32> to vector<2x8x16xf32>
    %72 = vector.shape_cast %71 : vector<2x8x16xf32> to vector<16x16xf32>
    %c5 = arith.constant 5 : index
    %c0_32 = arith.constant 0 : index
    %c0_33 = arith.constant 0 : index
    %73 = vector.load %arg3[%c5, %c0_32, %c0_33] : memref<7x16x128xf32, #tpu.memory_space<vmem>>, vector<1x16x128xf32>
    %74 = vector.shape_cast %73 : vector<1x16x128xf32> to vector<16x128xf32>
    %cst_34 = arith.constant dense<0.000000e+00> : vector<16x128xf32>
    %75 = tpu.matmul %72, %74, %cst_34 {dimension_numbers = #tpu.dot_dimension_numbers<[1], [0], [0], [1], [0, 0, 1, 1], [], []>} : vector<16x16xf32>, vector<16x128xf32>, vector<16x128xf32> -> vector<16x128xf32>
    %76 = arith.addf %70, %75 : vector<16x128xf32>
    %77 = vector.extract_strided_slice %39 {offsets = [0, 6, 0], sizes = [2, 8, 16], strides = [1, 1, 1]} : vector<2x14x16xf32> to vector<2x8x16xf32>
    %78 = vector.shape_cast %77 : vector<2x8x16xf32> to vector<16x16xf32>
    %c6 = arith.constant 6 : index
    %c0_35 = arith.constant 0 : index
    %c0_36 = arith.constant 0 : index
    %79 = vector.load %arg3[%c6, %c0_35, %c0_36] : memref<7x16x128xf32, #tpu.memory_space<vmem>>, vector<1x16x128xf32>
    %80 = vector.shape_cast %79 : vector<1x16x128xf32> to vector<16x128xf32>
    %cst_37 = arith.constant dense<0.000000e+00> : vector<16x128xf32>
    %81 = tpu.matmul %78, %80, %cst_37 {dimension_numbers = #tpu.dot_dimension_numbers<[1], [0], [0], [1], [0, 0, 1, 1], [], []>} : vector<16x16xf32>, vector<16x128xf32>, vector<16x128xf32> -> vector<16x128xf32>
    %82 = arith.addf %76, %81 : vector<16x128xf32>
    %c0_38 = arith.constant 0 : index
    %c0_39 = arith.constant 0 : index
    %c0_40 = arith.constant 0 : index
    %83 = vector.load %arg6[%c0_38, %c0_39, %c0_40] : memref<5x2x128xf32, #tpu.memory_space<vmem>>, vector<1x2x128xf32>
    %84 = vector.shape_cast %83 : vector<1x2x128xf32> to vector<2x128xf32>
    %85 = vector.extract_strided_slice %84 {offsets = [0, 0], sizes = [1, 128], strides = [1, 1]} : vector<2x128xf32> to vector<1x128xf32>
    %86 = vector.extract_strided_slice %84 {offsets = [1, 0], sizes = [1, 128], strides = [1, 1]} : vector<2x128xf32> to vector<1x128xf32>
    %c0_41 = arith.constant 0 : index
    %c0_42 = arith.constant 0 : index
    %87 = vector.load %arg8[%c0_41, %c0_42] : memref<128x128xf32, #tpu.memory_space<vmem>>, vector<128x128xf32>
    %cst_43 = arith.constant dense<0.000000e+00> : vector<128xf32>
    %88 = vector.multi_reduction <add>, %82, %cst_43 [0] : vector<16x128xf32> to vector<128xf32>
    %89 = vector.shape_cast %88 : vector<128xf32> to vector<1x128xf32>
    %cst_44 = arith.constant dense<0.000000e+00> : vector<1x128xf32>
    %90 = tpu.matmul %89, %87, %cst_44 {dimension_numbers = #tpu.dot_dimension_numbers<[1], [0], [0], [1], [0, 0, 1, 1], [], []>} : vector<1x128xf32>, vector<128x128xf32>, vector<1x128xf32> -> vector<1x128xf32>
    %cst_45 = arith.constant 1.280000e+02 : f32
    %91 = vector.broadcast %cst_45 : f32 to vector<1x128xf32>
    %92 = arith.divf %90, %91 : vector<1x128xf32>
    %93 = vector.broadcast %92 : vector<1x128xf32> to vector<16x128xf32>
    %94 = arith.subf %82, %93 : vector<16x128xf32>
    %95 = arith.mulf %94, %94 : vector<16x128xf32>
    %cst_46 = arith.constant dense<0.000000e+00> : vector<128xf32>
    %96 = vector.multi_reduction <add>, %95, %cst_46 [0] : vector<16x128xf32> to vector<128xf32>
    %97 = vector.shape_cast %96 : vector<128xf32> to vector<1x128xf32>
    %cst_47 = arith.constant dense<0.000000e+00> : vector<1x128xf32>
    %98 = tpu.matmul %97, %87, %cst_47 {dimension_numbers = #tpu.dot_dimension_numbers<[1], [0], [0], [1], [0, 0, 1, 1], [], []>} : vector<1x128xf32>, vector<128x128xf32>, vector<1x128xf32> -> vector<1x128xf32>
    %cst_48 = arith.constant 1.280000e+02 : f32
    %99 = vector.broadcast %cst_48 : f32 to vector<1x128xf32>
    %100 = arith.divf %98, %99 : vector<1x128xf32>
    %cst_49 = arith.constant 9.99999974E-6 : f32
    %101 = vector.broadcast %cst_49 : f32 to vector<1x128xf32>
    %102 = arith.addf %100, %101 : vector<1x128xf32>
    %103 = math.rsqrt %102 : vector<1x128xf32>
    %104 = arith.mulf %85, %103 : vector<1x128xf32>
    %105 = arith.mulf %92, %104 : vector<1x128xf32>
    %106 = arith.subf %86, %105 : vector<1x128xf32>
    %107 = vector.broadcast %104 : vector<1x128xf32> to vector<16x128xf32>
    %108 = arith.mulf %82, %107 : vector<16x128xf32>
    %109 = vector.broadcast %106 : vector<1x128xf32> to vector<16x128xf32>
    %110 = arith.addf %108, %109 : vector<16x128xf32>
    %cst_50 = arith.constant 0.000000e+00 : f32
    %111 = vector.broadcast %cst_50 : f32 to vector<16x128xf32>
    %112 = arith.maximumf %110, %111 : vector<16x128xf32>
    %113 = vector.shape_cast %112 : vector<16x128xf32> to vector<2x8x128xf32>
    %114 = vector.extract_strided_slice %113 {offsets = [0, 3, 0], sizes = [2, 1, 128], strides = [1, 1, 1]} : vector<2x8x128xf32> to vector<2x1x128xf32>
    %115 = vector.extract_strided_slice %113 {offsets = [0, 2, 0], sizes = [2, 1, 128], strides = [1, 1, 1]} : vector<2x8x128xf32> to vector<2x1x128xf32>
    %116 = vector.extract_strided_slice %113 {offsets = [0, 1, 0], sizes = [2, 1, 128], strides = [1, 1, 1]} : vector<2x8x128xf32> to vector<2x1x128xf32>
    %117 = vector.extract_strided_slice %113 {offsets = [0, 6, 0], sizes = [2, 1, 128], strides = [1, 1, 1]} : vector<2x8x128xf32> to vector<2x1x128xf32>
    %118 = vector.extract_strided_slice %113 {offsets = [0, 5, 0], sizes = [2, 1, 128], strides = [1, 1, 1]} : vector<2x8x128xf32> to vector<2x1x128xf32>
    %119 = vector.extract_strided_slice %113 {offsets = [0, 4, 0], sizes = [2, 1, 128], strides = [1, 1, 1]} : vector<2x8x128xf32> to vector<2x1x128xf32>
    %120 = tpu.concatenate %114, %115, %116, %113, %117, %118, %119 in 1 : vector<2x1x128xf32>, vector<2x1x128xf32>, vector<2x1x128xf32>, vector<2x8x128xf32>, vector<2x1x128xf32>, vector<2x1x128xf32>, vector<2x1x128xf32> -> vector<2x14x128xf32>
    %cst_51 = arith.constant 0.000000e+00 : f32
    %121 = vector.broadcast %cst_51 : f32 to vector<16x128xf32>
    %122 = vector.extract_strided_slice %120 {offsets = [0, 0, 0], sizes = [2, 8, 128], strides = [1, 1, 1]} : vector<2x14x128xf32> to vector<2x8x128xf32>
    %123 = vector.shape_cast %122 : vector<2x8x128xf32> to vector<16x128xf32>
    %c0_52 = arith.constant 0 : index
    %c0_53 = arith.constant 0 : index
    %c0_54 = arith.constant 0 : index
    %c0_55 = arith.constant 0 : index
    %124 = vector.load %arg5[%c0_52, %c0_53, %c0_54, %c0_55] : memref<5x7x128x128xf32, #tpu.memory_space<vmem>>, vector<1x1x128x128xf32>
    %125 = vector.shape_cast %124 : vector<1x1x128x128xf32> to vector<128x128xf32>
    %cst_56 = arith.constant dense<0.000000e+00> : vector<16x128xf32>
    %126 = tpu.matmul %123, %125, %cst_56 {dimension_numbers = #tpu.dot_dimension_numbers<[1], [0], [0], [1], [0, 0, 1, 1], [], []>} : vector<16x128xf32>, vector<128x128xf32>, vector<16x128xf32> -> vector<16x128xf32>
    %127 = arith.addf %121, %126 : vector<16x128xf32>
    %128 = vector.extract_strided_slice %120 {offsets = [0, 1, 0], sizes = [2, 8, 128], strides = [1, 1, 1]} : vector<2x14x128xf32> to vector<2x8x128xf32>
    %129 = vector.shape_cast %128 : vector<2x8x128xf32> to vector<16x128xf32>
    %c0_57 = arith.constant 0 : index
    %c1_58 = arith.constant 1 : index
    %c0_59 = arith.constant 0 : index
    %c0_60 = arith.constant 0 : index
    %130 = vector.load %arg5[%c0_57, %c1_58, %c0_59, %c0_60] : memref<5x7x128x128xf32, #tpu.memory_space<vmem>>, vector<1x1x128x128xf32>
    %131 = vector.shape_cast %130 : vector<1x1x128x128xf32> to vector<128x128xf32>
    %cst_61 = arith.constant dense<0.000000e+00> : vector<16x128xf32>
    %132 = tpu.matmul %129, %131, %cst_61 {dimension_numbers = #tpu.dot_dimension_numbers<[1], [0], [0], [1], [0, 0, 1, 1], [], []>} : vector<16x128xf32>, vector<128x128xf32>, vector<16x128xf32> -> vector<16x128xf32>
    %133 = arith.addf %127, %132 : vector<16x128xf32>
    %134 = vector.extract_strided_slice %120 {offsets = [0, 2, 0], sizes = [2, 8, 128], strides = [1, 1, 1]} : vector<2x14x128xf32> to vector<2x8x128xf32>
    %135 = vector.shape_cast %134 : vector<2x8x128xf32> to vector<16x128xf32>
    %c0_62 = arith.constant 0 : index
    %c2_63 = arith.constant 2 : index
    %c0_64 = arith.constant 0 : index
    %c0_65 = arith.constant 0 : index
    %136 = vector.load %arg5[%c0_62, %c2_63, %c0_64, %c0_65] : memref<5x7x128x128xf32, #tpu.memory_space<vmem>>, vector<1x1x128x128xf32>
    %137 = vector.shape_cast %136 : vector<1x1x128x128xf32> to vector<128x128xf32>
    %cst_66 = arith.constant dense<0.000000e+00> : vector<16x128xf32>
    %138 = tpu.matmul %135, %137, %cst_66 {dimension_numbers = #tpu.dot_dimension_numbers<[1], [0], [0], [1], [0, 0, 1, 1], [], []>} : vector<16x128xf32>, vector<128x128xf32>, vector<16x128xf32> -> vector<16x128xf32>
    %139 = arith.addf %133, %138 : vector<16x128xf32>
    %140 = vector.extract_strided_slice %120 {offsets = [0, 3, 0], sizes = [2, 8, 128], strides = [1, 1, 1]} : vector<2x14x128xf32> to vector<2x8x128xf32>
    %141 = vector.shape_cast %140 : vector<2x8x128xf32> to vector<16x128xf32>
    %c0_67 = arith.constant 0 : index
    %c3_68 = arith.constant 3 : index
    %c0_69 = arith.constant 0 : index
    %c0_70 = arith.constant 0 : index
    %142 = vector.load %arg5[%c0_67, %c3_68, %c0_69, %c0_70] : memref<5x7x128x128xf32, #tpu.memory_space<vmem>>, vector<1x1x128x128xf32>
    %143 = vector.shape_cast %142 : vector<1x1x128x128xf32> to vector<128x128xf32>
    %cst_71 = arith.constant dense<0.000000e+00> : vector<16x128xf32>
    %144 = tpu.matmul %141, %143, %cst_71 {dimension_numbers = #tpu.dot_dimension_numbers<[1], [0], [0], [1], [0, 0, 1, 1], [], []>} : vector<16x128xf32>, vector<128x128xf32>, vector<16x128xf32> -> vector<16x128xf32>
    %145 = arith.addf %139, %144 : vector<16x128xf32>
    %146 = vector.extract_strided_slice %120 {offsets = [0, 4, 0], sizes = [2, 8, 128], strides = [1, 1, 1]} : vector<2x14x128xf32> to vector<2x8x128xf32>
    %147 = vector.shape_cast %146 : vector<2x8x128xf32> to vector<16x128xf32>
    %c0_72 = arith.constant 0 : index
    %c4_73 = arith.constant 4 : index
    %c0_74 = arith.constant 0 : index
    %c0_75 = arith.constant 0 : index
    %148 = vector.load %arg5[%c0_72, %c4_73, %c0_74, %c0_75] : memref<5x7x128x128xf32, #tpu.memory_space<vmem>>, vector<1x1x128x128xf32>
    %149 = vector.shape_cast %148 : vector<1x1x128x128xf32> to vector<128x128xf32>
    %cst_76 = arith.constant dense<0.000000e+00> : vector<16x128xf32>
    %150 = tpu.matmul %147, %149, %cst_76 {dimension_numbers = #tpu.dot_dimension_numbers<[1], [0], [0], [1], [0, 0, 1, 1], [], []>} : vector<16x128xf32>, vector<128x128xf32>, vector<16x128xf32> -> vector<16x128xf32>
    %151 = arith.addf %145, %150 : vector<16x128xf32>
    %152 = vector.extract_strided_slice %120 {offsets = [0, 5, 0], sizes = [2, 8, 128], strides = [1, 1, 1]} : vector<2x14x128xf32> to vector<2x8x128xf32>
    %153 = vector.shape_cast %152 : vector<2x8x128xf32> to vector<16x128xf32>
    %c0_77 = arith.constant 0 : index
    %c5_78 = arith.constant 5 : index
    %c0_79 = arith.constant 0 : index
    %c0_80 = arith.constant 0 : index
    %154 = vector.load %arg5[%c0_77, %c5_78, %c0_79, %c0_80] : memref<5x7x128x128xf32, #tpu.memory_space<vmem>>, vector<1x1x128x128xf32>
    %155 = vector.shape_cast %154 : vector<1x1x128x128xf32> to vector<128x128xf32>
    %cst_81 = arith.constant dense<0.000000e+00> : vector<16x128xf32>
    %156 = tpu.matmul %153, %155, %cst_81 {dimension_numbers = #tpu.dot_dimension_numbers<[1], [0], [0], [1], [0, 0, 1, 1], [], []>} : vector<16x128xf32>, vector<128x128xf32>, vector<16x128xf32> -> vector<16x128xf32>
    %157 = arith.addf %151, %156 : vector<16x128xf32>
    %158 = vector.extract_strided_slice %120 {offsets = [0, 6, 0], sizes = [2, 8, 128], strides = [1, 1, 1]} : vector<2x14x128xf32> to vector<2x8x128xf32>
    %159 = vector.shape_cast %158 : vector<2x8x128xf32> to vector<16x128xf32>
    %c0_82 = arith.constant 0 : index
    %c6_83 = arith.constant 6 : index
    %c0_84 = arith.constant 0 : index
    %c0_85 = arith.constant 0 : index
    %160 = vector.load %arg5[%c0_82, %c6_83, %c0_84, %c0_85] : memref<5x7x128x128xf32, #tpu.memory_space<vmem>>, vector<1x1x128x128xf32>
    %161 = vector.shape_cast %160 : vector<1x1x128x128xf32> to vector<128x128xf32>
    %cst_86 = arith.constant dense<0.000000e+00> : vector<16x128xf32>
    %162 = tpu.matmul %159, %161, %cst_86 {dimension_numbers = #tpu.dot_dimension_numbers<[1], [0], [0], [1], [0, 0, 1, 1], [], []>} : vector<16x128xf32>, vector<128x128xf32>, vector<16x128xf32> -> vector<16x128xf32>
    %163 = arith.addf %157, %162 : vector<16x128xf32>
    %164 = arith.addf %163, %2 : vector<16x128xf32>
    %c1_87 = arith.constant 1 : index
    %c0_88 = arith.constant 0 : index
    %c0_89 = arith.constant 0 : index
    %165 = vector.load %arg6[%c1_87, %c0_88, %c0_89] : memref<5x2x128xf32, #tpu.memory_space<vmem>>, vector<1x2x128xf32>
    %166 = vector.shape_cast %165 : vector<1x2x128xf32> to vector<2x128xf32>
    %167 = vector.extract_strided_slice %166 {offsets = [0, 0], sizes = [1, 128], strides = [1, 1]} : vector<2x128xf32> to vector<1x128xf32>
    %168 = vector.extract_strided_slice %166 {offsets = [1, 0], sizes = [1, 128], strides = [1, 1]} : vector<2x128xf32> to vector<1x128xf32>
    %c0_90 = arith.constant 0 : index
    %c0_91 = arith.constant 0 : index
    %169 = vector.load %arg8[%c0_90, %c0_91] : memref<128x128xf32, #tpu.memory_space<vmem>>, vector<128x128xf32>
    %cst_92 = arith.constant dense<0.000000e+00> : vector<128xf32>
    %170 = vector.multi_reduction <add>, %164, %cst_92 [0] : vector<16x128xf32> to vector<128xf32>
    %171 = vector.shape_cast %170 : vector<128xf32> to vector<1x128xf32>
    %cst_93 = arith.constant dense<0.000000e+00> : vector<1x128xf32>
    %172 = tpu.matmul %171, %169, %cst_93 {dimension_numbers = #tpu.dot_dimension_numbers<[1], [0], [0], [1], [0, 0, 1, 1], [], []>} : vector<1x128xf32>, vector<128x128xf32>, vector<1x128xf32> -> vector<1x128xf32>
    %cst_94 = arith.constant 1.280000e+02 : f32
    %173 = vector.broadcast %cst_94 : f32 to vector<1x128xf32>
    %174 = arith.divf %172, %173 : vector<1x128xf32>
    %175 = vector.broadcast %174 : vector<1x128xf32> to vector<16x128xf32>
    %176 = arith.subf %164, %175 : vector<16x128xf32>
    %177 = arith.mulf %176, %176 : vector<16x128xf32>
    %cst_95 = arith.constant dense<0.000000e+00> : vector<128xf32>
    %178 = vector.multi_reduction <add>, %177, %cst_95 [0] : vector<16x128xf32> to vector<128xf32>
    %179 = vector.shape_cast %178 : vector<128xf32> to vector<1x128xf32>
    %cst_96 = arith.constant dense<0.000000e+00> : vector<1x128xf32>
    %180 = tpu.matmul %179, %169, %cst_96 {dimension_numbers = #tpu.dot_dimension_numbers<[1], [0], [0], [1], [0, 0, 1, 1], [], []>} : vector<1x128xf32>, vector<128x128xf32>, vector<1x128xf32> -> vector<1x128xf32>
    %cst_97 = arith.constant 1.280000e+02 : f32
    %181 = vector.broadcast %cst_97 : f32 to vector<1x128xf32>
    %182 = arith.divf %180, %181 : vector<1x128xf32>
    %cst_98 = arith.constant 9.99999974E-6 : f32
    %183 = vector.broadcast %cst_98 : f32 to vector<1x128xf32>
    %184 = arith.addf %182, %183 : vector<1x128xf32>
    %185 = math.rsqrt %184 : vector<1x128xf32>
    %186 = arith.mulf %167, %185 : vector<1x128xf32>
    %187 = arith.mulf %174, %186 : vector<1x128xf32>
    %188 = arith.subf %168, %187 : vector<1x128xf32>
    %189 = vector.broadcast %186 : vector<1x128xf32> to vector<16x128xf32>
    %190 = arith.mulf %164, %189 : vector<16x128xf32>
    %191 = vector.broadcast %188 : vector<1x128xf32> to vector<16x128xf32>
    %192 = arith.addf %190, %191 : vector<16x128xf32>
    %cst_99 = arith.constant 0.000000e+00 : f32
    %193 = vector.broadcast %cst_99 : f32 to vector<16x128xf32>
    %194 = arith.maximumf %192, %193 : vector<16x128xf32>
    %195 = vector.shape_cast %194 : vector<16x128xf32> to vector<2x8x128xf32>
    %196 = vector.extract_strided_slice %195 {offsets = [0, 3, 0], sizes = [2, 1, 128], strides = [1, 1, 1]} : vector<2x8x128xf32> to vector<2x1x128xf32>
    %197 = vector.extract_strided_slice %195 {offsets = [0, 2, 0], sizes = [2, 1, 128], strides = [1, 1, 1]} : vector<2x8x128xf32> to vector<2x1x128xf32>
    %198 = vector.extract_strided_slice %195 {offsets = [0, 1, 0], sizes = [2, 1, 128], strides = [1, 1, 1]} : vector<2x8x128xf32> to vector<2x1x128xf32>
    %199 = vector.extract_strided_slice %195 {offsets = [0, 6, 0], sizes = [2, 1, 128], strides = [1, 1, 1]} : vector<2x8x128xf32> to vector<2x1x128xf32>
    %200 = vector.extract_strided_slice %195 {offsets = [0, 5, 0], sizes = [2, 1, 128], strides = [1, 1, 1]} : vector<2x8x128xf32> to vector<2x1x128xf32>
    %201 = vector.extract_strided_slice %195 {offsets = [0, 4, 0], sizes = [2, 1, 128], strides = [1, 1, 1]} : vector<2x8x128xf32> to vector<2x1x128xf32>
    %202 = tpu.concatenate %196, %197, %198, %195, %199, %200, %201 in 1 : vector<2x1x128xf32>, vector<2x1x128xf32>, vector<2x1x128xf32>, vector<2x8x128xf32>, vector<2x1x128xf32>, vector<2x1x128xf32>, vector<2x1x128xf32> -> vector<2x14x128xf32>
    %cst_100 = arith.constant 0.000000e+00 : f32
    %203 = vector.broadcast %cst_100 : f32 to vector<16x128xf32>
    %204 = vector.extract_strided_slice %202 {offsets = [0, 0, 0], sizes = [2, 8, 128], strides = [1, 1, 1]} : vector<2x14x128xf32> to vector<2x8x128xf32>
    %205 = vector.shape_cast %204 : vector<2x8x128xf32> to vector<16x128xf32>
    %c1_101 = arith.constant 1 : index
    %c0_102 = arith.constant 0 : index
    %c0_103 = arith.constant 0 : index
    %c0_104 = arith.constant 0 : index
    %206 = vector.load %arg5[%c1_101, %c0_102, %c0_103, %c0_104] : memref<5x7x128x128xf32, #tpu.memory_space<vmem>>, vector<1x1x128x128xf32>
    %207 = vector.shape_cast %206 : vector<1x1x128x128xf32> to vector<128x128xf32>
    %cst_105 = arith.constant dense<0.000000e+00> : vector<16x128xf32>
    %208 = tpu.matmul %205, %207, %cst_105 {dimension_numbers = #tpu.dot_dimension_numbers<[1], [0], [0], [1], [0, 0, 1, 1], [], []>} : vector<16x128xf32>, vector<128x128xf32>, vector<16x128xf32> -> vector<16x128xf32>
    %209 = arith.addf %203, %208 : vector<16x128xf32>
    %210 = vector.extract_strided_slice %202 {offsets = [0, 1, 0], sizes = [2, 8, 128], strides = [1, 1, 1]} : vector<2x14x128xf32> to vector<2x8x128xf32>
    %211 = vector.shape_cast %210 : vector<2x8x128xf32> to vector<16x128xf32>
    %c1_106 = arith.constant 1 : index
    %c1_107 = arith.constant 1 : index
    %c0_108 = arith.constant 0 : index
    %c0_109 = arith.constant 0 : index
    %212 = vector.load %arg5[%c1_106, %c1_107, %c0_108, %c0_109] : memref<5x7x128x128xf32, #tpu.memory_space<vmem>>, vector<1x1x128x128xf32>
    %213 = vector.shape_cast %212 : vector<1x1x128x128xf32> to vector<128x128xf32>
    %cst_110 = arith.constant dense<0.000000e+00> : vector<16x128xf32>
    %214 = tpu.matmul %211, %213, %cst_110 {dimension_numbers = #tpu.dot_dimension_numbers<[1], [0], [0], [1], [0, 0, 1, 1], [], []>} : vector<16x128xf32>, vector<128x128xf32>, vector<16x128xf32> -> vector<16x128xf32>
    %215 = arith.addf %209, %214 : vector<16x128xf32>
    %216 = vector.extract_strided_slice %202 {offsets = [0, 2, 0], sizes = [2, 8, 128], strides = [1, 1, 1]} : vector<2x14x128xf32> to vector<2x8x128xf32>
    %217 = vector.shape_cast %216 : vector<2x8x128xf32> to vector<16x128xf32>
    %c1_111 = arith.constant 1 : index
    %c2_112 = arith.constant 2 : index
    %c0_113 = arith.constant 0 : index
    %c0_114 = arith.constant 0 : index
    %218 = vector.load %arg5[%c1_111, %c2_112, %c0_113, %c0_114] : memref<5x7x128x128xf32, #tpu.memory_space<vmem>>, vector<1x1x128x128xf32>
    %219 = vector.shape_cast %218 : vector<1x1x128x128xf32> to vector<128x128xf32>
    %cst_115 = arith.constant dense<0.000000e+00> : vector<16x128xf32>
    %220 = tpu.matmul %217, %219, %cst_115 {dimension_numbers = #tpu.dot_dimension_numbers<[1], [0], [0], [1], [0, 0, 1, 1], [], []>} : vector<16x128xf32>, vector<128x128xf32>, vector<16x128xf32> -> vector<16x128xf32>
    %221 = arith.addf %215, %220 : vector<16x128xf32>
    %222 = vector.extract_strided_slice %202 {offsets = [0, 3, 0], sizes = [2, 8, 128], strides = [1, 1, 1]} : vector<2x14x128xf32> to vector<2x8x128xf32>
    %223 = vector.shape_cast %222 : vector<2x8x128xf32> to vector<16x128xf32>
    %c1_116 = arith.constant 1 : index
    %c3_117 = arith.constant 3 : index
    %c0_118 = arith.constant 0 : index
    %c0_119 = arith.constant 0 : index
    %224 = vector.load %arg5[%c1_116, %c3_117, %c0_118, %c0_119] : memref<5x7x128x128xf32, #tpu.memory_space<vmem>>, vector<1x1x128x128xf32>
    %225 = vector.shape_cast %224 : vector<1x1x128x128xf32> to vector<128x128xf32>
    %cst_120 = arith.constant dense<0.000000e+00> : vector<16x128xf32>
    %226 = tpu.matmul %223, %225, %cst_120 {dimension_numbers = #tpu.dot_dimension_numbers<[1], [0], [0], [1], [0, 0, 1, 1], [], []>} : vector<16x128xf32>, vector<128x128xf32>, vector<16x128xf32> -> vector<16x128xf32>
    %227 = arith.addf %221, %226 : vector<16x128xf32>
    %228 = vector.extract_strided_slice %202 {offsets = [0, 4, 0], sizes = [2, 8, 128], strides = [1, 1, 1]} : vector<2x14x128xf32> to vector<2x8x128xf32>
    %229 = vector.shape_cast %228 : vector<2x8x128xf32> to vector<16x128xf32>
    %c1_121 = arith.constant 1 : index
    %c4_122 = arith.constant 4 : index
    %c0_123 = arith.constant 0 : index
    %c0_124 = arith.constant 0 : index
    %230 = vector.load %arg5[%c1_121, %c4_122, %c0_123, %c0_124] : memref<5x7x128x128xf32, #tpu.memory_space<vmem>>, vector<1x1x128x128xf32>
    %231 = vector.shape_cast %230 : vector<1x1x128x128xf32> to vector<128x128xf32>
    %cst_125 = arith.constant dense<0.000000e+00> : vector<16x128xf32>
    %232 = tpu.matmul %229, %231, %cst_125 {dimension_numbers = #tpu.dot_dimension_numbers<[1], [0], [0], [1], [0, 0, 1, 1], [], []>} : vector<16x128xf32>, vector<128x128xf32>, vector<16x128xf32> -> vector<16x128xf32>
    %233 = arith.addf %227, %232 : vector<16x128xf32>
    %234 = vector.extract_strided_slice %202 {offsets = [0, 5, 0], sizes = [2, 8, 128], strides = [1, 1, 1]} : vector<2x14x128xf32> to vector<2x8x128xf32>
    %235 = vector.shape_cast %234 : vector<2x8x128xf32> to vector<16x128xf32>
    %c1_126 = arith.constant 1 : index
    %c5_127 = arith.constant 5 : index
    %c0_128 = arith.constant 0 : index
    %c0_129 = arith.constant 0 : index
    %236 = vector.load %arg5[%c1_126, %c5_127, %c0_128, %c0_129] : memref<5x7x128x128xf32, #tpu.memory_space<vmem>>, vector<1x1x128x128xf32>
    %237 = vector.shape_cast %236 : vector<1x1x128x128xf32> to vector<128x128xf32>
    %cst_130 = arith.constant dense<0.000000e+00> : vector<16x128xf32>
    %238 = tpu.matmul %235, %237, %cst_130 {dimension_numbers = #tpu.dot_dimension_numbers<[1], [0], [0], [1], [0, 0, 1, 1], [], []>} : vector<16x128xf32>, vector<128x128xf32>, vector<16x128xf32> -> vector<16x128xf32>
    %239 = arith.addf %233, %238 : vector<16x128xf32>
    %240 = vector.extract_strided_slice %202 {offsets = [0, 6, 0], sizes = [2, 8, 128], strides = [1, 1, 1]} : vector<2x14x128xf32> to vector<2x8x128xf32>
    %241 = vector.shape_cast %240 : vector<2x8x128xf32> to vector<16x128xf32>
    %c1_131 = arith.constant 1 : index
    %c6_132 = arith.constant 6 : index
    %c0_133 = arith.constant 0 : index
    %c0_134 = arith.constant 0 : index
    %242 = vector.load %arg5[%c1_131, %c6_132, %c0_133, %c0_134] : memref<5x7x128x128xf32, #tpu.memory_space<vmem>>, vector<1x1x128x128xf32>
    %243 = vector.shape_cast %242 : vector<1x1x128x128xf32> to vector<128x128xf32>
    %cst_135 = arith.constant dense<0.000000e+00> : vector<16x128xf32>
    %244 = tpu.matmul %241, %243, %cst_135 {dimension_numbers = #tpu.dot_dimension_numbers<[1], [0], [0], [1], [0, 0, 1, 1], [], []>} : vector<16x128xf32>, vector<128x128xf32>, vector<16x128xf32> -> vector<16x128xf32>
    %245 = arith.addf %239, %244 : vector<16x128xf32>
    %c2_136 = arith.constant 2 : index
    %c0_137 = arith.constant 0 : index
    %c0_138 = arith.constant 0 : index
    %246 = vector.load %arg6[%c2_136, %c0_137, %c0_138] : memref<5x2x128xf32, #tpu.memory_space<vmem>>, vector<1x2x128xf32>
    %247 = vector.shape_cast %246 : vector<1x2x128xf32> to vector<2x128xf32>
    %248 = vector.extract_strided_slice %247 {offsets = [0, 0], sizes = [1, 128], strides = [1, 1]} : vector<2x128xf32> to vector<1x128xf32>
    %249 = vector.extract_strided_slice %247 {offsets = [1, 0], sizes = [1, 128], strides = [1, 1]} : vector<2x128xf32> to vector<1x128xf32>
    %c0_139 = arith.constant 0 : index
    %c0_140 = arith.constant 0 : index
    %250 = vector.load %arg8[%c0_139, %c0_140] : memref<128x128xf32, #tpu.memory_space<vmem>>, vector<128x128xf32>
    %cst_141 = arith.constant dense<0.000000e+00> : vector<128xf32>
    %251 = vector.multi_reduction <add>, %245, %cst_141 [0] : vector<16x128xf32> to vector<128xf32>
    %252 = vector.shape_cast %251 : vector<128xf32> to vector<1x128xf32>
    %cst_142 = arith.constant dense<0.000000e+00> : vector<1x128xf32>
    %253 = tpu.matmul %252, %250, %cst_142 {dimension_numbers = #tpu.dot_dimension_numbers<[1], [0], [0], [1], [0, 0, 1, 1], [], []>} : vector<1x128xf32>, vector<128x128xf32>, vector<1x128xf32> -> vector<1x128xf32>
    %cst_143 = arith.constant 1.280000e+02 : f32
    %254 = vector.broadcast %cst_143 : f32 to vector<1x128xf32>
    %255 = arith.divf %253, %254 : vector<1x128xf32>
    %256 = vector.broadcast %255 : vector<1x128xf32> to vector<16x128xf32>
    %257 = arith.subf %245, %256 : vector<16x128xf32>
    %258 = arith.mulf %257, %257 : vector<16x128xf32>
    %cst_144 = arith.constant dense<0.000000e+00> : vector<128xf32>
    %259 = vector.multi_reduction <add>, %258, %cst_144 [0] : vector<16x128xf32> to vector<128xf32>
    %260 = vector.shape_cast %259 : vector<128xf32> to vector<1x128xf32>
    %cst_145 = arith.constant dense<0.000000e+00> : vector<1x128xf32>
    %261 = tpu.matmul %260, %250, %cst_145 {dimension_numbers = #tpu.dot_dimension_numbers<[1], [0], [0], [1], [0, 0, 1, 1], [], []>} : vector<1x128xf32>, vector<128x128xf32>, vector<1x128xf32> -> vector<1x128xf32>
    %cst_146 = arith.constant 1.280000e+02 : f32
    %262 = vector.broadcast %cst_146 : f32 to vector<1x128xf32>
    %263 = arith.divf %261, %262 : vector<1x128xf32>
    %cst_147 = arith.constant 9.99999974E-6 : f32
    %264 = vector.broadcast %cst_147 : f32 to vector<1x128xf32>
    %265 = arith.addf %263, %264 : vector<1x128xf32>
    %266 = math.rsqrt %265 : vector<1x128xf32>
    %267 = arith.mulf %248, %266 : vector<1x128xf32>
    %268 = arith.mulf %255, %267 : vector<1x128xf32>
    %269 = arith.subf %249, %268 : vector<1x128xf32>
    %270 = vector.broadcast %267 : vector<1x128xf32> to vector<16x128xf32>
    %271 = arith.mulf %245, %270 : vector<16x128xf32>
    %272 = vector.broadcast %269 : vector<1x128xf32> to vector<16x128xf32>
    %273 = arith.addf %271, %272 : vector<16x128xf32>
    %cst_148 = arith.constant 0.000000e+00 : f32
    %274 = vector.broadcast %cst_148 : f32 to vector<16x128xf32>
    %275 = arith.maximumf %273, %274 : vector<16x128xf32>
    %276 = vector.shape_cast %275 : vector<16x128xf32> to vector<2x8x128xf32>
    %277 = vector.extract_strided_slice %276 {offsets = [0, 3, 0], sizes = [2, 1, 128], strides = [1, 1, 1]} : vector<2x8x128xf32> to vector<2x1x128xf32>
    %278 = vector.extract_strided_slice %276 {offsets = [0, 2, 0], sizes = [2, 1, 128], strides = [1, 1, 1]} : vector<2x8x128xf32> to vector<2x1x128xf32>
    %279 = vector.extract_strided_slice %276 {offsets = [0, 1, 0], sizes = [2, 1, 128], strides = [1, 1, 1]} : vector<2x8x128xf32> to vector<2x1x128xf32>
    %280 = vector.extract_strided_slice %276 {offsets = [0, 6, 0], sizes = [2, 1, 128], strides = [1, 1, 1]} : vector<2x8x128xf32> to vector<2x1x128xf32>
    %281 = vector.extract_strided_slice %276 {offsets = [0, 5, 0], sizes = [2, 1, 128], strides = [1, 1, 1]} : vector<2x8x128xf32> to vector<2x1x128xf32>
    %282 = vector.extract_strided_slice %276 {offsets = [0, 4, 0], sizes = [2, 1, 128], strides = [1, 1, 1]} : vector<2x8x128xf32> to vector<2x1x128xf32>
    %283 = tpu.concatenate %277, %278, %279, %276, %280, %281, %282 in 1 : vector<2x1x128xf32>, vector<2x1x128xf32>, vector<2x1x128xf32>, vector<2x8x128xf32>, vector<2x1x128xf32>, vector<2x1x128xf32>, vector<2x1x128xf32> -> vector<2x14x128xf32>
    %cst_149 = arith.constant 0.000000e+00 : f32
    %284 = vector.broadcast %cst_149 : f32 to vector<16x128xf32>
    %285 = vector.extract_strided_slice %283 {offsets = [0, 0, 0], sizes = [2, 8, 128], strides = [1, 1, 1]} : vector<2x14x128xf32> to vector<2x8x128xf32>
    %286 = vector.shape_cast %285 : vector<2x8x128xf32> to vector<16x128xf32>
    %c2_150 = arith.constant 2 : index
    %c0_151 = arith.constant 0 : index
    %c0_152 = arith.constant 0 : index
    %c0_153 = arith.constant 0 : index
    %287 = vector.load %arg5[%c2_150, %c0_151, %c0_152, %c0_153] : memref<5x7x128x128xf32, #tpu.memory_space<vmem>>, vector<1x1x128x128xf32>
    %288 = vector.shape_cast %287 : vector<1x1x128x128xf32> to vector<128x128xf32>
    %cst_154 = arith.constant dense<0.000000e+00> : vector<16x128xf32>
    %289 = tpu.matmul %286, %288, %cst_154 {dimension_numbers = #tpu.dot_dimension_numbers<[1], [0], [0], [1], [0, 0, 1, 1], [], []>} : vector<16x128xf32>, vector<128x128xf32>, vector<16x128xf32> -> vector<16x128xf32>
    %290 = arith.addf %284, %289 : vector<16x128xf32>
    %291 = vector.extract_strided_slice %283 {offsets = [0, 1, 0], sizes = [2, 8, 128], strides = [1, 1, 1]} : vector<2x14x128xf32> to vector<2x8x128xf32>
    %292 = vector.shape_cast %291 : vector<2x8x128xf32> to vector<16x128xf32>
    %c2_155 = arith.constant 2 : index
    %c1_156 = arith.constant 1 : index
    %c0_157 = arith.constant 0 : index
    %c0_158 = arith.constant 0 : index
    %293 = vector.load %arg5[%c2_155, %c1_156, %c0_157, %c0_158] : memref<5x7x128x128xf32, #tpu.memory_space<vmem>>, vector<1x1x128x128xf32>
    %294 = vector.shape_cast %293 : vector<1x1x128x128xf32> to vector<128x128xf32>
    %cst_159 = arith.constant dense<0.000000e+00> : vector<16x128xf32>
    %295 = tpu.matmul %292, %294, %cst_159 {dimension_numbers = #tpu.dot_dimension_numbers<[1], [0], [0], [1], [0, 0, 1, 1], [], []>} : vector<16x128xf32>, vector<128x128xf32>, vector<16x128xf32> -> vector<16x128xf32>
    %296 = arith.addf %290, %295 : vector<16x128xf32>
    %297 = vector.extract_strided_slice %283 {offsets = [0, 2, 0], sizes = [2, 8, 128], strides = [1, 1, 1]} : vector<2x14x128xf32> to vector<2x8x128xf32>
    %298 = vector.shape_cast %297 : vector<2x8x128xf32> to vector<16x128xf32>
    %c2_160 = arith.constant 2 : index
    %c2_161 = arith.constant 2 : index
    %c0_162 = arith.constant 0 : index
    %c0_163 = arith.constant 0 : index
    %299 = vector.load %arg5[%c2_160, %c2_161, %c0_162, %c0_163] : memref<5x7x128x128xf32, #tpu.memory_space<vmem>>, vector<1x1x128x128xf32>
    %300 = vector.shape_cast %299 : vector<1x1x128x128xf32> to vector<128x128xf32>
    %cst_164 = arith.constant dense<0.000000e+00> : vector<16x128xf32>
    %301 = tpu.matmul %298, %300, %cst_164 {dimension_numbers = #tpu.dot_dimension_numbers<[1], [0], [0], [1], [0, 0, 1, 1], [], []>} : vector<16x128xf32>, vector<128x128xf32>, vector<16x128xf32> -> vector<16x128xf32>
    %302 = arith.addf %296, %301 : vector<16x128xf32>
    %303 = vector.extract_strided_slice %283 {offsets = [0, 3, 0], sizes = [2, 8, 128], strides = [1, 1, 1]} : vector<2x14x128xf32> to vector<2x8x128xf32>
    %304 = vector.shape_cast %303 : vector<2x8x128xf32> to vector<16x128xf32>
    %c2_165 = arith.constant 2 : index
    %c3_166 = arith.constant 3 : index
    %c0_167 = arith.constant 0 : index
    %c0_168 = arith.constant 0 : index
    %305 = vector.load %arg5[%c2_165, %c3_166, %c0_167, %c0_168] : memref<5x7x128x128xf32, #tpu.memory_space<vmem>>, vector<1x1x128x128xf32>
    %306 = vector.shape_cast %305 : vector<1x1x128x128xf32> to vector<128x128xf32>
    %cst_169 = arith.constant dense<0.000000e+00> : vector<16x128xf32>
    %307 = tpu.matmul %304, %306, %cst_169 {dimension_numbers = #tpu.dot_dimension_numbers<[1], [0], [0], [1], [0, 0, 1, 1], [], []>} : vector<16x128xf32>, vector<128x128xf32>, vector<16x128xf32> -> vector<16x128xf32>
    %308 = arith.addf %302, %307 : vector<16x128xf32>
    %309 = vector.extract_strided_slice %283 {offsets = [0, 4, 0], sizes = [2, 8, 128], strides = [1, 1, 1]} : vector<2x14x128xf32> to vector<2x8x128xf32>
    %310 = vector.shape_cast %309 : vector<2x8x128xf32> to vector<16x128xf32>
    %c2_170 = arith.constant 2 : index
    %c4_171 = arith.constant 4 : index
    %c0_172 = arith.constant 0 : index
    %c0_173 = arith.constant 0 : index
    %311 = vector.load %arg5[%c2_170, %c4_171, %c0_172, %c0_173] : memref<5x7x128x128xf32, #tpu.memory_space<vmem>>, vector<1x1x128x128xf32>
    %312 = vector.shape_cast %311 : vector<1x1x128x128xf32> to vector<128x128xf32>
    %cst_174 = arith.constant dense<0.000000e+00> : vector<16x128xf32>
    %313 = tpu.matmul %310, %312, %cst_174 {dimension_numbers = #tpu.dot_dimension_numbers<[1], [0], [0], [1], [0, 0, 1, 1], [], []>} : vector<16x128xf32>, vector<128x128xf32>, vector<16x128xf32> -> vector<16x128xf32>
    %314 = arith.addf %308, %313 : vector<16x128xf32>
    %315 = vector.extract_strided_slice %283 {offsets = [0, 5, 0], sizes = [2, 8, 128], strides = [1, 1, 1]} : vector<2x14x128xf32> to vector<2x8x128xf32>
    %316 = vector.shape_cast %315 : vector<2x8x128xf32> to vector<16x128xf32>
    %c2_175 = arith.constant 2 : index
    %c5_176 = arith.constant 5 : index
    %c0_177 = arith.constant 0 : index
    %c0_178 = arith.constant 0 : index
    %317 = vector.load %arg5[%c2_175, %c5_176, %c0_177, %c0_178] : memref<5x7x128x128xf32, #tpu.memory_space<vmem>>, vector<1x1x128x128xf32>
    %318 = vector.shape_cast %317 : vector<1x1x128x128xf32> to vector<128x128xf32>
    %cst_179 = arith.constant dense<0.000000e+00> : vector<16x128xf32>
    %319 = tpu.matmul %316, %318, %cst_179 {dimension_numbers = #tpu.dot_dimension_numbers<[1], [0], [0], [1], [0, 0, 1, 1], [], []>} : vector<16x128xf32>, vector<128x128xf32>, vector<16x128xf32> -> vector<16x128xf32>
    %320 = arith.addf %314, %319 : vector<16x128xf32>
    %321 = vector.extract_strided_slice %283 {offsets = [0, 6, 0], sizes = [2, 8, 128], strides = [1, 1, 1]} : vector<2x14x128xf32> to vector<2x8x128xf32>
    %322 = vector.shape_cast %321 : vector<2x8x128xf32> to vector<16x128xf32>
    %c2_180 = arith.constant 2 : index
    %c6_181 = arith.constant 6 : index
    %c0_182 = arith.constant 0 : index
    %c0_183 = arith.constant 0 : index
    %323 = vector.load %arg5[%c2_180, %c6_181, %c0_182, %c0_183] : memref<5x7x128x128xf32, #tpu.memory_space<vmem>>, vector<1x1x128x128xf32>
    %324 = vector.shape_cast %323 : vector<1x1x128x128xf32> to vector<128x128xf32>
    %cst_184 = arith.constant dense<0.000000e+00> : vector<16x128xf32>
    %325 = tpu.matmul %322, %324, %cst_184 {dimension_numbers = #tpu.dot_dimension_numbers<[1], [0], [0], [1], [0, 0, 1, 1], [], []>} : vector<16x128xf32>, vector<128x128xf32>, vector<16x128xf32> -> vector<16x128xf32>
    %326 = arith.addf %320, %325 : vector<16x128xf32>
    %327 = arith.addf %326, %164 : vector<16x128xf32>
    %c3_185 = arith.constant 3 : index
    %c0_186 = arith.constant 0 : index
    %c0_187 = arith.constant 0 : index
    %328 = vector.load %arg6[%c3_185, %c0_186, %c0_187] : memref<5x2x128xf32, #tpu.memory_space<vmem>>, vector<1x2x128xf32>
    %329 = vector.shape_cast %328 : vector<1x2x128xf32> to vector<2x128xf32>
    %330 = vector.extract_strided_slice %329 {offsets = [0, 0], sizes = [1, 128], strides = [1, 1]} : vector<2x128xf32> to vector<1x128xf32>
    %331 = vector.extract_strided_slice %329 {offsets = [1, 0], sizes = [1, 128], strides = [1, 1]} : vector<2x128xf32> to vector<1x128xf32>
    %c0_188 = arith.constant 0 : index
    %c0_189 = arith.constant 0 : index
    %332 = vector.load %arg8[%c0_188, %c0_189] : memref<128x128xf32, #tpu.memory_space<vmem>>, vector<128x128xf32>
    %cst_190 = arith.constant dense<0.000000e+00> : vector<128xf32>
    %333 = vector.multi_reduction <add>, %327, %cst_190 [0] : vector<16x128xf32> to vector<128xf32>
    %334 = vector.shape_cast %333 : vector<128xf32> to vector<1x128xf32>
    %cst_191 = arith.constant dense<0.000000e+00> : vector<1x128xf32>
    %335 = tpu.matmul %334, %332, %cst_191 {dimension_numbers = #tpu.dot_dimension_numbers<[1], [0], [0], [1], [0, 0, 1, 1], [], []>} : vector<1x128xf32>, vector<128x128xf32>, vector<1x128xf32> -> vector<1x128xf32>
    %cst_192 = arith.constant 1.280000e+02 : f32
    %336 = vector.broadcast %cst_192 : f32 to vector<1x128xf32>
    %337 = arith.divf %335, %336 : vector<1x128xf32>
    %338 = vector.broadcast %337 : vector<1x128xf32> to vector<16x128xf32>
    %339 = arith.subf %327, %338 : vector<16x128xf32>
    %340 = arith.mulf %339, %339 : vector<16x128xf32>
    %cst_193 = arith.constant dense<0.000000e+00> : vector<128xf32>
    %341 = vector.multi_reduction <add>, %340, %cst_193 [0] : vector<16x128xf32> to vector<128xf32>
    %342 = vector.shape_cast %341 : vector<128xf32> to vector<1x128xf32>
    %cst_194 = arith.constant dense<0.000000e+00> : vector<1x128xf32>
    %343 = tpu.matmul %342, %332, %cst_194 {dimension_numbers = #tpu.dot_dimension_numbers<[1], [0], [0], [1], [0, 0, 1, 1], [], []>} : vector<1x128xf32>, vector<128x128xf32>, vector<1x128xf32> -> vector<1x128xf32>
    %cst_195 = arith.constant 1.280000e+02 : f32
    %344 = vector.broadcast %cst_195 : f32 to vector<1x128xf32>
    %345 = arith.divf %343, %344 : vector<1x128xf32>
    %cst_196 = arith.constant 9.99999974E-6 : f32
    %346 = vector.broadcast %cst_196 : f32 to vector<1x128xf32>
    %347 = arith.addf %345, %346 : vector<1x128xf32>
    %348 = math.rsqrt %347 : vector<1x128xf32>
    %349 = arith.mulf %330, %348 : vector<1x128xf32>
    %350 = arith.mulf %337, %349 : vector<1x128xf32>
    %351 = arith.subf %331, %350 : vector<1x128xf32>
    %352 = vector.broadcast %349 : vector<1x128xf32> to vector<16x128xf32>
    %353 = arith.mulf %327, %352 : vector<16x128xf32>
    %354 = vector.broadcast %351 : vector<1x128xf32> to vector<16x128xf32>
    %355 = arith.addf %353, %354 : vector<16x128xf32>
    %cst_197 = arith.constant 0.000000e+00 : f32
    %356 = vector.broadcast %cst_197 : f32 to vector<16x128xf32>
    %357 = arith.maximumf %355, %356 : vector<16x128xf32>
    %358 = vector.shape_cast %357 : vector<16x128xf32> to vector<2x8x128xf32>
    %359 = vector.extract_strided_slice %358 {offsets = [0, 3, 0], sizes = [2, 1, 128], strides = [1, 1, 1]} : vector<2x8x128xf32> to vector<2x1x128xf32>
    %360 = vector.extract_strided_slice %358 {offsets = [0, 2, 0], sizes = [2, 1, 128], strides = [1, 1, 1]} : vector<2x8x128xf32> to vector<2x1x128xf32>
    %361 = vector.extract_strided_slice %358 {offsets = [0, 1, 0], sizes = [2, 1, 128], strides = [1, 1, 1]} : vector<2x8x128xf32> to vector<2x1x128xf32>
    %362 = vector.extract_strided_slice %358 {offsets = [0, 6, 0], sizes = [2, 1, 128], strides = [1, 1, 1]} : vector<2x8x128xf32> to vector<2x1x128xf32>
    %363 = vector.extract_strided_slice %358 {offsets = [0, 5, 0], sizes = [2, 1, 128], strides = [1, 1, 1]} : vector<2x8x128xf32> to vector<2x1x128xf32>
    %364 = vector.extract_strided_slice %358 {offsets = [0, 4, 0], sizes = [2, 1, 128], strides = [1, 1, 1]} : vector<2x8x128xf32> to vector<2x1x128xf32>
    %365 = tpu.concatenate %359, %360, %361, %358, %362, %363, %364 in 1 : vector<2x1x128xf32>, vector<2x1x128xf32>, vector<2x1x128xf32>, vector<2x8x128xf32>, vector<2x1x128xf32>, vector<2x1x128xf32>, vector<2x1x128xf32> -> vector<2x14x128xf32>
    %cst_198 = arith.constant 0.000000e+00 : f32
    %366 = vector.broadcast %cst_198 : f32 to vector<16x128xf32>
    %367 = vector.extract_strided_slice %365 {offsets = [0, 0, 0], sizes = [2, 8, 128], strides = [1, 1, 1]} : vector<2x14x128xf32> to vector<2x8x128xf32>
    %368 = vector.shape_cast %367 : vector<2x8x128xf32> to vector<16x128xf32>
    %c3_199 = arith.constant 3 : index
    %c0_200 = arith.constant 0 : index
    %c0_201 = arith.constant 0 : index
    %c0_202 = arith.constant 0 : index
    %369 = vector.load %arg5[%c3_199, %c0_200, %c0_201, %c0_202] : memref<5x7x128x128xf32, #tpu.memory_space<vmem>>, vector<1x1x128x128xf32>
    %370 = vector.shape_cast %369 : vector<1x1x128x128xf32> to vector<128x128xf32>
    %cst_203 = arith.constant dense<0.000000e+00> : vector<16x128xf32>
    %371 = tpu.matmul %368, %370, %cst_203 {dimension_numbers = #tpu.dot_dimension_numbers<[1], [0], [0], [1], [0, 0, 1, 1], [], []>} : vector<16x128xf32>, vector<128x128xf32>, vector<16x128xf32> -> vector<16x128xf32>
    %372 = arith.addf %366, %371 : vector<16x128xf32>
    %373 = vector.extract_strided_slice %365 {offsets = [0, 1, 0], sizes = [2, 8, 128], strides = [1, 1, 1]} : vector<2x14x128xf32> to vector<2x8x128xf32>
    %374 = vector.shape_cast %373 : vector<2x8x128xf32> to vector<16x128xf32>
    %c3_204 = arith.constant 3 : index
    %c1_205 = arith.constant 1 : index
    %c0_206 = arith.constant 0 : index
    %c0_207 = arith.constant 0 : index
    %375 = vector.load %arg5[%c3_204, %c1_205, %c0_206, %c0_207] : memref<5x7x128x128xf32, #tpu.memory_space<vmem>>, vector<1x1x128x128xf32>
    %376 = vector.shape_cast %375 : vector<1x1x128x128xf32> to vector<128x128xf32>
    %cst_208 = arith.constant dense<0.000000e+00> : vector<16x128xf32>
    %377 = tpu.matmul %374, %376, %cst_208 {dimension_numbers = #tpu.dot_dimension_numbers<[1], [0], [0], [1], [0, 0, 1, 1], [], []>} : vector<16x128xf32>, vector<128x128xf32>, vector<16x128xf32> -> vector<16x128xf32>
    %378 = arith.addf %372, %377 : vector<16x128xf32>
    %379 = vector.extract_strided_slice %365 {offsets = [0, 2, 0], sizes = [2, 8, 128], strides = [1, 1, 1]} : vector<2x14x128xf32> to vector<2x8x128xf32>
    %380 = vector.shape_cast %379 : vector<2x8x128xf32> to vector<16x128xf32>
    %c3_209 = arith.constant 3 : index
    %c2_210 = arith.constant 2 : index
    %c0_211 = arith.constant 0 : index
    %c0_212 = arith.constant 0 : index
    %381 = vector.load %arg5[%c3_209, %c2_210, %c0_211, %c0_212] : memref<5x7x128x128xf32, #tpu.memory_space<vmem>>, vector<1x1x128x128xf32>
    %382 = vector.shape_cast %381 : vector<1x1x128x128xf32> to vector<128x128xf32>
    %cst_213 = arith.constant dense<0.000000e+00> : vector<16x128xf32>
    %383 = tpu.matmul %380, %382, %cst_213 {dimension_numbers = #tpu.dot_dimension_numbers<[1], [0], [0], [1], [0, 0, 1, 1], [], []>} : vector<16x128xf32>, vector<128x128xf32>, vector<16x128xf32> -> vector<16x128xf32>
    %384 = arith.addf %378, %383 : vector<16x128xf32>
    %385 = vector.extract_strided_slice %365 {offsets = [0, 3, 0], sizes = [2, 8, 128], strides = [1, 1, 1]} : vector<2x14x128xf32> to vector<2x8x128xf32>
    %386 = vector.shape_cast %385 : vector<2x8x128xf32> to vector<16x128xf32>
    %c3_214 = arith.constant 3 : index
    %c3_215 = arith.constant 3 : index
    %c0_216 = arith.constant 0 : index
    %c0_217 = arith.constant 0 : index
    %387 = vector.load %arg5[%c3_214, %c3_215, %c0_216, %c0_217] : memref<5x7x128x128xf32, #tpu.memory_space<vmem>>, vector<1x1x128x128xf32>
    %388 = vector.shape_cast %387 : vector<1x1x128x128xf32> to vector<128x128xf32>
    %cst_218 = arith.constant dense<0.000000e+00> : vector<16x128xf32>
    %389 = tpu.matmul %386, %388, %cst_218 {dimension_numbers = #tpu.dot_dimension_numbers<[1], [0], [0], [1], [0, 0, 1, 1], [], []>} : vector<16x128xf32>, vector<128x128xf32>, vector<16x128xf32> -> vector<16x128xf32>
    %390 = arith.addf %384, %389 : vector<16x128xf32>
    %391 = vector.extract_strided_slice %365 {offsets = [0, 4, 0], sizes = [2, 8, 128], strides = [1, 1, 1]} : vector<2x14x128xf32> to vector<2x8x128xf32>
    %392 = vector.shape_cast %391 : vector<2x8x128xf32> to vector<16x128xf32>
    %c3_219 = arith.constant 3 : index
    %c4_220 = arith.constant 4 : index
    %c0_221 = arith.constant 0 : index
    %c0_222 = arith.constant 0 : index
    %393 = vector.load %arg5[%c3_219, %c4_220, %c0_221, %c0_222] : memref<5x7x128x128xf32, #tpu.memory_space<vmem>>, vector<1x1x128x128xf32>
    %394 = vector.shape_cast %393 : vector<1x1x128x128xf32> to vector<128x128xf32>
    %cst_223 = arith.constant dense<0.000000e+00> : vector<16x128xf32>
    %395 = tpu.matmul %392, %394, %cst_223 {dimension_numbers = #tpu.dot_dimension_numbers<[1], [0], [0], [1], [0, 0, 1, 1], [], []>} : vector<16x128xf32>, vector<128x128xf32>, vector<16x128xf32> -> vector<16x128xf32>
    %396 = arith.addf %390, %395 : vector<16x128xf32>
    %397 = vector.extract_strided_slice %365 {offsets = [0, 5, 0], sizes = [2, 8, 128], strides = [1, 1, 1]} : vector<2x14x128xf32> to vector<2x8x128xf32>
    %398 = vector.shape_cast %397 : vector<2x8x128xf32> to vector<16x128xf32>
    %c3_224 = arith.constant 3 : index
    %c5_225 = arith.constant 5 : index
    %c0_226 = arith.constant 0 : index
    %c0_227 = arith.constant 0 : index
    %399 = vector.load %arg5[%c3_224, %c5_225, %c0_226, %c0_227] : memref<5x7x128x128xf32, #tpu.memory_space<vmem>>, vector<1x1x128x128xf32>
    %400 = vector.shape_cast %399 : vector<1x1x128x128xf32> to vector<128x128xf32>
    %cst_228 = arith.constant dense<0.000000e+00> : vector<16x128xf32>
    %401 = tpu.matmul %398, %400, %cst_228 {dimension_numbers = #tpu.dot_dimension_numbers<[1], [0], [0], [1], [0, 0, 1, 1], [], []>} : vector<16x128xf32>, vector<128x128xf32>, vector<16x128xf32> -> vector<16x128xf32>
    %402 = arith.addf %396, %401 : vector<16x128xf32>
    %403 = vector.extract_strided_slice %365 {offsets = [0, 6, 0], sizes = [2, 8, 128], strides = [1, 1, 1]} : vector<2x14x128xf32> to vector<2x8x128xf32>
    %404 = vector.shape_cast %403 : vector<2x8x128xf32> to vector<16x128xf32>
    %c3_229 = arith.constant 3 : index
    %c6_230 = arith.constant 6 : index
    %c0_231 = arith.constant 0 : index
    %c0_232 = arith.constant 0 : index
    %405 = vector.load %arg5[%c3_229, %c6_230, %c0_231, %c0_232] : memref<5x7x128x128xf32, #tpu.memory_space<vmem>>, vector<1x1x128x128xf32>
    %406 = vector.shape_cast %405 : vector<1x1x128x128xf32> to vector<128x128xf32>
    %cst_233 = arith.constant dense<0.000000e+00> : vector<16x128xf32>
    %407 = tpu.matmul %404, %406, %cst_233 {dimension_numbers = #tpu.dot_dimension_numbers<[1], [0], [0], [1], [0, 0, 1, 1], [], []>} : vector<16x128xf32>, vector<128x128xf32>, vector<16x128xf32> -> vector<16x128xf32>
    %408 = arith.addf %402, %407 : vector<16x128xf32>
    %c4_234 = arith.constant 4 : index
    %c0_235 = arith.constant 0 : index
    %c0_236 = arith.constant 0 : index
    %409 = vector.load %arg6[%c4_234, %c0_235, %c0_236] : memref<5x2x128xf32, #tpu.memory_space<vmem>>, vector<1x2x128xf32>
    %410 = vector.shape_cast %409 : vector<1x2x128xf32> to vector<2x128xf32>
    %411 = vector.extract_strided_slice %410 {offsets = [0, 0], sizes = [1, 128], strides = [1, 1]} : vector<2x128xf32> to vector<1x128xf32>
    %412 = vector.extract_strided_slice %410 {offsets = [1, 0], sizes = [1, 128], strides = [1, 1]} : vector<2x128xf32> to vector<1x128xf32>
    %c0_237 = arith.constant 0 : index
    %c0_238 = arith.constant 0 : index
    %413 = vector.load %arg8[%c0_237, %c0_238] : memref<128x128xf32, #tpu.memory_space<vmem>>, vector<128x128xf32>
    %cst_239 = arith.constant dense<0.000000e+00> : vector<128xf32>
    %414 = vector.multi_reduction <add>, %408, %cst_239 [0] : vector<16x128xf32> to vector<128xf32>
    %415 = vector.shape_cast %414 : vector<128xf32> to vector<1x128xf32>
    %cst_240 = arith.constant dense<0.000000e+00> : vector<1x128xf32>
    %416 = tpu.matmul %415, %413, %cst_240 {dimension_numbers = #tpu.dot_dimension_numbers<[1], [0], [0], [1], [0, 0, 1, 1], [], []>} : vector<1x128xf32>, vector<128x128xf32>, vector<1x128xf32> -> vector<1x128xf32>
    %cst_241 = arith.constant 1.280000e+02 : f32
    %417 = vector.broadcast %cst_241 : f32 to vector<1x128xf32>
    %418 = arith.divf %416, %417 : vector<1x128xf32>
    %419 = vector.broadcast %418 : vector<1x128xf32> to vector<16x128xf32>
    %420 = arith.subf %408, %419 : vector<16x128xf32>
    %421 = arith.mulf %420, %420 : vector<16x128xf32>
    %cst_242 = arith.constant dense<0.000000e+00> : vector<128xf32>
    %422 = vector.multi_reduction <add>, %421, %cst_242 [0] : vector<16x128xf32> to vector<128xf32>
    %423 = vector.shape_cast %422 : vector<128xf32> to vector<1x128xf32>
    %cst_243 = arith.constant dense<0.000000e+00> : vector<1x128xf32>
    %424 = tpu.matmul %423, %413, %cst_243 {dimension_numbers = #tpu.dot_dimension_numbers<[1], [0], [0], [1], [0, 0, 1, 1], [], []>} : vector<1x128xf32>, vector<128x128xf32>, vector<1x128xf32> -> vector<1x128xf32>
    %cst_244 = arith.constant 1.280000e+02 : f32
    %425 = vector.broadcast %cst_244 : f32 to vector<1x128xf32>
    %426 = arith.divf %424, %425 : vector<1x128xf32>
    %cst_245 = arith.constant 9.99999974E-6 : f32
    %427 = vector.broadcast %cst_245 : f32 to vector<1x128xf32>
    %428 = arith.addf %426, %427 : vector<1x128xf32>
    %429 = math.rsqrt %428 : vector<1x128xf32>
    %430 = arith.mulf %411, %429 : vector<1x128xf32>
    %431 = arith.mulf %418, %430 : vector<1x128xf32>
    %432 = arith.subf %412, %431 : vector<1x128xf32>
    %433 = vector.broadcast %430 : vector<1x128xf32> to vector<16x128xf32>
    %434 = arith.mulf %408, %433 : vector<16x128xf32>
    %435 = vector.broadcast %432 : vector<1x128xf32> to vector<16x128xf32>
    %436 = arith.addf %434, %435 : vector<16x128xf32>
    %cst_246 = arith.constant 0.000000e+00 : f32
    %437 = vector.broadcast %cst_246 : f32 to vector<16x128xf32>
    %438 = arith.maximumf %436, %437 : vector<16x128xf32>
    %439 = vector.shape_cast %438 : vector<16x128xf32> to vector<2x8x128xf32>
    %440 = vector.extract_strided_slice %439 {offsets = [0, 3, 0], sizes = [2, 1, 128], strides = [1, 1, 1]} : vector<2x8x128xf32> to vector<2x1x128xf32>
    %441 = vector.extract_strided_slice %439 {offsets = [0, 2, 0], sizes = [2, 1, 128], strides = [1, 1, 1]} : vector<2x8x128xf32> to vector<2x1x128xf32>
    %442 = vector.extract_strided_slice %439 {offsets = [0, 1, 0], sizes = [2, 1, 128], strides = [1, 1, 1]} : vector<2x8x128xf32> to vector<2x1x128xf32>
    %443 = vector.extract_strided_slice %439 {offsets = [0, 6, 0], sizes = [2, 1, 128], strides = [1, 1, 1]} : vector<2x8x128xf32> to vector<2x1x128xf32>
    %444 = vector.extract_strided_slice %439 {offsets = [0, 5, 0], sizes = [2, 1, 128], strides = [1, 1, 1]} : vector<2x8x128xf32> to vector<2x1x128xf32>
    %445 = vector.extract_strided_slice %439 {offsets = [0, 4, 0], sizes = [2, 1, 128], strides = [1, 1, 1]} : vector<2x8x128xf32> to vector<2x1x128xf32>
    %446 = tpu.concatenate %440, %441, %442, %439, %443, %444, %445 in 1 : vector<2x1x128xf32>, vector<2x1x128xf32>, vector<2x1x128xf32>, vector<2x8x128xf32>, vector<2x1x128xf32>, vector<2x1x128xf32>, vector<2x1x128xf32> -> vector<2x14x128xf32>
    %cst_247 = arith.constant 0.000000e+00 : f32
    %447 = vector.broadcast %cst_247 : f32 to vector<16x128xf32>
    %448 = vector.extract_strided_slice %446 {offsets = [0, 0, 0], sizes = [2, 8, 128], strides = [1, 1, 1]} : vector<2x14x128xf32> to vector<2x8x128xf32>
    %449 = vector.shape_cast %448 : vector<2x8x128xf32> to vector<16x128xf32>
    %c4_248 = arith.constant 4 : index
    %c0_249 = arith.constant 0 : index
    %c0_250 = arith.constant 0 : index
    %c0_251 = arith.constant 0 : index
    %450 = vector.load %arg5[%c4_248, %c0_249, %c0_250, %c0_251] : memref<5x7x128x128xf32, #tpu.memory_space<vmem>>, vector<1x1x128x128xf32>
    %451 = vector.shape_cast %450 : vector<1x1x128x128xf32> to vector<128x128xf32>
    %cst_252 = arith.constant dense<0.000000e+00> : vector<16x128xf32>
    %452 = tpu.matmul %449, %451, %cst_252 {dimension_numbers = #tpu.dot_dimension_numbers<[1], [0], [0], [1], [0, 0, 1, 1], [], []>} : vector<16x128xf32>, vector<128x128xf32>, vector<16x128xf32> -> vector<16x128xf32>
    %453 = arith.addf %447, %452 : vector<16x128xf32>
    %454 = vector.extract_strided_slice %446 {offsets = [0, 1, 0], sizes = [2, 8, 128], strides = [1, 1, 1]} : vector<2x14x128xf32> to vector<2x8x128xf32>
    %455 = vector.shape_cast %454 : vector<2x8x128xf32> to vector<16x128xf32>
    %c4_253 = arith.constant 4 : index
    %c1_254 = arith.constant 1 : index
    %c0_255 = arith.constant 0 : index
    %c0_256 = arith.constant 0 : index
    %456 = vector.load %arg5[%c4_253, %c1_254, %c0_255, %c0_256] : memref<5x7x128x128xf32, #tpu.memory_space<vmem>>, vector<1x1x128x128xf32>
    %457 = vector.shape_cast %456 : vector<1x1x128x128xf32> to vector<128x128xf32>
    %cst_257 = arith.constant dense<0.000000e+00> : vector<16x128xf32>
    %458 = tpu.matmul %455, %457, %cst_257 {dimension_numbers = #tpu.dot_dimension_numbers<[1], [0], [0], [1], [0, 0, 1, 1], [], []>} : vector<16x128xf32>, vector<128x128xf32>, vector<16x128xf32> -> vector<16x128xf32>
    %459 = arith.addf %453, %458 : vector<16x128xf32>
    %460 = vector.extract_strided_slice %446 {offsets = [0, 2, 0], sizes = [2, 8, 128], strides = [1, 1, 1]} : vector<2x14x128xf32> to vector<2x8x128xf32>
    %461 = vector.shape_cast %460 : vector<2x8x128xf32> to vector<16x128xf32>
    %c4_258 = arith.constant 4 : index
    %c2_259 = arith.constant 2 : index
    %c0_260 = arith.constant 0 : index
    %c0_261 = arith.constant 0 : index
    %462 = vector.load %arg5[%c4_258, %c2_259, %c0_260, %c0_261] : memref<5x7x128x128xf32, #tpu.memory_space<vmem>>, vector<1x1x128x128xf32>
    %463 = vector.shape_cast %462 : vector<1x1x128x128xf32> to vector<128x128xf32>
    %cst_262 = arith.constant dense<0.000000e+00> : vector<16x128xf32>
    %464 = tpu.matmul %461, %463, %cst_262 {dimension_numbers = #tpu.dot_dimension_numbers<[1], [0], [0], [1], [0, 0, 1, 1], [], []>} : vector<16x128xf32>, vector<128x128xf32>, vector<16x128xf32> -> vector<16x128xf32>
    %465 = arith.addf %459, %464 : vector<16x128xf32>
    %466 = vector.extract_strided_slice %446 {offsets = [0, 3, 0], sizes = [2, 8, 128], strides = [1, 1, 1]} : vector<2x14x128xf32> to vector<2x8x128xf32>
    %467 = vector.shape_cast %466 : vector<2x8x128xf32> to vector<16x128xf32>
    %c4_263 = arith.constant 4 : index
    %c3_264 = arith.constant 3 : index
    %c0_265 = arith.constant 0 : index
    %c0_266 = arith.constant 0 : index
    %468 = vector.load %arg5[%c4_263, %c3_264, %c0_265, %c0_266] : memref<5x7x128x128xf32, #tpu.memory_space<vmem>>, vector<1x1x128x128xf32>
    %469 = vector.shape_cast %468 : vector<1x1x128x128xf32> to vector<128x128xf32>
    %cst_267 = arith.constant dense<0.000000e+00> : vector<16x128xf32>
    %470 = tpu.matmul %467, %469, %cst_267 {dimension_numbers = #tpu.dot_dimension_numbers<[1], [0], [0], [1], [0, 0, 1, 1], [], []>} : vector<16x128xf32>, vector<128x128xf32>, vector<16x128xf32> -> vector<16x128xf32>
    %471 = arith.addf %465, %470 : vector<16x128xf32>
    %472 = vector.extract_strided_slice %446 {offsets = [0, 4, 0], sizes = [2, 8, 128], strides = [1, 1, 1]} : vector<2x14x128xf32> to vector<2x8x128xf32>
    %473 = vector.shape_cast %472 : vector<2x8x128xf32> to vector<16x128xf32>
    %c4_268 = arith.constant 4 : index
    %c4_269 = arith.constant 4 : index
    %c0_270 = arith.constant 0 : index
    %c0_271 = arith.constant 0 : index
    %474 = vector.load %arg5[%c4_268, %c4_269, %c0_270, %c0_271] : memref<5x7x128x128xf32, #tpu.memory_space<vmem>>, vector<1x1x128x128xf32>
    %475 = vector.shape_cast %474 : vector<1x1x128x128xf32> to vector<128x128xf32>
    %cst_272 = arith.constant dense<0.000000e+00> : vector<16x128xf32>
    %476 = tpu.matmul %473, %475, %cst_272 {dimension_numbers = #tpu.dot_dimension_numbers<[1], [0], [0], [1], [0, 0, 1, 1], [], []>} : vector<16x128xf32>, vector<128x128xf32>, vector<16x128xf32> -> vector<16x128xf32>
    %477 = arith.addf %471, %476 : vector<16x128xf32>
    %478 = vector.extract_strided_slice %446 {offsets = [0, 5, 0], sizes = [2, 8, 128], strides = [1, 1, 1]} : vector<2x14x128xf32> to vector<2x8x128xf32>
    %479 = vector.shape_cast %478 : vector<2x8x128xf32> to vector<16x128xf32>
    %c4_273 = arith.constant 4 : index
    %c5_274 = arith.constant 5 : index
    %c0_275 = arith.constant 0 : index
    %c0_276 = arith.constant 0 : index
    %480 = vector.load %arg5[%c4_273, %c5_274, %c0_275, %c0_276] : memref<5x7x128x128xf32, #tpu.memory_space<vmem>>, vector<1x1x128x128xf32>
    %481 = vector.shape_cast %480 : vector<1x1x128x128xf32> to vector<128x128xf32>
    %cst_277 = arith.constant dense<0.000000e+00> : vector<16x128xf32>
    %482 = tpu.matmul %479, %481, %cst_277 {dimension_numbers = #tpu.dot_dimension_numbers<[1], [0], [0], [1], [0, 0, 1, 1], [], []>} : vector<16x128xf32>, vector<128x128xf32>, vector<16x128xf32> -> vector<16x128xf32>
    %483 = arith.addf %477, %482 : vector<16x128xf32>
    %484 = vector.extract_strided_slice %446 {offsets = [0, 6, 0], sizes = [2, 8, 128], strides = [1, 1, 1]} : vector<2x14x128xf32> to vector<2x8x128xf32>
    %485 = vector.shape_cast %484 : vector<2x8x128xf32> to vector<16x128xf32>
    %c4_278 = arith.constant 4 : index
    %c6_279 = arith.constant 6 : index
    %c0_280 = arith.constant 0 : index
    %c0_281 = arith.constant 0 : index
    %486 = vector.load %arg5[%c4_278, %c6_279, %c0_280, %c0_281] : memref<5x7x128x128xf32, #tpu.memory_space<vmem>>, vector<1x1x128x128xf32>
    %487 = vector.shape_cast %486 : vector<1x1x128x128xf32> to vector<128x128xf32>
    %cst_282 = arith.constant dense<0.000000e+00> : vector<16x128xf32>
    %488 = tpu.matmul %485, %487, %cst_282 {dimension_numbers = #tpu.dot_dimension_numbers<[1], [0], [0], [1], [0, 0, 1, 1], [], []>} : vector<16x128xf32>, vector<128x128xf32>, vector<16x128xf32> -> vector<16x128xf32>
    %489 = arith.addf %483, %488 : vector<16x128xf32>
    %490 = arith.addf %489, %327 : vector<16x128xf32>
    %c0_283 = arith.constant 0 : index
    %c0_284 = arith.constant 0 : index
    %491 = vector.load %arg9[%c0_283, %c0_284] : memref<16x128xf32, #tpu.memory_space<vmem>>, vector<16x128xf32>
    tpu.vector_store %arg9[%c0_283, %c0_284], %490 {strides = array<i32>} : memref<16x128xf32, #tpu.memory_space<vmem>>, vector<16x128xf32>,
    return
  }
  func.func @transform_0(%arg0: i32) -> (i32, i32) {
    %c0_i32 = arith.constant 0 : i32
    %c0_i32_0 = arith.constant 0 : i32
    %c0_i32_1 = arith.constant 0 : i32
    return %c0_i32, %c0_i32_0 : i32, i32
  }
  func.func @transform_1(%arg0: i32) -> (i32, i32) {
    %c0_i32 = arith.constant 0 : i32
    %c0_i32_0 = arith.constant 0 : i32
    %c0_i32_1 = arith.constant 0 : i32
    return %c0_i32, %c0_i32_0 : i32, i32
  }
  func.func @transform_2(%arg0: i32) -> (i32, i32, i32) {
    %c0_i32 = arith.constant 0 : i32
    %c0_i32_0 = arith.constant 0 : i32
    %c0_i32_1 = arith.constant 0 : i32
    %c0_i32_2 = arith.constant 0 : i32
    return %c0_i32, %c0_i32_0, %c0_i32_1 : i32, i32, i32
  }
  func.func @transform_3(%arg0: i32) -> (i32, i32) {
    %c0_i32 = arith.constant 0 : i32
    %c0_i32_0 = arith.constant 0 : i32
    %c0_i32_1 = arith.constant 0 : i32
    return %c0_i32, %c0_i32_0 : i32, i32
  }
  func.func @transform_4(%arg0: i32) -> (i32, i32, i32, i32) {
    %c0_i32 = arith.constant 0 : i32
    %c0_i32_0 = arith.constant 0 : i32
    %c0_i32_1 = arith.constant 0 : i32
    %c0_i32_2 = arith.constant 0 : i32
    %c0_i32_3 = arith.constant 0 : i32
    return %c0_i32, %c0_i32_0, %c0_i32_1, %c0_i32_2 : i32, i32, i32, i32
  }
  func.func @transform_5(%arg0: i32) -> (i32, i32, i32) {
    %c0_i32 = arith.constant 0 : i32
    %c0_i32_0 = arith.constant 0 : i32
    %c0_i32_1 = arith.constant 0 : i32
    %c0_i32_2 = arith.constant 0 : i32
    return %c0_i32, %c0_i32_0, %c0_i32_1 : i32, i32, i32
  }
  func.func @transform_6(%arg0: i32) -> (i32, i32) {
    %c0_i32 = arith.constant 0 : i32
    %c0_i32_0 = arith.constant 0 : i32
    %c0_i32_1 = arith.constant 0 : i32
    return %c0_i32, %c0_i32_0 : i32, i32
  }
  func.func @transform_7(%arg0: i32) -> (i32, i32) {
    %c0_i32 = arith.constant 0 : i32
    %c0_i32_0 = arith.constant 0 : i32
    %c0_i32_1 = arith.constant 0 : i32
    return %c0_i32, %c0_i32_0 : i32, i32
  }
  func.func @transform_8(%arg0: i32) -> (i32, i32) {
    %c0_i32 = arith.constant 0 : i32
    %c0_i32_0 = arith.constant 0 : i32
    %c0_i32_1 = arith.constant 0 : i32
    return %c0_i32, %c0_i32_0 : i32, i32
  }
}

</mosaic_0001>

<bundles_post_ra>
// kernel: tile.58
= control target key start
LH: loop header
LB: loop body
LE: loop exit
PB: predicated region body
PF: predicated region fallthrough
CT: control target
= control target key end

     0   :  { %2 = vsyncpa [#allocation1], 0  ;;  %s44_s6 = smov [#allocation0]   ;;  %s70_s0 = inlined_call_operand.hbm [shape: f32[16], index: 0, kind: input, shape index: {}]   ;;  %s71_s1 = inlined_call_operand.vmem [shape: f32[8,16], index: 1, kind: output, shape index: {}]  }
   0x1   :  { %s9_s7 = sshll.u32 %s44_s6, 4  ;;  %s20_s10 = scalar_lea.hbm %s70_s0, 16  ;;  %s10_s7 = int_to_ptr.vmem [resolvable:$true] %s9_s7 }
   0x2   :  { %p21_p0 = scmp.ne.s32.totalorder %s70_s0, %s20_s10  ;;  %p24_p1 = scmp.lt.u32.totalorder %s20_s10, %s70_s0 }
   0x4   :  { %p26_p2 = pnand %p24_p1, %p21_p0 }
   0x6   :  { %29 = shalt.err (!%p26_p2)
}
   0x7   :  { %s30_s15 = scalar_lea.vmem %s10_s7, 16  ;;  %s34_s16 = scalar_lea.vmem %s10_s7, 32 }
   0x8   :  { %p31_p3 = scmp.ne.s32.totalorder %s10_s7, %s30_s15  ;;  %p35_p4 = scmp.lt.s32.totalorder %s10_s7, %s10_s7 }
   0x9   :  { %p36_p5 = scmp.lt.s32.totalorder %s34_s16, %s30_s15 }
   0xb   :  { %p37_p6 = por %p36_p5, %p35_p4 }
   0xd   :  { %p38_p7 = pnand %p37_p6, %p31_p3 }
   0xf   :  { %41 = shalt.err (!%p38_p7)
}
  0x10   :  { %12 = dma.hbm_to_vmem [thread:$0]  %s70_s0, 16, %s10_s7, [#allocation1]  }
  0x11   :  { %42 = dma.done.wait [#allocation1], 16  }
  0x12   :  { %43 = vsyncadd [#allocation1], 4294967280  ;;  %v16_v0 = vld [vmem:[#allocation0] ss:$0 sm:$0xff] }
  0x13   :  { %17 = vst [vmem:[%s71_s1] sm:$0xff] %v16_v0 }
  0x14   :  { %18 = vsyncpa [#allocation1], 1 }

// kernel: tile.62
= control target key start
LH: loop header
LB: loop body
LE: loop exit
PB: predicated region body
PF: predicated region fallthrough
CT: control target
= control target key end

     0   :  { %s67_s10 = smov 112   ;;  %s68_s11 = smov 80   ;;  %vm3_vm0 = vcmask 130048   ;;  %vm9_vm1 = vcmask 1048448   ;;  %vm15_vm2 = vcmask 917248   ;;  %vm21_vm3 = vcmask 786048   ;;  %s111_s0 = inlined_call_operand.vmem [shape: f32[8,16], index: 0, kind: input, shape index: {}]   ;;  %s112_s1 = inlined_call_operand.vmem [shape: f32[1,128], index: 1, kind: output, shape index: {}]  }
   0x1   :  { %v53_v0 = vld [vmem:[%s111_s0 + $0x7] sm:$0x1]   ;;  %v55_v1 = vld [vmem:[%s111_s0 + $0x5] sm:$0x1]   ;;  %v54_v2 = vld [vmem:[%s111_s0 + $0x6] sm:$0x1]  }
   0x2   :  { %7 = vrot.lane.b32.xlu0 %v53_v0, %s67_s10  ;;  %19 = vrot.lane.b32.xlu1 %v55_v1, %s68_s11  ;;  %v56_v3 = vld [vmem:[%s111_s0 + $0x4] sm:$0x1]   ;;  %v2_v4 = vld [vmem:[%s111_s0] sm:$0x1]   ;;  %s69_s18 = smov 96   ;;  %s70_s19 = smov 64  }
   0x3   :  { %4 = vst.msk [vmem:[#allocation0] sm:$0x1] %vm3_vm0, %v2_v4   ;;  %v57_v5 = vld [vmem:[%s111_s0 + $0x3] sm:$0x1]   ;;  %v58_v6 = vld [vmem:[%s111_s0 + $0x2] sm:$0x1]  }
   0x4   :  { %s71_s24 = smov 48   ;;  %s72_s25 = smov 32   ;;  %v59_v7 = vld [vmem:[%s111_s0 + $0x1] sm:$0x1]   ;;  %vm27_vm4 = vcmask 654848   ;;  %vm33_vm5 = vcmask 523648  }
   0x5   :  { %s73_s0 = smov 16   ;;  %vm39_vm6 = vcmask 392448   ;;  %vm45_vm7 = vcmask 261248  }
   0x6   :  { %13 = vrot.lane.b32.xlu0 %v54_v2, %s69_s18  ;;  %25 = vrot.lane.b32.xlu1 %v56_v3, %s70_s19 }
   0xa   :  { %31 = vrot.lane.b32.xlu0 %v57_v5, %s71_s24  ;;  %37 = vrot.lane.b32.xlu1 %v58_v6, %s72_s25 }
   0xe   :  { %43 = vrot.lane.b32.xlu0 %v59_v7, %s73_s0 }
  0x74   :  { %v8_v8 = vpop.permute.xlu0 %7   ;;  %v20_v9 = vpop.permute.xlu1 %19  }
  0x75   :  { %10 = vst.msk [vmem:[#allocation0] sm:$0x1] %vm9_vm1, %v8_v8  }
  0x78   :  { %v14_v10 = vpop.permute.xlu0 %13   ;;  %v26_v11 = vpop.permute.xlu1 %25  }
  0x79   :  { %16 = vst.msk [vmem:[#allocation0] sm:$0x1] %vm15_vm2, %v14_v10  }
  0x7a   :  { %22 = vst.msk [vmem:[#allocation0] sm:$0x1] %vm21_vm3, %v20_v9  }
  0x7b   :  { %28 = vst.msk [vmem:[#allocation0] sm:$0x1] %vm27_vm4, %v26_v11  }
  0x7c   :  { %v32_v12 = vpop.permute.xlu0 %31   ;;  %v38_v13 = vpop.permute.xlu1 %37  }
  0x7d   :  { %34 = vst.msk [vmem:[#allocation0] sm:$0x1] %vm33_vm5, %v32_v12  }
  0x7e   :  { %40 = vst.msk [vmem:[#allocation0] sm:$0x1] %vm39_vm6, %v38_v13  }
  0x80   :  { %v44_v14 = vpop.permute.xlu0 %43  }
  0x81   :  { %46 = vst.msk [vmem:[#allocation0] sm:$0x1] %vm45_vm7, %v44_v14  }
  0x88   :  { %v50_v15 = vld [vmem:[#allocation0] sm:$0x1] }
  0x89   :  { %52 = vst [vmem:[%s112_s1] sm:$0x1] %v50_v15 }

// kernel: tile.50
= control target key start
LH: loop header
LB: loop body
LE: loop exit
PB: predicated region body
PF: predicated region fallthrough
CT: control target
= control target key end

     0   :  { %2 = vsyncpa [#allocation1], 0  ;;  %s44_s6 = smov [#allocation0]   ;;  %s70_s0 = inlined_call_operand.hbm [shape: f32[2], index: 0, kind: input, shape index: {}]   ;;  %s71_s1 = inlined_call_operand.vmem [shape: f32[8,2], index: 1, kind: output, shape index: {}]  }
   0x1   :  { %s9_s7 = sshll.u32 %s44_s6, 4  ;;  %s20_s10 = scalar_lea.hbm %s70_s0, 16  ;;  %s10_s7 = int_to_ptr.vmem [resolvable:$true] %s9_s7 }
   0x2   :  { %p21_p0 = scmp.ne.s32.totalorder %s70_s0, %s20_s10  ;;  %p24_p1 = scmp.lt.u32.totalorder %s20_s10, %s70_s0 }
   0x4   :  { %p26_p2 = pnand %p24_p1, %p21_p0 }
   0x6   :  { %29 = shalt.err (!%p26_p2)
}
   0x7   :  { %s30_s15 = scalar_lea.vmem %s10_s7, 16  ;;  %s34_s16 = scalar_lea.vmem %s10_s7, 32 }
   0x8   :  { %p31_p3 = scmp.ne.s32.totalorder %s10_s7, %s30_s15  ;;  %p35_p4 = scmp.lt.s32.totalorder %s10_s7, %s10_s7 }
   0x9   :  { %p36_p5 = scmp.lt.s32.totalorder %s34_s16, %s30_s15 }
   0xb   :  { %p37_p6 = por %p36_p5, %p35_p4 }
   0xd   :  { %p38_p7 = pnand %p37_p6, %p31_p3 }
   0xf   :  { %41 = shalt.err (!%p38_p7)
}
  0x10   :  { %12 = dma.hbm_to_vmem [thread:$0]  %s70_s0, 16, %s10_s7, [#allocation1]  }
  0x11   :  { %42 = dma.done.wait [#allocation1], 16  }
  0x12   :  { %43 = vsyncadd [#allocation1], 4294967280  ;;  %v16_v0 = vld [vmem:[#allocation0] ss:$0 sm:$0xff] }
  0x13   :  { %17 = vst [vmem:[%s71_s1] sm:$0xff] %v16_v0 }
  0x14   :  { %18 = vsyncpa [#allocation1], 1 }

// kernel: tile.54
= control target key start
LH: loop header
LB: loop body
LE: loop exit
PB: predicated region body
PF: predicated region fallthrough
CT: control target
= control target key end

     0   :  { %s67_s10 = smov 14   ;;  %s68_s11 = smov 10   ;;  %vm3_vm0 = vcmask 15360   ;;  %vm9_vm1 = vcmask 130160   ;;  %vm15_vm2 = vcmask 113760   ;;  %vm21_vm3 = vcmask 97360   ;;  %s111_s0 = inlined_call_operand.vmem [shape: f32[8,2], index: 0, kind: input, shape index: {}]   ;;  %s112_s1 = inlined_call_operand.vmem [shape: f32[1,16], index: 1, kind: output, shape index: {}]  }
   0x1   :  { %v53_v0 = vld [vmem:[%s111_s0 + $0x7] sm:$0x1]   ;;  %v55_v1 = vld [vmem:[%s111_s0 + $0x5] sm:$0x1]   ;;  %v54_v2 = vld [vmem:[%s111_s0 + $0x6] sm:$0x1]  }
   0x2   :  { %7 = vrot.lane.b32.xlu0 %v53_v0, %s67_s10  ;;  %19 = vrot.lane.b32.xlu1 %v55_v1, %s68_s11  ;;  %v56_v3 = vld [vmem:[%s111_s0 + $0x4] sm:$0x1]   ;;  %v2_v4 = vld [vmem:[%s111_s0] sm:$0x1]   ;;  %s69_s18 = smov 12   ;;  %s70_s19 = smov 8  }
   0x3   :  { %4 = vst.msk [vmem:[#allocation0] sm:$0x1] %vm3_vm0, %v2_v4   ;;  %v57_v5 = vld [vmem:[%s111_s0 + $0x3] sm:$0x1]   ;;  %v58_v6 = vld [vmem:[%s111_s0 + $0x2] sm:$0x1]  }
   0x4   :  { %s71_s24 = smov 6   ;;  %s72_s25 = smov 4   ;;  %v59_v7 = vld [vmem:[%s111_s0 + $0x1] sm:$0x1]   ;;  %vm27_vm4 = vcmask 80960   ;;  %vm33_vm5 = vcmask 64560  }
   0x5   :  { %s73_s0 = smov 2   ;;  %vm39_vm6 = vcmask 48160   ;;  %vm45_vm7 = vcmask 31760  }
   0x6   :  { %13 = vrot.lane.b32.xlu0 %v54_v2, %s69_s18  ;;  %25 = vrot.lane.b32.xlu1 %v56_v3, %s70_s19 }
   0xa   :  { %31 = vrot.lane.b32.xlu0 %v57_v5, %s71_s24  ;;  %37 = vrot.lane.b32.xlu1 %v58_v6, %s72_s25 }
   0xe   :  { %43 = vrot.lane.b32.xlu0 %v59_v7, %s73_s0 }
  0x74   :  { %v8_v8 = vpop.permute.xlu0 %7   ;;  %v20_v9 = vpop.permute.xlu1 %19  }
  0x75   :  { %10 = vst.msk [vmem:[#allocation0] sm:$0x1] %vm9_vm1, %v8_v8  }
  0x78   :  { %v14_v10 = vpop.permute.xlu0 %13   ;;  %v26_v11 = vpop.permute.xlu1 %25  }
  0x79   :  { %16 = vst.msk [vmem:[#allocation0] sm:$0x1] %vm15_vm2, %v14_v10  }
  0x7a   :  { %22 = vst.msk [vmem:[#allocation0] sm:$0x1] %vm21_vm3, %v20_v9  }
  0x7b   :  { %28 = vst.msk [vmem:[#allocation0] sm:$0x1] %vm27_vm4, %v26_v11  }
  0x7c   :  { %v32_v12 = vpop.permute.xlu0 %31   ;;  %v38_v13 = vpop.permute.xlu1 %37  }
  0x7d   :  { %34 = vst.msk [vmem:[#allocation0] sm:$0x1] %vm33_vm5, %v32_v12  }
  0x7e   :  { %40 = vst.msk [vmem:[#allocation0] sm:$0x1] %vm39_vm6, %v38_v13  }
  0x80   :  { %v44_v14 = vpop.permute.xlu0 %43  }
  0x81   :  { %46 = vst.msk [vmem:[#allocation0] sm:$0x1] %vm45_vm7, %v44_v14  }
  0x88   :  { %v50_v15 = vld [vmem:[#allocation0] sm:$0x1] }
  0x89   :  { %52 = vst [vmem:[%s112_s1] sm:$0x1] %v50_v15 }

// kernel: run.1
= control target key start
LH: loop header
LB: loop body
LE: loop exit
PB: predicated region body
PF: predicated region fallthrough
CT: control target
= control target key end

     0   :  { %13 = vsyncpa [#allocation3], 0  ;;  %s10730_s0 = inlined_call_operand.vmem [shape: f32[16,16], index: 0, kind: input, shape index: {}]   ;;  %s10731_s1 = inlined_call_operand.vmem [shape: f32[16,128], index: 1, kind: input, shape index: {}]   ;;  %s10732_s2 = inlined_call_operand.hbm [shape: f32[7,16,128], index: 2, kind: input, shape index: {}]   ;;  %s10733_s3 = inlined_call_operand.vmem [shape: f32[2,16], index: 3, kind: input, shape index: {}]   ;;  %s10734_s4 = inlined_call_operand.hbm [shape: f32[5,7,128,128], index: 4, kind: input, shape index: {}]   ;;  %s10735_s5 = inlined_call_operand.vmem [shape: f32[5,2,128], index: 5, kind: input, shape index: {}]   ;;  %s10736_s6 = inlined_call_operand.hbm [shape: f32[16,16], index: 6, kind: input, shape index: {}]   ;;  %s10737_s7 = inlined_call_operand.hbm [shape: f32[128,128], index: 7, kind: input, shape index: {}]   ;;  %s10738_s8 = inlined_call_operand.vmem [shape: f32[16,128], index: 8, kind: output, shape index: {}]  }
   0x1   :  { %14 = vsyncpa [#allocation5], 0 }
   0x2   :  { %15 = vsyncpa [#allocation8], 0  ;;  %s9771_s27 = smov [#allocation4]   ;;  %s9772_s29 = smov [#allocation2]  }
   0x3   :  { %s39_s28 = sshll.u32 %s9771_s27, 4  ;;  %s25_s30 = sshll.u32 %s9772_s29, 4  ;;  %s40_s28 = int_to_ptr.vmem [resolvable:$true] %s39_s28  ;;  %s9825_s30 = int_to_ptr.vmem [resolvable:$true] %s25_s30 }
   0x4   :  { %s9677_s11 = scalar_lea.hbm %s10734_s4, 71680 }
   0x5   :  { %p9678_p0 = scmp.ne.s32.totalorder %s10734_s4, %s9677_s11  ;;  %p9681_p1 = scmp.lt.u32.totalorder %s9677_s11, %s10734_s4 }
   0x7   :  { %p9683_p2 = pnand %p9681_p1, %p9678_p0 }
   0x9   :  { %9686 = shalt.err (!%p9683_p2)
}
   0xa   :  { %s9687_s16 = scalar_lea.vmem %s40_s28, 71680  ;;  %p9692_p4 = scmp.lt.s32.totalorder %s40_s28, %s40_s28 }
   0xb   :  { %p9688_p3 = scmp.ne.s32.totalorder %s40_s28, %s9687_s16  ;;  %p9693_p5 = scmp.lt.s32.totalorder %s9687_s16, %s9687_s16 }
   0xd   :  { %p9694_p6 = por %p9693_p5, %p9692_p4 }
   0xf   :  { %p9695_p7 = pnand %p9694_p6, %p9688_p3 }
  0x11   :  { %9698 = shalt.err (!%p9695_p7)
}
  0x12   :  { %s9773_s17 = smov 128   ;;  %s9774_s18 = smov 8  }
  0x13   :  { %45 = dma.hbm_to_vmem [thread:$0]  %s10734_s4, 71680, %s40_s28, [#allocation5], %s9773_s17, %s9773_s17, %s9774_s18  }
  0x14   :  { %s9699_s23 = scalar_lea.hbm %s10732_s2, 1792 }
  0x15   :  { %p9700_p8 = scmp.ne.s32.totalorder %s10732_s2, %s9699_s23  ;;  %p9703_p9 = scmp.lt.u32.totalorder %s9699_s23, %s10732_s2 }
  0x17   :  { %p9705_p10 = pnand %p9703_p9, %p9700_p8 }
  0x19   :  { %9708 = shalt.err (!%p9705_p10)
}
  0x1a   :  { %s9709_s29 = scalar_lea.vmem %s9825_s30, 1792  ;;  %p9714_p12 = scmp.lt.s32.totalorder %s9825_s30, %s9825_s30 }
  0x1b   :  { %p9710_p11 = scmp.ne.s32.totalorder %s9825_s30, %s9709_s29  ;;  %p9715_p13 = scmp.lt.s32.totalorder %s9709_s29, %s9709_s29 }
  0x1d   :  { %p9716_p0 = por %p9715_p13, %p9714_p12 }
  0x1f   :  { %p9717_p1 = pnand %p9716_p0, %p9710_p11 }
  0x21   :  { %9720 = shalt.err (!%p9717_p1)
}
  0x22   :  { %31 = dma.hbm_to_vmem [thread:$0]  %s10732_s2, 1792, %s9825_s30, [#allocation3], %s9773_s17, %s9773_s17, %s9774_s18  }
  0x23   :  { %s9775_s9 = smov [#allocation6]   ;;  %s9776_s11 = smov [#allocation7]  }
  0x24   :  { %s53_s10 = sshll.u32 %s9775_s9, 4  ;;  %s65_s12 = sshll.u32 %s9776_s11, 4  ;;  %s54_s10 = int_to_ptr.vmem [resolvable:$true] %s53_s10  ;;  %s9862_s12 = int_to_ptr.vmem [resolvable:$true] %s65_s12 }
  0x25   :  { %s9721_s15 = scalar_lea.hbm %s10736_s6, 256 }
  0x26   :  { %p9722_p2 = scmp.ne.s32.totalorder %s10736_s6, %s9721_s15  ;;  %p9725_p3 = scmp.lt.u32.totalorder %s9721_s15, %s10736_s6 }
  0x28   :  { %p9727_p4 = pnand %p9725_p3, %p9722_p2 }
  0x2a   :  { %9730 = shalt.err (!%p9727_p4)
}
  0x2b   :  { %s9731_s2 = scalar_lea.vmem %s54_s10, 256  ;;  %p9736_p6 = scmp.lt.s32.totalorder %s54_s10, %s54_s10 }
  0x2c   :  { %p9732_p5 = scmp.ne.s32.totalorder %s54_s10, %s9731_s2  ;;  %p9737_p7 = scmp.lt.s32.totalorder %s9731_s2, %s9731_s2 }
  0x2e   :  { %p9738_p8 = por %p9737_p7, %p9736_p6 }
  0x30   :  { %p9739_p9 = pnand %p9738_p8, %p9732_p5 }
  0x32   :  { %9742 = shalt.err (!%p9739_p9)
}
  0x33   :  { %59 = dma.hbm_to_vmem [thread:$0]  %s10736_s6, 256, %s54_s10, [#allocation5], %s9773_s17, %s9773_s17, %s9774_s18  }
  0x34   :  { %s9743_s25 = scalar_lea.hbm %s10737_s7, 2048 }
  0x35   :  { %p9744_p10 = scmp.ne.s32.totalorder %s10737_s7, %s9743_s25  ;;  %p9747_p11 = scmp.lt.u32.totalorder %s9743_s25, %s10737_s7 }
  0x37   :  { %p9749_p12 = pnand %p9747_p11, %p9744_p10 }
  0x39   :  { %9752 = shalt.err (!%p9749_p12)
}
  0x3a   :  { %s9753_s28 = scalar_lea.vmem %s9862_s12, 2048  ;;  %p9758_p0 = scmp.lt.s32.totalorder %s9862_s12, %s9862_s12 }
  0x3b   :  { %p9754_p13 = scmp.ne.s32.totalorder %s9862_s12, %s9753_s28  ;;  %p9759_p1 = scmp.lt.s32.totalorder %s9753_s28, %s9753_s28 }
  0x3d   :  { %p9760_p2 = por %p9759_p1, %p9758_p0 }
  0x3f   :  { %p9761_p3 = pnand %p9760_p2, %p9754_p13 }
  0x41   :  { %9764 = shalt.err (!%p9761_p3)
}
  0x42   :  { %71 = dma.hbm_to_vmem [thread:$0]  %s10737_s7, 2048, %s9862_s12, [#allocation8], %s9773_s17, %s9773_s17, %s9774_s18  }
  0x43   :  { %9765 = dma.done.wait [#allocation3], 1792  }
  0x44   :  { %9766 = vsyncadd [#allocation3], 4294965504 }
  0x45   :  { %9767 = dma.done.wait [#allocation5], 71936  }
  0x46   :  { %9768 = vsyncadd [#allocation5], 4294895360 }
  0x47   :  { %9769 = dma.done.wait [#allocation8], 2048  }
  0x48   :  { %9770 = vsyncadd [#allocation8], 4294965248  ;;  %v9777_v0 = vmov 0.0|0.0   ;;  %vm9778_vm0 = vmmov 0   ;;  %v9779_v1 = vmov 0.0   ;;  %vm88_vm1 = vcmask 130048  }
  0x49   :  { %8191 = vmatprep.subr.bf16.mxu0 %v9777_v0  ;;  %6557 = vmatprep.mubr.msk.f32.mxu0 %vm9778_vm0, %v9779_v1  ;;  %v86_v2 = vld [vmem:[%s10731_s1] sm:$0xff]  ;;  %v87_v3 = vld [vmem:[%s10731_s1 + $0x8] sm:$0xff]  ;;  %v171_v8 = vld [vmem:[#allocation6] sm:$0xff]  ;;  %v257_v19 = vlaneseq  ;;  %vm388_vm2 = vcmask 1040384   ;;  %vm391_vm3 = vcmask 1041408   ;;  %vm394_vm4 = vcmask 1042432  }
  0x4a   :  { %v9911_v4 = vld [vmem:[%s10730_s0] sm:$0xff]  ;;  %v8184_v5 = vpack.c.bf16 %v87_v3, %v86_v2  ;;  %v9920_v7 = vld [vmem:[%s10730_s0 + $0x8] sm:$0xff]  ;;  %v172_v9 = vld [vmem:[#allocation6 + $0x8] sm:$0xff]  ;;  %vm399_vm5 = vcmask 1043456   ;;  %vm402_vm6 = vcmask 1044480   ;;  %vm411_vm7 = vcmask 1046528  }
  0x4b   :  { %6543 = vmatprep.mubr.msk.f32.mxu1 %vm88_vm1, %v9911_v4  ;;  %v173_v6 = vsel %vm88_vm1, %v9911_v4, 0.0  ;;  %v174_v10 = vsel %vm88_vm1, %v9920_v7, 0.0  ;;  %v8189_v11 = vpack.c.bf16 %v172_v9, %v171_v8  ;;  %v258_v20 = vshrl.u32 %v257_v19, 7  ;;  %v419_v39 = vld [vmem:[#allocation2 + $0x10] sm:$0xff]  ;;  %v420_v40 = vld [vmem:[#allocation2 + $0x18] sm:$0xff]  ;;  %v405_v42 = vld [vmem:[#allocation2] sm:$0xff] }
  0x4c   :  { %8185 = vmatprep.subr.bf16.mxu1 %v8184_v5  ;;  %v175_v12 = vadd.f32 %v174_v10, %v173_v6  ;;  %v8194_v41 = vpack.c.bf16 %v420_v40, %v419_v39  ;;  %v406_v43 = vld [vmem:[#allocation2 + $0x8] sm:$0xff]  ;;  %v170_v49 = vld [vmem:[%s10733_s3] sm:$0x3]  ;;  %vm579_vm8 = vcmask 1045504  }
  0x4d   :  { %8187 = vmatpush3.bf16.msra.mxu1 %v8184_v5  ;;  %8193 = vmatpush3.bf16.msra.mxu0 %v8189_v11  ;;  %v9930_v21 = vsub.s32 0, %v258_v20  ;;  %v8198_v44 = vpack.c.bf16 %v406_v43, %v405_v42  ;;  %v9942_v55 = vsub.s32 1, %v258_v20  ;;  %v767_v40 = vld [vmem:[#allocation2 + $0x40] sm:$0xff] }
  0x4e   :  { %8188 = vmatprep.subr.bf16.mxu1 %v9777_v0  ;;  %v176_v13 = vrot.slane %v175_v12, 4 }
  0x50   :  { %6544 = vmatmul.mubr.msk.f32.vlgmr.msra.gmra.mrb[0].mxu1 %vm88_vm1, %v9920_v7  ;;  %v177_v14 = vadd.f32 %v176_v13, %v175_v12 }
  0x51   :  { %8190 = vmatpush3.bf16.msra.mxu1 %v8189_v11  ;;  %6550 = vmatprep.mubr.msk.f32.mxu1 %vm9778_vm0, %v9779_v1 }
  0x52   :  { %v178_v15 = vrot.slane %v177_v14, 2  ;;  %8195 = vmatprep.subr.bf16.mxu1 %v8194_v41 }
  0x54   :  { %v179_v16 = vadd.f32 %v178_v15, %v177_v14 }
  0x56   :  { %v180_v17 = vrot.slane %v179_v16, 1 }
  0x58   :  { %v181_v18 = vadd.f32 %v180_v17, %v179_v16 }
  0x5a   :  { %6551 = vmatmul.mubr.msk.f32.vlgmr.msra.gmra.mrb[2].mxu1 %vm88_vm1, %v181_v18 }
  0x5b   :  { %8197 = vmatpush3.bf16.msra.mxu1 %v8194_v41  ;;  %v768_v41 = vld [vmem:[#allocation2 + $0x48] sm:$0xff] }
  0x5c   :  { %8199 = vmatprep.subr.bf16.mxu1 %v8198_v44 }
 0x12d   :  { %v251_v22 = vpop.f32.mrb[2].mxu1 }
 0x12e   :  { %v256_v23 = vmul.f32 0.0078125, %v251_v22  ;;  %v6552_v24 = vpop.f32.mrb[3].mxu1 }
 0x12f   :  { %v587_v24 = vld [vmem:[#allocation2 + $0x20] sm:$0xff] }
 0x130   :  { %v260_v25 = vrot.slane %v256_v23, %v9930_v21 }
 0x132   :  { %v261_v26 = vsub.f32 %v9911_v4, %v260_v25  ;;  %v262_v27 = vsub.f32 %v9920_v7, %v260_v25  ;;  %v588_v25 = vld [vmem:[#allocation2 + $0x28] sm:$0xff] }
 0x134   :  { %v263_v28 = vmul.f32 %v261_v26, %v261_v26  ;;  %v264_v29 = vmul.f32 %v262_v27, %v262_v27 }
 0x136   :  { %v265_v30 = vsel %vm88_vm1, %v263_v28, 0.0  ;;  %v266_v31 = vsel %vm88_vm1, %v264_v29, 0.0 }
 0x137   :  { %v267_v32 = vadd.f32 %v266_v31, %v265_v30  ;;  %v8202_v31 = vpack.c.bf16 %v588_v25, %v587_v24  ;;  %v1038_v24 = vld [vmem:[#allocation7 + $0x38] sm:$0xff] }
 0x139   :  { %v268_v33 = vrot.slane %v267_v32, 4 }
 0x13b   :  { %v269_v34 = vadd.f32 %v268_v33, %v267_v32  ;;  %v677_v32 = vld [vmem:[#allocation2 + $0x30] sm:$0xff]  ;;  %v678_v33 = vld [vmem:[#allocation2 + $0x38] sm:$0xff] }
 0x13d   :  { %v270_v35 = vrot.slane %v269_v34, 2 }
 0x13f   :  { %v271_v36 = vadd.f32 %v270_v35, %v269_v34 }
 0x141   :  { %v272_v37 = vrot.slane %v271_v36, 1 }
 0x143   :  { %v273_v38 = vadd.f32 %v272_v37, %v271_v36  ;;  %v8206_v36 = vpack.c.bf16 %v678_v33, %v677_v32  ;;  %v1043_v32 = vld [vmem:[#allocation7 + $0x60] sm:$0xff]  ;;  %v1044_v33 = vld [vmem:[#allocation7 + $0x68] sm:$0xff] }
 0x145   :  { %6558 = vmatmul.mubr.msk.f32.vlgmr.msra.gmra.mrb[0].mxu0 %vm88_vm1, %v273_v38 }
 0x218   :  { %v343_v45 = vpop.f32.mrb[0].mxu0 }
 0x219   :  { %v347_v46 = vmul.f32 0.0078125, %v343_v45  ;;  %v6559_v47 = vpop.f32.mrb[1].mxu0 }
 0x21b   :  { %v348_v48 = vadd.f32 1e-05, %v347_v46 }
 0x21d   :  { %9665 = vrsqrt.f32 %v348_v48 }
 0x227   :  { %v9666_v50 = vpop.eup %9665 }
 0x228   :  { %v350_v51 = vmul.f32 %v9666_v50, %v170_v49  ;;  %v858_v50 = vld [vmem:[#allocation2 + $0x58] sm:$0xff] }
 0x22a   :  { %v351_v52 = vmul.f32 %v350_v51, %v256_v23  ;;  %v359_v54 = vrot.slane %v350_v51, %v9930_v21 }
 0x22c   :  { %v353_v53 = vrot.slane %v351_v52, 7  ;;  %v360_v57 = vmul.f32 %v359_v54, %v9911_v4  ;;  %v361_v58 = vmul.f32 %v359_v54, %v9920_v7 }
 0x22e   :  { %v355_v56 = vsub.f32 %v170_v49, %v353_v53  ;;  %v857_v49 = vld [vmem:[#allocation2 + $0x50] sm:$0xff] }
 0x22f   :  { %v8214_v53 = vpack.c.bf16 %v858_v50, %v857_v49 }
 0x230   :  { %v365_v59 = vrot.slane %v355_v56, %v9942_v55 }
 0x232   :  { %v366_v60 = vadd.f32 %v365_v59, %v360_v57  ;;  %v367_v61 = vadd.f32 %v365_v59, %v361_v58  ;;  %v947_v59 = vld [vmem:[#allocation2 + $0x60] sm:$0xff] }
 0x234   :  { %v368_v62 = vmax.f32 %v366_v60, 0.0  ;;  %v369_v63 = vmax.f32 %v367_v61, 0.0  ;;  %v948_v60 = vld [vmem:[#allocation2 + $0x68] sm:$0xff] }
 0x236   :  { %v373_v2 = vrot.slane %v369_v63, 3  ;;  %v372_v3 = vrot.slane %v368_v62, 3  ;;  %v376_v5 = vrot.slane %v368_v62, 1  ;;  %v380_v6 = vrot.slane %v368_v62, 7 }
 0x237   :  { %v384_v8 = vrot.slane %v368_v62, 5  ;;  %v377_v9 = vrot.slane %v369_v63, 1  ;;  %v381_v10 = vrot.slane %v369_v63, 7  ;;  %v385_v4 = vrot.slane %v369_v63, 5 }
 0x238   :  { %v389_v7 = vsel %vm388_vm2, %v372_v3, %v376_v5  ;;  %v8218_v63 = vpack.c.bf16 %v948_v60, %v947_v59 }
 0x239   :  { %v392_v11 = vsel %vm391_vm3, %v389_v7, %v380_v6  ;;  %v397_v12 = vsel %vm394_vm4, %v384_v8, %v372_v3  ;;  %v390_v13 = vsel %vm388_vm2, %v373_v2, %v377_v9  ;;  %v398_v14 = vsel %vm394_vm4, %v385_v4, %v373_v2  ;;  %v1031_v7 = vld [vmem:[#allocation7] sm:$0xff] }
 0x23a   :  { %v9953_v15 = vsel %vm394_vm4, %v392_v11, %v384_v8  ;;  %v400_v16 = vsel %vm399_vm5, %v397_v12, %v376_v5  ;;  %v393_v17 = vsel %vm391_vm3, %v390_v13, %v381_v10  ;;  %v401_v18 = vsel %vm399_vm5, %v398_v14, %v377_v9  ;;  %v1032_v11 = vld [vmem:[#allocation7 + $0x8] sm:$0xff] }
 0x23b   :  { %v9959_v19 = vsel %vm402_vm6, %v400_v16, %v380_v6  ;;  %v412_v20 = vrot.slane %v9953_v15, 1  ;;  %v9963_v22 = vsel %vm394_vm4, %v393_v17, %v385_v4  ;;  %v9966_v23 = vsel %vm402_vm6, %v401_v18, %v381_v10  ;;  %v1034_v16 = vld [vmem:[#allocation7 + $0x18] sm:$0xff] }
 0x23c   :  { %v413_v26 = vrot.slane %v9959_v19, 1  ;;  %v415_v27 = vrot.slane %v9963_v22, 1  ;;  %v416_v28 = vrot.slane %v9966_v23, 1  ;;  %v580_v34 = vrot.slane %v9953_v15, 2 }
 0x23d   :  { %v581_v35 = vrot.slane %v9959_v19, 2  ;;  %v583_v38 = vrot.slane %v9963_v22, 2  ;;  %v584_v39 = vrot.slane %v9966_v23, 2  ;;  %v670_v42 = vrot.slane %v9953_v15, 3 }
 0x23e   :  { %v414_v29 = vsel %vm411_vm7, %v412_v20, %v413_v26  ;;  %v417_v30 = vsel %vm411_vm7, %v415_v27, %v416_v28  ;;  %v671_v43 = vrot.slane %v9959_v19, 3  ;;  %v673_v47 = vrot.slane %v9963_v22, 3  ;;  %v1036_v20 = vld [vmem:[#allocation7 + $0x28] sm:$0xff]  ;;  %v1039_v26 = vld [vmem:[#allocation7 + $0x40] sm:$0xff] }
 0x23f   :  { %6564 = vmatprep.mubr.msk.f32.mxu1 %vm88_vm1, %v414_v29  ;;  %v582_v37 = vsel %vm579_vm8, %v580_v34, %v581_v35  ;;  %v585_v45 = vsel %vm579_vm8, %v583_v38, %v584_v39  ;;  %v674_v48 = vrot.slane %v9966_v23, 3  ;;  %v760_v51 = vrot.slane %v9953_v15, 4  ;;  %v1040_v27 = vld [vmem:[#allocation7 + $0x48] sm:$0xff]  ;;  %v1041_v29 = vld [vmem:[#allocation7 + $0x50] sm:$0xff] }
 0x240   :  { %6565 = vmatmul.mubr.msk.f32.vlgmr.msra.gmra.mrb[4].mxu1 %vm88_vm1, %v417_v30  ;;  %v672_v46 = vsel %vm402_vm6, %v670_v42, %v671_v43  ;;  %v761_v52 = vrot.slane %v9959_v19, 4  ;;  %v763_v57 = vrot.slane %v9963_v22, 4  ;;  %v764_v58 = vrot.slane %v9966_v23, 4  ;;  %v1042_v30 = vld [vmem:[#allocation7 + $0x58] sm:$0xff]  ;;  %v1045_v35 = vld [vmem:[#allocation7 + $0x70] sm:$0xff] }
 0x241   :  { %8201 = vmatpush3.bf16.msra.mxu1 %v8198_v44  ;;  %6571 = vmatprep.mubr.msk.f32.mxu1 %vm88_vm1, %v9953_v15  ;;  %v8210_v44 = vpack.c.bf16 %v768_v41, %v767_v40  ;;  %v675_v54 = vsel %vm402_vm6, %v673_v47, %v674_v48  ;;  %v850_v61 = vrot.slane %v9953_v15, 5  ;;  %v851_v62 = vrot.slane %v9959_v19, 5 }
 0x242   :  { %8203 = vmatprep.subr.bf16.mxu1 %v8202_v31  ;;  %v762_v56 = vsel %vm399_vm5, %v760_v51, %v761_v52  ;;  %v765_v2 = vsel %vm399_vm5, %v763_v57, %v764_v58  ;;  %v853_v5 = vrot.slane %v9963_v22, 5  ;;  %v854_v6 = vrot.slane %v9966_v23, 5 }
 0x243   :  { %v852_v3 = vsel %vm394_vm4, %v850_v61, %v851_v62  ;;  %v940_v8 = vrot.slane %v9953_v15, 6  ;;  %v941_v9 = vrot.slane %v9959_v19, 6  ;;  %v943_v12 = vrot.slane %v9963_v22, 6  ;;  %v1033_v15 = vld [vmem:[#allocation7 + $0x10] sm:$0xff]  ;;  %v1035_v19 = vld [vmem:[#allocation7 + $0x20] sm:$0xff] }
 0x244   :  { %v855_v10 = vsel %vm394_vm4, %v853_v5, %v854_v6  ;;  %v944_v13 = vrot.slane %v9966_v23, 6  ;;  %v10018_v14 = vpack.c.bf16 %v1032_v11, %v1031_v7  ;;  %v10023_v18 = vpack.c.bf16 %v1034_v16, %v1033_v15  ;;  %v1037_v23 = vld [vmem:[#allocation7 + $0x30] sm:$0xff]  ;;  %v1468_v6 = vld [vmem:[#allocation4 + $0x108] sm:$0xff]  ;;  %v1470_v11 = vld [vmem:[#allocation4 + $0x118] sm:$0xff] }
 0x245   :  { %v942_v4 = vsel %vm391_vm3, %v940_v8, %v941_v9  ;;  %v10033_v25 = vpack.c.bf16 %v1038_v24, %v1037_v23  ;;  %v10038_v28 = vpack.c.bf16 %v1040_v27, %v1039_v26  ;;  %v10045_v34 = vpack.c.bf16 %v1044_v33, %v1043_v32  ;;  %v1294_v9 = vld [vmem:[#allocation4 + $0x90] sm:$0xff]  ;;  %v1297_v15 = vld [vmem:[#allocation4 + $0xa8] sm:$0xff]  ;;  %v1471_v16 = vld [vmem:[#allocation4 + $0x120] sm:$0xff] }
 0x246   :  { %v945_v17 = vsel %vm391_vm3, %v943_v12, %v944_v13  ;;  %v1296_v13 = vld [vmem:[#allocation4 + $0xa0] sm:$0xff]  ;;  %v1298_v23 = vld [vmem:[#allocation4 + $0xb0] sm:$0xff]  ;;  %v1299_v24 = vld [vmem:[#allocation4 + $0xb8] sm:$0xff] }
 0x247   :  { %v1473_v26 = vld [vmem:[#allocation4 + $0x130] sm:$0xff]  ;;  %v8282_v27 = vpack.c.bf16 %v1299_v24, %v1298_v23  ;;  %v1300_v32 = vld [vmem:[#allocation4 + $0xc0] sm:$0xff]  ;;  %v1301_v33 = vld [vmem:[#allocation4 + $0xc8] sm:$0xff] }
 0x248   :  { %6572 = vmatmul.mubr.msk.f32.vlgmr.msra.gmra.mrb[4].mxu1 %vm88_vm1, %v9963_v22  ;;  %v10029_v22 = vpack.c.bf16 %v1036_v20, %v1035_v19  ;;  %v1472_v19 = vld [vmem:[#allocation4 + $0x128] sm:$0xff] }
 0x249   :  { %8205 = vmatpush3.bf16.msra.mxu1 %v8202_v31  ;;  %6578 = vmatprep.mubr.msk.f32.mxu1 %vm88_vm1, %v582_v37  ;;  %v10042_v31 = vpack.c.bf16 %v1042_v30, %v1041_v29  ;;  %v8342_v20 = vpack.c.bf16 %v1472_v19, %v1471_v16  ;;  %v1474_v29 = vld [vmem:[#allocation4 + $0x138] sm:$0xff] }
 0x24a   :  { %8207 = vmatprep.subr.bf16.mxu1 %v8206_v36  ;;  %v8346_v30 = vpack.c.bf16 %v1474_v29, %v1473_v26 }
 0x250   :  { %6579 = vmatmul.mubr.msk.f32.vlgmr.msra.gmra.mrb[4].mxu1 %vm88_vm1, %v585_v45 }
 0x251   :  { %8209 = vmatpush3.bf16.msra.mxu1 %v8206_v36  ;;  %6585 = vmatprep.mubr.msk.f32.mxu1 %vm88_vm1, %v672_v46  ;;  %v1046_v36 = vld [vmem:[#allocation7 + $0x78] sm:$0xff] }
 0x252   :  { %8211 = vmatprep.subr.bf16.mxu1 %v8210_v44  ;;  %v10049_v37 = vpack.c.bf16 %v1046_v36, %v1045_v35  ;;  %v1475_v35 = vld [vmem:[#allocation4 + $0x140] sm:$0xff]  ;;  %v8286_v36 = vpack.c.bf16 %v1301_v33, %v1300_v32 }
 0x258   :  { %6586 = vmatmul.mubr.msk.f32.vlgmr.msra.gmra.mrb[4].mxu1 %vm88_vm1, %v675_v54 }
 0x259   :  { %8213 = vmatpush3.bf16.msra.mxu1 %v8210_v44  ;;  %6592 = vmatprep.mubr.msk.f32.mxu1 %vm88_vm1, %v762_v56 }
 0x25a   :  { %8215 = vmatprep.subr.bf16.mxu1 %v8214_v53 }
 0x260   :  { %6593 = vmatmul.mubr.msk.f32.vlgmr.msra.gmra.mrb[4].mxu1 %vm88_vm1, %v765_v2  ;;  %v1293_v2 = vld [vmem:[#allocation4 + $0x88] sm:$0xff] }
 0x261   :  { %8217 = vmatpush3.bf16.msra.mxu1 %v8214_v53  ;;  %6599 = vmatprep.mubr.msk.f32.mxu1 %vm88_vm1, %v852_v3  ;;  %v1467_v3 = vld [vmem:[#allocation4 + $0x100] sm:$0xff] }
 0x262   :  { %8219 = vmatprep.subr.bf16.mxu1 %v8218_v63  ;;  %v8334_v8 = vpack.c.bf16 %v1468_v6, %v1467_v3 }
 0x264   :  { %8335 = vmatprep.subr.bf16.mxu0 %v8334_v8 }
 0x265   :  { %8337 = vmatpush3.bf16.msra.mxu0 %v8334_v8 }
 0x268   :  { %6600 = vmatmul.mubr.msk.f32.vlgmr.msra.gmra.mrb[4].mxu1 %vm88_vm1, %v855_v10  ;;  %v1295_v10 = vld [vmem:[#allocation4 + $0x98] sm:$0xff] }
 0x269   :  { %8221 = vmatpush3.bf16.msra.mxu1 %v8218_v63  ;;  %6606 = vmatprep.mubr.msk.f32.mxu1 %vm88_vm1, %v942_v4  ;;  %v1292_v63 = vld [vmem:[#allocation4 + $0x80] sm:$0xff]  ;;  %v1469_v4 = vld [vmem:[#allocation4 + $0x110] sm:$0xff]  ;;  %v8274_v7 = vpack.c.bf16 %v1295_v10, %v1294_v9 }
 0x26a   :  { %8222 = vmatprep.subr.bf16.mxu1 %v9777_v0  ;;  %v8270_v5 = vpack.c.bf16 %v1293_v2, %v1292_v63  ;;  %v8338_v12 = vpack.c.bf16 %v1470_v11, %v1469_v4  ;;  %v1264_v63 = vld [vmem:[#allocation4 + $0x8] sm:$0xff]  ;;  %v1569_v2 = vld [vmem:[#allocation4 + $0x180] sm:$0xff] }
 0x26c   :  { %8339 = vmatprep.subr.bf16.mxu0 %v8338_v12 }
 0x26d   :  { %8341 = vmatpush3.bf16.msra.mxu0 %v8338_v12 }
 0x26e   :  { %8343 = vmatprep.subr.bf16.mxu0 %v8342_v20 }
 0x270   :  { %6607 = vmatmul.mubr.msk.f32.vlgmr.msra.gmra.mrb[4].mxu1 %vm88_vm1, %v945_v17  ;;  %v8278_v17 = vpack.c.bf16 %v1297_v15, %v1296_v13 }
 0x271   :  { %8224 = vmatpush3.bf16.msra.mxu1 %v10018_v14  ;;  %6641 = vmatprep.mubr.msk.f32.mxu1 %vm9778_vm0, %v9779_v1 }
 0x272   :  { %8225 = vmatprep.subr.bf16.mxu1 %v9777_v0  ;;  %8345 = vmatpush3.bf16.msra.mxu0 %v8342_v20 }
 0x273   :  { %8347 = vmatprep.subr.bf16.mxu0 %v8346_v30 }
 0x275   :  { %8227 = vmatpush3.bf16.msra.mxu1 %v10023_v18 }
 0x276   :  { %8228 = vmatprep.subr.bf16.mxu1 %v9777_v0  ;;  %8349 = vmatpush3.bf16.msra.mxu0 %v8346_v30 }
 0x279   :  { %8230 = vmatpush3.bf16.msra.mxu1 %v10029_v22 }
 0x27a   :  { %8231 = vmatprep.subr.bf16.mxu1 %v9777_v0 }
 0x27d   :  { %8233 = vmatpush3.bf16.msra.mxu1 %v10033_v25 }
 0x27e   :  { %8234 = vmatprep.subr.bf16.mxu1 %v9777_v0 }
 0x281   :  { %8236 = vmatpush3.bf16.msra.mxu1 %v10038_v28 }
 0x282   :  { %8237 = vmatprep.subr.bf16.mxu1 %v9777_v0 }
 0x285   :  { %8239 = vmatpush3.bf16.msra.mxu1 %v10042_v31 }
 0x286   :  { %8240 = vmatprep.subr.bf16.mxu1 %v9777_v0 }
 0x289   :  { %8242 = vmatpush3.bf16.msra.mxu1 %v10045_v34 }
 0x28a   :  { %8243 = vmatprep.subr.bf16.mxu1 %v9777_v0 }
 0x28d   :  { %8245 = vmatpush3.bf16.msra.mxu1 %v10049_v37 }
 0x28e   :  { %8246 = vmatprep.subr.bf16.mxu1 %v9777_v0 }
 0x343   :  { %v10054_v38 = vpop.f32.mrb[4].mxu1 }
 0x344   :  { %v10056_v39 = vpop.f32.mrb[5].mxu1 }
 0x345   :  { %v1047_v40 = vadd.f32 %v10054_v38, %v10056_v39 }
 0x347   :  { %v1048_v41 = vrot.slane %v1047_v40, 4 }
 0x349   :  { %v1049_v42 = vadd.f32 %v1048_v41, %v1047_v40  ;;  %v1476_v40 = vld [vmem:[#allocation4 + $0x148] sm:$0xff] }
 0x34a   :  { %v8350_v41 = vpack.c.bf16 %v1476_v40, %v1475_v35 }
 0x34b   :  { %v1050_v43 = vrot.slane %v1049_v42, 2 }
 0x34c   :  { %8351 = vmatprep.subr.bf16.mxu0 %v8350_v41 }
 0x34d   :  { %v1051_v44 = vadd.f32 %v1050_v43, %v1049_v42  ;;  %v1302_v42 = vld [vmem:[#allocation4 + $0xd0] sm:$0xff]  ;;  %v1303_v43 = vld [vmem:[#allocation4 + $0xd8] sm:$0xff]  ;;  %8353 = vmatpush3.bf16.msra.mxu0 %v8350_v41 }
 0x34f   :  { %v1052_v45 = vrot.slane %v1051_v44, 1 }
 0x351   :  { %v1053_v46 = vadd.f32 %v1052_v45, %v1051_v44  ;;  %v1477_v44 = vld [vmem:[#allocation4 + $0x150] sm:$0xff]  ;;  %v8290_v45 = vpack.c.bf16 %v1303_v43, %v1302_v42 }
 0x353   :  { %6642 = vmatmul.mubr.f32.vlgmr.msra.gmra.mrb[6].mxu1 %v1053_v46  ;;  %v1478_v46 = vld [vmem:[#allocation4 + $0x158] sm:$0xff] }
 0x354   :  { %8248 = vmatpush3.bf16.msra.mxu1 %v10018_v14  ;;  %6676 = vmatprep.mubr.msk.f32.mxu1 %vm9778_vm0, %v9779_v1 }
 0x355   :  { %8249 = vmatprep.subr.bf16.mxu1 %v9777_v0 }
 0x358   :  { %8251 = vmatpush3.bf16.msra.mxu1 %v10023_v18 }
 0x359   :  { %8252 = vmatprep.subr.bf16.mxu1 %v9777_v0 }
 0x35c   :  { %8254 = vmatpush3.bf16.msra.mxu1 %v10029_v22 }
 0x35d   :  { %8255 = vmatprep.subr.bf16.mxu1 %v9777_v0 }
 0x360   :  { %8257 = vmatpush3.bf16.msra.mxu1 %v10033_v25 }
 0x361   :  { %8258 = vmatprep.subr.bf16.mxu1 %v9777_v0 }
 0x364   :  { %8260 = vmatpush3.bf16.msra.mxu1 %v10038_v28 }
 0x365   :  { %8261 = vmatprep.subr.bf16.mxu1 %v9777_v0 }
 0x368   :  { %8263 = vmatpush3.bf16.msra.mxu1 %v10042_v31 }
 0x369   :  { %8264 = vmatprep.subr.bf16.mxu1 %v9777_v0 }
 0x36c   :  { %8266 = vmatpush3.bf16.msra.mxu1 %v10045_v34 }
 0x36d   :  { %8267 = vmatprep.subr.bf16.mxu1 %v9777_v0 }
 0x370   :  { %8269 = vmatpush3.bf16.msra.mxu1 %v10049_v37 }
 0x371   :  { %8271 = vmatprep.subr.bf16.mxu1 %v8270_v5 }
 0x426   :  { %v1120_v47 = vpop.f32.mrb[6].mxu1 }
 0x427   :  { %v10077_v48 = vmul.f32 0.0078125, %v1120_v47  ;;  %v6643_v49 = vpop.f32.mrb[7].mxu1  ;;  %v1304_v47 = vld [vmem:[#allocation4 + $0xe0] sm:$0xff] }
 0x428   :  { %v1305_v49 = vld [vmem:[#allocation4 + $0xe8] sm:$0xff] }
 0x429   :  { %v1128_v50 = vrot.slane %v10077_v48, %v9930_v21 }
 0x42b   :  { %v1129_v51 = vsub.f32 %v10056_v39, %v1128_v50  ;;  %v1130_v52 = vsub.f32 %v10054_v38, %v1128_v50  ;;  %v8354_v50 = vpack.c.bf16 %v1478_v46, %v1477_v44 }
 0x42d   :  { %v1131_v53 = vmul.f32 %v1129_v51, %v1129_v51  ;;  %v1132_v54 = vmul.f32 %v1130_v52, %v1130_v52  ;;  %v1479_v51 = vld [vmem:[#allocation4 + $0x160] sm:$0xff]  ;;  %v1480_v52 = vld [vmem:[#allocation4 + $0x168] sm:$0xff]  ;;  %8355 = vmatprep.subr.bf16.mxu0 %v8354_v50 }
 0x42e   :  { %8357 = vmatpush3.bf16.msra.mxu0 %v8354_v50 }
 0x42f   :  { %v1133_v56 = vadd.f32 %v1132_v54, %v1131_v53  ;;  %v8294_v53 = vpack.c.bf16 %v1305_v49, %v1304_v47  ;;  %v8358_v54 = vpack.c.bf16 %v1480_v52, %v1479_v51 }
 0x431   :  { %v1134_v57 = vrot.slane %v1133_v56, 4  ;;  %8359 = vmatprep.subr.bf16.mxu0 %v8358_v54 }
 0x432   :  { %8361 = vmatpush3.bf16.msra.mxu0 %v8358_v54 }
 0x433   :  { %v1135_v58 = vadd.f32 %v1134_v57, %v1133_v56  ;;  %v1306_v56 = vld [vmem:[#allocation4 + $0xf0] sm:$0xff]  ;;  %v1307_v57 = vld [vmem:[#allocation4 + $0xf8] sm:$0xff] }
 0x435   :  { %v1136_v59 = vrot.slane %v1135_v58, 2 }
 0x437   :  { %v1137_v60 = vadd.f32 %v1136_v59, %v1135_v58  ;;  %v1481_v58 = vld [vmem:[#allocation4 + $0x170] sm:$0xff]  ;;  %v1482_v59 = vld [vmem:[#allocation4 + $0x178] sm:$0xff] }
 0x439   :  { %v1138_v61 = vrot.slane %v1137_v60, 1 }
 0x43b   :  { %v1139_v62 = vadd.f32 %v1138_v61, %v1137_v60  ;;  %v8298_v60 = vpack.c.bf16 %v1307_v57, %v1306_v56  ;;  %v8362_v61 = vpack.c.bf16 %v1482_v59, %v1481_v58  ;;  %v1265_v56 = vld [vmem:[#allocation4 + $0x10] sm:$0xff] }
 0x43d   :  { %6677 = vmatmul.mubr.f32.vlgmr.msra.gmra.mrb[8].mxu1 %v1139_v62  ;;  %v1263_v62 = vld [vmem:[#allocation4] sm:$0xff]  ;;  %8363 = vmatprep.subr.bf16.mxu0 %v8362_v61 }
 0x43e   :  { %8273 = vmatpush3.bf16.msra.mxu1 %v8270_v5  ;;  %v10083_v3 = vpack.c.bf16 %v1264_v63, %v1263_v62  ;;  %v1570_v5 = vld [vmem:[#allocation4 + $0x188] sm:$0xff]  ;;  %8365 = vmatpush3.bf16.msra.mxu0 %v8362_v61  ;;  %v1266_v61 = vld [vmem:[#allocation4 + $0x18] sm:$0xff]  ;;  %v1571_v62 = vld [vmem:[#allocation4 + $0x190] sm:$0xff] }
 0x43f   :  { %8275 = vmatprep.subr.bf16.mxu1 %v8274_v7  ;;  %v10085_v6 = vpack.c.bf16 %v1570_v5, %v1569_v2  ;;  %v1572_v63 = vld [vmem:[#allocation4 + $0x198] sm:$0xff] }
 0x441   :  { %8367 = vmatprep.subr.bf16.mxu0 %v10085_v6 }
 0x442   :  { %8277 = vmatpush3.bf16.msra.mxu1 %v8274_v7  ;;  %v1030_v7 = vld [vmem:[%s10735_s5] sm:$0x3] }
 0x443   :  { %8279 = vmatprep.subr.bf16.mxu1 %v8278_v17 }
 0x446   :  { %8281 = vmatpush3.bf16.msra.mxu1 %v8278_v17 }
 0x447   :  { %8283 = vmatprep.subr.bf16.mxu1 %v8282_v27 }
 0x44a   :  { %8285 = vmatpush3.bf16.msra.mxu1 %v8282_v27 }
 0x44b   :  { %8287 = vmatprep.subr.bf16.mxu1 %v8286_v36 }
 0x44e   :  { %8289 = vmatpush3.bf16.msra.mxu1 %v8286_v36 }
 0x44f   :  { %8291 = vmatprep.subr.bf16.mxu1 %v8290_v45 }
 0x452   :  { %8293 = vmatpush3.bf16.msra.mxu1 %v8290_v45 }
 0x453   :  { %8295 = vmatprep.subr.bf16.mxu1 %v8294_v53 }
 0x456   :  { %8297 = vmatpush3.bf16.msra.mxu1 %v8294_v53 }
 0x457   :  { %8299 = vmatprep.subr.bf16.mxu1 %v8298_v60 }
 0x45a   :  { %8301 = vmatpush3.bf16.msra.mxu1 %v8298_v60 }
 0x45b   :  { %8303 = vmatprep.subr.bf16.mxu1 %v10083_v3 }
 0x510   :  { %v1206_v8 = vpop.f32.mrb[8].mxu1 }
 0x511   :  { %v1210_v9 = vmul.f32 0.0078125, %v1206_v8  ;;  %v6678_v10 = vpop.f32.mrb[9].mxu1 }
 0x513   :  { %v1211_v4 = vadd.f32 1e-05, %v1210_v9 }
 0x515   :  { %9667 = vrsqrt.f32 %v1211_v4 }
 0x51f   :  { %v9668_v11 = vpop.eup %9667 }
 0x520   :  { %v1213_v12 = vmul.f32 %v9668_v11, %v1030_v7  ;;  %v1268_v11 = vld [vmem:[#allocation4 + $0x28] sm:$0xff] }
 0x522   :  { %v1214_v13 = vmul.f32 %v1213_v12, %v10077_v48  ;;  %v1222_v15 = vrot.slane %v1213_v12, %v9930_v21 }
 0x524   :  { %v1216_v16 = vrot.slane %v1214_v13, 7  ;;  %v1223_v17 = vmul.f32 %v1222_v15, %v10056_v39  ;;  %v1224_v19 = vmul.f32 %v10054_v38, %v1222_v15  ;;  %v8306_v13 = vpack.c.bf16 %v1266_v61, %v1265_v56  ;;  %v1274_v61 = vld [vmem:[#allocation4 + $0x58] sm:$0xff] }
 0x525   :  { %v8370_v15 = vpack.c.bf16 %v1572_v63, %v1571_v62  ;;  %v1579_v62 = vld [vmem:[#allocation4 + $0x1d0] sm:$0xff]  ;;  %v1580_v63 = vld [vmem:[#allocation4 + $0x1d8] sm:$0xff] }
 0x526   :  { %v1218_v20 = vsub.f32 %v1030_v7, %v1216_v16  ;;  %v1267_v7 = vld [vmem:[#allocation4 + $0x20] sm:$0xff] }
 0x528   :  { %v1228_v23 = vrot.slane %v1218_v20, %v9942_v55 }
 0x52a   :  { %v1229_v24 = vadd.f32 %v1228_v23, %v1223_v17  ;;  %v1230_v26 = vadd.f32 %v1228_v23, %v1224_v19  ;;  %v1573_v17 = vld [vmem:[#allocation4 + $0x1a0] sm:$0xff]  ;;  %v1574_v19 = vld [vmem:[#allocation4 + $0x1a8] sm:$0xff] }
 0x52c   :  { %v1231_v27 = vmax.f32 %v1229_v24, 0.0  ;;  %v1232_v29 = vmax.f32 %v1230_v26, 0.0 }
 0x52e   :  { %v1235_v30 = vrot.slane %v1231_v27, 3  ;;  %v1239_v32 = vrot.slane %v1231_v27, 1  ;;  %v1243_v33 = vrot.slane %v1231_v27, 7  ;;  %v1247_v35 = vrot.slane %v1231_v27, 5 }
 0x52f   :  { %v1236_v36 = vrot.slane %v1232_v29, 3  ;;  %v1240_v48 = vrot.slane %v1232_v29, 1  ;;  %v1244_v40 = vrot.slane %v1232_v29, 7  ;;  %v1248_v41 = vrot.slane %v1232_v29, 5 }
 0x530   :  { %v1251_v42 = vsel %vm388_vm2, %v1235_v30, %v1239_v32  ;;  %v1257_v39 = vsel %vm394_vm4, %v1247_v35, %v1235_v30  ;;  %v8310_v27 = vpack.c.bf16 %v1268_v11, %v1267_v7 }
 0x531   :  { %v1253_v38 = vsel %vm391_vm3, %v1251_v42, %v1243_v33  ;;  %v1259_v43 = vsel %vm399_vm5, %v1257_v39, %v1239_v32  ;;  %v1252_v44 = vsel %vm388_vm2, %v1236_v36, %v1240_v48  ;;  %v1258_v45 = vsel %vm394_vm4, %v1248_v41, %v1236_v36  ;;  %v1575_v39 = vld [vmem:[#allocation4 + $0x1b0] sm:$0xff] }
 0x532   :  { %v10104_v46 = vsel %vm394_vm4, %v1253_v38, %v1247_v35  ;;  %v10107_v47 = vsel %vm402_vm6, %v1259_v43, %v1243_v33  ;;  %v1254_v49 = vsel %vm391_vm3, %v1252_v44, %v1244_v40  ;;  %v1260_v50 = vsel %vm399_vm5, %v1258_v45, %v1240_v48  ;;  %v1269_v48 = vld [vmem:[#allocation4 + $0x30] sm:$0xff]  ;;  %v1576_v38 = vld [vmem:[#allocation4 + $0x1b8] sm:$0xff] }
 0x533   :  { %v1283_v51 = vrot.slane %v10104_v46, 1  ;;  %v1284_v52 = vrot.slane %v10107_v47, 1  ;;  %v1458_v53 = vrot.slane %v10104_v46, 2  ;;  %v1459_v54 = vrot.slane %v10107_v47, 2 }
 0x534   :  { %v10116_v57 = vsel %vm394_vm4, %v1254_v49, %v1248_v41  ;;  %v10119_v58 = vsel %vm402_vm6, %v1260_v50, %v1244_v40  ;;  %v1560_v59 = vrot.slane %v10104_v46, 3  ;;  %v1561_v60 = vrot.slane %v10107_v47, 3  ;;  %v1270_v40 = vld [vmem:[#allocation4 + $0x38] sm:$0xff] }
 0x535   :  { %v1285_v2 = vsel %vm411_vm7, %v1283_v51, %v1284_v52  ;;  %v1460_v5 = vsel %vm579_vm8, %v1458_v53, %v1459_v54  ;;  %v1286_v8 = vrot.slane %v10116_v57, 1  ;;  %v1287_v9 = vrot.slane %v10119_v58, 1  ;;  %v1271_v51 = vld [vmem:[#allocation4 + $0x40] sm:$0xff]  ;;  %v1272_v52 = vld [vmem:[#allocation4 + $0x48] sm:$0xff] }
 0x536   :  { %6711 = vmatprep.mubr.f32.mxu1 %v1285_v2  ;;  %6781 = vmatprep.mubr.f32.mxu0 %v1460_v5  ;;  %v1461_v10 = vrot.slane %v10116_v57, 2  ;;  %v1462_v4 = vrot.slane %v10119_v58, 2  ;;  %v1665_v20 = vrot.slane %v10116_v57, 4  ;;  %v1666_v23 = vrot.slane %v10119_v58, 4  ;;  %v1577_v53 = vld [vmem:[#allocation4 + $0x1c0] sm:$0xff]  ;;  %v1578_v54 = vld [vmem:[#allocation4 + $0x1c8] sm:$0xff] }
 0x537   :  { %v1288_v12 = vsel %vm411_vm7, %v1286_v8, %v1287_v9  ;;  %v1764_v24 = vrot.slane %v10104_v46, 5  ;;  %v1562_v26 = vsel %vm402_vm6, %v1560_v59, %v1561_v60  ;;  %v1765_v29 = vrot.slane %v10107_v47, 5  ;;  %v1273_v60 = vld [vmem:[#allocation4 + $0x50] sm:$0xff]  ;;  %v1275_v8 = vld [vmem:[#allocation4 + $0x60] sm:$0xff]  ;;  %v1276_v9 = vld [vmem:[#allocation4 + $0x68] sm:$0xff] }
 0x538   :  { %6712 = vmatmul.mubr.f32.vlgmr.msra.gmra.mrb[0].mxu1 %v1288_v12  ;;  %v1463_v16 = vsel %vm579_vm8, %v1461_v10, %v1462_v4  ;;  %v1767_v30 = vrot.slane %v10116_v57, 5  ;;  %v10141_v32 = vsel %vm399_vm5, %v1665_v20, %v1666_v23  ;;  %v1768_v33 = vrot.slane %v10119_v58, 5  ;;  %v1581_v10 = vld [vmem:[#allocation4 + $0x1e0] sm:$0xff]  ;;  %v1582_v4 = vld [vmem:[#allocation4 + $0x1e8] sm:$0xff]  ;;  %v1277_v12 = vld [vmem:[#allocation4 + $0x70] sm:$0xff] }
 0x539   :  { %8305 = vmatpush3.bf16.msra.mxu1 %v10083_v3  ;;  %6782 = vmatmul.mubr.f32.vlgmr.msra.gmra.mrb[2].mxu0 %v1463_v16  ;;  %v1866_v35 = vrot.slane %v10104_v46, 6  ;;  %v1867_v3 = vrot.slane %v10107_v47, 6  ;;  %v8374_v36 = vpack.c.bf16 %v1574_v19, %v1573_v17  ;;  %v10147_v41 = vsel %vm394_vm4, %v1764_v24, %v1765_v29  ;;  %v1584_v16 = vld [vmem:[#allocation4 + $0x1f8] sm:$0xff]  ;;  %v1671_v20 = vld [vmem:[#allocation4 + $0x200] sm:$0xff]  ;;  %v1672_v23 = vld [vmem:[#allocation4 + $0x208] sm:$0xff] }
 0x53a   :  { %8369 = vmatpush3.bf16.msra.mxu0 %v10085_v6  ;;  %6746 = vmatprep.mubr.f32.mxu1 %v10104_v46  ;;  %v1869_v6 = vrot.slane %v10116_v57, 6  ;;  %v1870_v42 = vrot.slane %v10119_v58, 6  ;;  %v10152_v43 = vsel %vm394_vm4, %v1767_v30, %v1768_v33  ;;  %v8314_v49 = vpack.c.bf16 %v1270_v40, %v1269_v48  ;;  %v1673_v29 = vld [vmem:[#allocation4 + $0x210] sm:$0xff]  ;;  %v1674_v30 = vld [vmem:[#allocation4 + $0x218] sm:$0xff]  ;;  %v1675_v48 = vld [vmem:[#allocation4 + $0x220] sm:$0xff] }
 0x53b   :  { %6816 = vmatprep.mubr.f32.mxu0 %v1562_v26  ;;  %8307 = vmatprep.subr.bf16.mxu1 %v8306_v13  ;;  %v10155_v44 = vsel %vm391_vm3, %v1866_v35, %v1867_v3  ;;  %v8378_v50 = vpack.c.bf16 %v1576_v38, %v1575_v39  ;;  %v8318_v56 = vpack.c.bf16 %v1272_v52, %v1271_v51  ;;  %v1563_v26 = vrot.slane %v10116_v57, 3  ;;  %v1676_v40 = vld [vmem:[#allocation4 + $0x228] sm:$0xff]  ;;  %v1683_v52 = vld [vmem:[#allocation4 + $0x260] sm:$0xff] }
 0x53c   :  { %8371 = vmatprep.subr.bf16.mxu0 %v8370_v15  ;;  %v10158_v45 = vsel %vm391_vm3, %v1869_v6, %v1870_v42  ;;  %v8382_v59 = vpack.c.bf16 %v1578_v54, %v1577_v53  ;;  %v8322_v2 = vpack.c.bf16 %v1274_v61, %v1273_v60  ;;  %v8386_v5 = vpack.c.bf16 %v1580_v63, %v1579_v62  ;;  %v1678_v6 = vld [vmem:[#allocation4 + $0x238] sm:$0xff]  ;;  %v1679_v42 = vld [vmem:[#allocation4 + $0x240] sm:$0xff]  ;;  %v1680_v39 = vld [vmem:[#allocation4 + $0x248] sm:$0xff] }
 0x53d   :  { %8309 = vmatpush3.bf16.msra.mxu1 %v8306_v13  ;;  %v8326_v7 = vpack.c.bf16 %v1276_v9, %v1275_v8  ;;  %v8390_v11 = vpack.c.bf16 %v1582_v4, %v1581_v10  ;;  %v1278_v13 = vld [vmem:[#allocation4 + $0x78] sm:$0xff]  ;;  %v8398_v24 = vpack.c.bf16 %v1672_v23, %v1671_v20  ;;  %v1662_v33 = vrot.slane %v10104_v46, 4  ;;  %v1684_v53 = vld [vmem:[#allocation4 + $0x268] sm:$0xff]  ;;  %v1773_v61 = vld [vmem:[#allocation4 + $0x280] sm:$0xff] }
 0x53e   :  { %8373 = vmatpush3.bf16.msra.mxu0 %v8370_v15  ;;  %8311 = vmatprep.subr.bf16.mxu1 %v8310_v27  ;;  %v1583_v15 = vld [vmem:[#allocation4 + $0x1f0] sm:$0xff]  ;;  %v8330_v17 = vpack.c.bf16 %v1278_v13, %v1277_v12  ;;  %v1663_v35 = vrot.slane %v10107_v47, 4  ;;  %v8402_v3 = vpack.c.bf16 %v1674_v30, %v1673_v29  ;;  %v8406_v46 = vpack.c.bf16 %v1676_v40, %v1675_v48  ;;  %v1774_v62 = vld [vmem:[#allocation4 + $0x288] sm:$0xff]  ;;  %v1777_v9 = vld [vmem:[#allocation4 + $0x2a0] sm:$0xff] }
 0x53f   :  { %8375 = vmatprep.subr.bf16.mxu0 %v8374_v36  ;;  %v8394_v19 = vpack.c.bf16 %v1584_v16, %v1583_v15  ;;  %v1677_v47 = vld [vmem:[#allocation4 + $0x230] sm:$0xff]  ;;  %v8414_v38 = vpack.c.bf16 %v1680_v39, %v1679_v42  ;;  %v8422_v54 = vpack.c.bf16 %v1684_v53, %v1683_v52  ;;  %v8430_v63 = vpack.c.bf16 %v1774_v62, %v1773_v61  ;;  %v1778_v10 = vld [vmem:[#allocation4 + $0x2a8] sm:$0xff]  ;;  %v1781_v13 = vld [vmem:[#allocation4 + $0x2c0] sm:$0xff] }
 0x540   :  { %v8438_v4 = vpack.c.bf16 %v1778_v10, %v1777_v9  ;;  %v1782_v15 = vld [vmem:[#allocation4 + $0x2c8] sm:$0xff]  ;;  %v1785_v20 = vld [vmem:[#allocation4 + $0x2e0] sm:$0xff]  ;;  %v1889_v52 = vld [vmem:[#allocation4 + $0x370] sm:$0xff] }
 0x541   :  { %8313 = vmatpush3.bf16.msra.mxu1 %v8310_v27  ;;  %v1564_v27 = vrot.slane %v10119_v58, 3  ;;  %v1664_v58 = vsel %vm399_vm5, %v1662_v33, %v1663_v35  ;;  %v8446_v16 = vpack.c.bf16 %v1782_v15, %v1781_v13  ;;  %v1786_v23 = vld [vmem:[#allocation4 + $0x2e8] sm:$0xff]  ;;  %v1875_v29 = vld [vmem:[#allocation4 + $0x300] sm:$0xff]  ;;  %v1877_v35 = vld [vmem:[#allocation4 + $0x310] sm:$0xff] }
 0x542   :  { %8377 = vmatpush3.bf16.msra.mxu0 %v8374_v36  ;;  %8315 = vmatprep.subr.bf16.mxu1 %v8314_v49  ;;  %v1876_v30 = vld [vmem:[#allocation4 + $0x308] sm:$0xff]  ;;  %v1879_v48 = vld [vmem:[#allocation4 + $0x320] sm:$0xff]  ;;  %v1890_v53 = vld [vmem:[#allocation4 + $0x378] sm:$0xff] }
 0x543   :  { %8379 = vmatprep.subr.bf16.mxu0 %v8378_v50  ;;  %v1565_v36 = vsel %vm402_vm6, %v1563_v26, %v1564_v27  ;;  %v1788_v26 = vld [vmem:[#allocation4 + $0x2f8] sm:$0xff]  ;;  %v8462_v33 = vpack.c.bf16 %v1876_v30, %v1875_v29  ;;  %v1880_v40 = vld [vmem:[#allocation4 + $0x328] sm:$0xff]  ;;  %v2218_v29 = vld [vmem:[#allocation4 + $0x400] sm:$0xff] }
 0x544   :  { %v1884_v42 = vld [vmem:[#allocation4 + $0x348] sm:$0xff] }
 0x545   :  { %8317 = vmatpush3.bf16.msra.mxu1 %v8314_v49  ;;  %v1681_v49 = vld [vmem:[#allocation4 + $0x250] sm:$0xff]  ;;  %v2219_v30 = vld [vmem:[#allocation4 + $0x408] sm:$0xff] }
 0x546   :  { %8381 = vmatpush3.bf16.msra.mxu0 %v8378_v50  ;;  %8319 = vmatprep.subr.bf16.mxu1 %v8318_v56  ;;  %v1682_v50 = vld [vmem:[#allocation4 + $0x258] sm:$0xff] }
 0x547   :  { %8383 = vmatprep.subr.bf16.mxu0 %v8382_v59  ;;  %v8418_v51 = vpack.c.bf16 %v1682_v50, %v1681_v49  ;;  %v1886_v49 = vld [vmem:[#allocation4 + $0x358] sm:$0xff]  ;;  %v1887_v50 = vld [vmem:[#allocation4 + $0x360] sm:$0xff] }
 0x549   :  { %8321 = vmatpush3.bf16.msra.mxu1 %v8318_v56  ;;  %v1685_v56 = vld [vmem:[#allocation4 + $0x270] sm:$0xff] }
 0x54a   :  { %8385 = vmatpush3.bf16.msra.mxu0 %v8382_v59  ;;  %8323 = vmatprep.subr.bf16.mxu1 %v8322_v2  ;;  %v1686_v59 = vld [vmem:[#allocation4 + $0x278] sm:$0xff] }
 0x54b   :  { %8387 = vmatprep.subr.bf16.mxu0 %v8386_v5  ;;  %v8426_v60 = vpack.c.bf16 %v1686_v59, %v1685_v56 }
 0x54d   :  { %8325 = vmatpush3.bf16.msra.mxu1 %v8322_v2  ;;  %v1775_v2 = vld [vmem:[#allocation4 + $0x290] sm:$0xff] }
 0x54e   :  { %8389 = vmatpush3.bf16.msra.mxu0 %v8386_v5  ;;  %8327 = vmatprep.subr.bf16.mxu1 %v8326_v7  ;;  %v1776_v5 = vld [vmem:[#allocation4 + $0x298] sm:$0xff] }
 0x54f   :  { %8391 = vmatprep.subr.bf16.mxu0 %v8390_v11  ;;  %v8434_v8 = vpack.c.bf16 %v1776_v5, %v1775_v2 }
 0x551   :  { %8329 = vmatpush3.bf16.msra.mxu1 %v8326_v7  ;;  %v1779_v7 = vld [vmem:[#allocation4 + $0x2b0] sm:$0xff] }
 0x552   :  { %8393 = vmatpush3.bf16.msra.mxu0 %v8390_v11  ;;  %8331 = vmatprep.subr.bf16.mxu1 %v8330_v17  ;;  %v1780_v11 = vld [vmem:[#allocation4 + $0x2b8] sm:$0xff] }
 0x553   :  { %8395 = vmatprep.subr.bf16.mxu0 %v8394_v19  ;;  %v8442_v12 = vpack.c.bf16 %v1780_v11, %v1779_v7 }
 0x555   :  { %8333 = vmatpush3.bf16.msra.mxu1 %v8330_v17  ;;  %v1783_v17 = vld [vmem:[#allocation4 + $0x2d0] sm:$0xff] }
 0x556   :  { %8397 = vmatpush3.bf16.msra.mxu0 %v8394_v19  ;;  %8494 = vmatprep.subr.bf16.mxu1 %v9777_v0  ;;  %v1784_v19 = vld [vmem:[#allocation4 + $0x2d8] sm:$0xff] }
 0x557   :  { %8399 = vmatprep.subr.bf16.mxu0 %v8398_v24 }
 0x558   :  { %6747 = vmatmul.mubr.f32.vlgmr.msra.gmra.mrb[0].mxu1 %v10116_v57  ;;  %v8410_v57 = vpack.c.bf16 %v1678_v6, %v1677_v47  ;;  %v1882_v47 = vld [vmem:[#allocation4 + $0x338] sm:$0xff] }
 0x559   :  { %6817 = vmatmul.mubr.f32.vlgmr.msra.gmra.mrb[2].mxu0 %v1565_v36  ;;  %8496 = vmatpush3.bf16.msra.mxu1 %v10018_v14 }
 0x55a   :  { %8401 = vmatpush3.bf16.msra.mxu0 %v8398_v24  ;;  %6851 = vmatprep.mubr.f32.mxu0 %v1664_v58  ;;  %v1787_v24 = vld [vmem:[#allocation4 + $0x2f0] sm:$0xff]  ;;  %v8470_v58 = vpack.c.bf16 %v1880_v40, %v1879_v48  ;;  %v2222_v48 = vld [vmem:[#allocation4 + $0x420] sm:$0xff]  ;;  %v2223_v40 = vld [vmem:[#allocation4 + $0x428] sm:$0xff] }
 0x55b   :  { %8403 = vmatprep.subr.bf16.mxu0 %v8402_v3  ;;  %8497 = vmatprep.subr.bf16.mxu1 %v9777_v0  ;;  %v8458_v27 = vpack.c.bf16 %v1788_v26, %v1787_v24 }
 0x55c   :  { %6956 = vmatprep.mubr.msk.f32.mxu1 %vm9778_vm0, %v9779_v1 }
 0x55d   :  { %8499 = vmatpush3.bf16.msra.mxu1 %v10023_v18 }
 0x55e   :  { %8405 = vmatpush3.bf16.msra.mxu0 %v8402_v3  ;;  %8500 = vmatprep.subr.bf16.mxu1 %v9777_v0  ;;  %v1878_v3 = vld [vmem:[#allocation4 + $0x318] sm:$0xff] }
 0x55f   :  { %8407 = vmatprep.subr.bf16.mxu0 %v8406_v46  ;;  %v8466_v36 = vpack.c.bf16 %v1878_v3, %v1877_v35  ;;  %v2220_v35 = vld [vmem:[#allocation4 + $0x410] sm:$0xff]  ;;  %v2221_v3 = vld [vmem:[#allocation4 + $0x418] sm:$0xff] }
 0x561   :  { %8502 = vmatpush3.bf16.msra.mxu1 %v10029_v22 }
 0x562   :  { %8409 = vmatpush3.bf16.msra.mxu0 %v8406_v46  ;;  %8503 = vmatprep.subr.bf16.mxu1 %v9777_v0  ;;  %v1881_v46 = vld [vmem:[#allocation4 + $0x330] sm:$0xff] }
 0x563   :  { %8411 = vmatprep.subr.bf16.mxu0 %v8410_v57  ;;  %v8474_v6 = vpack.c.bf16 %v1882_v47, %v1881_v46  ;;  %v2224_v46 = vld [vmem:[#allocation4 + $0x430] sm:$0xff]  ;;  %v2225_v47 = vld [vmem:[#allocation4 + $0x438] sm:$0xff] }
 0x565   :  { %8505 = vmatpush3.bf16.msra.mxu1 %v10033_v25 }
 0x566   :  { %8413 = vmatpush3.bf16.msra.mxu0 %v8410_v57  ;;  %8506 = vmatprep.subr.bf16.mxu1 %v9777_v0  ;;  %v1883_v57 = vld [vmem:[#allocation4 + $0x340] sm:$0xff] }
 0x567   :  { %8415 = vmatprep.subr.bf16.mxu0 %v8414_v38  ;;  %v8478_v39 = vpack.c.bf16 %v1884_v42, %v1883_v57  ;;  %v2226_v57 = vld [vmem:[#allocation4 + $0x440] sm:$0xff]  ;;  %v2227_v42 = vld [vmem:[#allocation4 + $0x448] sm:$0xff] }
 0x569   :  { %8508 = vmatpush3.bf16.msra.mxu1 %v10038_v28 }
 0x56a   :  { %8417 = vmatpush3.bf16.msra.mxu0 %v8414_v38  ;;  %8509 = vmatprep.subr.bf16.mxu1 %v9777_v0  ;;  %v1885_v38 = vld [vmem:[#allocation4 + $0x350] sm:$0xff] }
 0x56b   :  { %8419 = vmatprep.subr.bf16.mxu0 %v8418_v51 }
 0x56d   :  { %8511 = vmatpush3.bf16.msra.mxu1 %v10042_v31 }
 0x56e   :  { %8421 = vmatpush3.bf16.msra.mxu0 %v8418_v51  ;;  %8512 = vmatprep.subr.bf16.mxu1 %v9777_v0  ;;  %v1888_v51 = vld [vmem:[#allocation4 + $0x368] sm:$0xff] }
 0x56f   :  { %8423 = vmatprep.subr.bf16.mxu0 %v8422_v54 }
 0x571   :  { %8514 = vmatpush3.bf16.msra.mxu1 %v10045_v34 }
 0x572   :  { %8425 = vmatpush3.bf16.msra.mxu0 %v8422_v54  ;;  %8515 = vmatprep.subr.bf16.mxu1 %v9777_v0  ;;  %v8490_v54 = vpack.c.bf16 %v1890_v53, %v1889_v52  ;;  %v2232_v52 = vld [vmem:[#allocation4 + $0x470] sm:$0xff]  ;;  %v2233_v53 = vld [vmem:[#allocation4 + $0x478] sm:$0xff] }
 0x573   :  { %8427 = vmatprep.subr.bf16.mxu0 %v8426_v60 }
 0x575   :  { %8517 = vmatpush3.bf16.msra.mxu1 %v10049_v37 }
 0x576   :  { %8429 = vmatpush3.bf16.msra.mxu0 %v8426_v60  ;;  %8518 = vmatprep.subr.bf16.mxu1 %v9777_v0 }
 0x577   :  { %8431 = vmatprep.subr.bf16.mxu0 %v8430_v63 }
 0x579   :  { %6852 = vmatmul.mubr.f32.vlgmr.msra.gmra.mrb[2].mxu0 %v10141_v32  ;;  %v8450_v32 = vpack.c.bf16 %v1784_v19, %v1783_v17 }
 0x57a   :  { %8433 = vmatpush3.bf16.msra.mxu0 %v8430_v63  ;;  %6886 = vmatprep.mubr.f32.mxu0 %v10147_v41  ;;  %v8454_v41 = vpack.c.bf16 %v1786_v23, %v1785_v20 }
 0x57b   :  { %8435 = vmatprep.subr.bf16.mxu0 %v8434_v8 }
 0x57e   :  { %8437 = vmatpush3.bf16.msra.mxu0 %v8434_v8 }
 0x57f   :  { %8439 = vmatprep.subr.bf16.mxu0 %v8438_v4 }
 0x582   :  { %8441 = vmatpush3.bf16.msra.mxu0 %v8438_v4 }
 0x583   :  { %8443 = vmatprep.subr.bf16.mxu0 %v8442_v12 }
 0x586   :  { %8445 = vmatpush3.bf16.msra.mxu0 %v8442_v12 }
 0x587   :  { %8447 = vmatprep.subr.bf16.mxu0 %v8446_v16 }
 0x58a   :  { %8449 = vmatpush3.bf16.msra.mxu0 %v8446_v16 }
 0x58b   :  { %8451 = vmatprep.subr.bf16.mxu0 %v8450_v32 }
 0x58e   :  { %8453 = vmatpush3.bf16.msra.mxu0 %v8450_v32 }
 0x58f   :  { %8455 = vmatprep.subr.bf16.mxu0 %v8454_v41 }
 0x592   :  { %8457 = vmatpush3.bf16.msra.mxu0 %v8454_v41 }
 0x593   :  { %8459 = vmatprep.subr.bf16.mxu0 %v8458_v27 }
 0x596   :  { %8461 = vmatpush3.bf16.msra.mxu0 %v8458_v27 }
 0x597   :  { %8463 = vmatprep.subr.bf16.mxu0 %v8462_v33 }
 0x599   :  { %6887 = vmatmul.mubr.f32.vlgmr.msra.gmra.mrb[2].mxu0 %v10152_v43  ;;  %v8482_v43 = vpack.c.bf16 %v1886_v49, %v1885_v38  ;;  %v2228_v38 = vld [vmem:[#allocation4 + $0x450] sm:$0xff]  ;;  %v2229_v49 = vld [vmem:[#allocation4 + $0x458] sm:$0xff] }
 0x59a   :  { %8465 = vmatpush3.bf16.msra.mxu0 %v8462_v33  ;;  %6921 = vmatprep.mubr.f32.mxu0 %v10155_v44  ;;  %v8486_v44 = vpack.c.bf16 %v1888_v51, %v1887_v50  ;;  %v8542_v33 = vpack.c.bf16 %v2219_v30, %v2218_v29  ;;  %v8562_v50 = vpack.c.bf16 %v2229_v49, %v2228_v38  ;;  %v2231_v51 = vld [vmem:[#allocation4 + $0x468] sm:$0xff] }
 0x59b   :  { %8467 = vmatprep.subr.bf16.mxu0 %v8466_v36 }
 0x59e   :  { %8469 = vmatpush3.bf16.msra.mxu0 %v8466_v36  ;;  %v8546_v36 = vpack.c.bf16 %v2221_v3, %v2220_v35 }
 0x59f   :  { %8471 = vmatprep.subr.bf16.mxu0 %v8470_v58 }
 0x5a2   :  { %8473 = vmatpush3.bf16.msra.mxu0 %v8470_v58  ;;  %v8550_v58 = vpack.c.bf16 %v2223_v40, %v2222_v48 }
 0x5a3   :  { %8475 = vmatprep.subr.bf16.mxu0 %v8474_v6 }
 0x5a6   :  { %8477 = vmatpush3.bf16.msra.mxu0 %v8474_v6  ;;  %v8554_v6 = vpack.c.bf16 %v2225_v47, %v2224_v46  ;;  %v2191_v46 = vld [vmem:[#allocation4 + $0x390] sm:$0xff]  ;;  %v2192_v47 = vld [vmem:[#allocation4 + $0x398] sm:$0xff] }
 0x5a7   :  { %8479 = vmatprep.subr.bf16.mxu0 %v8478_v39 }
 0x5aa   :  { %8481 = vmatpush3.bf16.msra.mxu0 %v8478_v39  ;;  %v8558_v39 = vpack.c.bf16 %v2227_v42, %v2226_v57 }
 0x5ab   :  { %8483 = vmatprep.subr.bf16.mxu0 %v8482_v43 }
 0x5ae   :  { %8485 = vmatpush3.bf16.msra.mxu0 %v8482_v43  ;;  %v2230_v43 = vld [vmem:[#allocation4 + $0x460] sm:$0xff] }
 0x5af   :  { %8487 = vmatprep.subr.bf16.mxu0 %v8486_v44 }
 0x5b2   :  { %8489 = vmatpush3.bf16.msra.mxu0 %v8486_v44  ;;  %v8566_v44 = vpack.c.bf16 %v2231_v51, %v2230_v43 }
 0x5b3   :  { %8491 = vmatprep.subr.bf16.mxu0 %v8490_v54 }
 0x5b6   :  { %8493 = vmatpush3.bf16.msra.mxu0 %v8490_v54  ;;  %v8570_v54 = vpack.c.bf16 %v2233_v53, %v2232_v52  ;;  %v8578_v52 = vpack.c.bf16 %v2192_v47, %v2191_v46  ;;  %v2199_v47 = vld [vmem:[#allocation4 + $0x3d0] sm:$0xff] }
 0x5b7   :  { %8766 = vmatprep.subr.bf16.mxu0 %v9777_v0 }
 0x5b9   :  { %6922 = vmatmul.mubr.f32.vlgmr.msra.gmra.mrb[2].mxu0 %v10158_v45 }
 0x5ba   :  { %8768 = vmatpush3.bf16.msra.mxu0 %v10018_v14  ;;  %7271 = vmatprep.mubr.msk.f32.mxu0 %vm9778_vm0, %v9779_v1 }
 0x5bb   :  { %8769 = vmatprep.subr.bf16.mxu0 %v9777_v0 }
 0x5be   :  { %8771 = vmatpush3.bf16.msra.mxu0 %v10023_v18 }
 0x5bf   :  { %8772 = vmatprep.subr.bf16.mxu0 %v9777_v0 }
 0x5c2   :  { %8774 = vmatpush3.bf16.msra.mxu0 %v10029_v22 }
 0x5c3   :  { %8775 = vmatprep.subr.bf16.mxu0 %v9777_v0 }
 0x5c6   :  { %8777 = vmatpush3.bf16.msra.mxu0 %v10033_v25 }
 0x5c7   :  { %8778 = vmatprep.subr.bf16.mxu0 %v9777_v0 }
 0x5ca   :  { %8780 = vmatpush3.bf16.msra.mxu0 %v10038_v28 }
 0x5cb   :  { %8781 = vmatprep.subr.bf16.mxu0 %v9777_v0 }
 0x5ce   :  { %8783 = vmatpush3.bf16.msra.mxu0 %v10042_v31 }
 0x5cf   :  { %8784 = vmatprep.subr.bf16.mxu0 %v9777_v0 }
 0x5d2   :  { %8786 = vmatpush3.bf16.msra.mxu0 %v10045_v34 }
 0x5d3   :  { %8787 = vmatprep.subr.bf16.mxu0 %v9777_v0 }
 0x5d6   :  { %8789 = vmatpush3.bf16.msra.mxu0 %v10049_v37 }
 0x5d7   :  { %8790 = vmatprep.subr.bf16.mxu0 %v9777_v0 }
 0x62b   :  { %v6748_v45 = vpop.f32.mrb[0].mxu1 }
 0x62c   :  { %v1449_v56 = vpop.f32.mrb[1].mxu1 }
 0x68c   :  { %v6923_v59 = vpop.f32.mrb[2].mxu0 }
 0x68d   :  { %v10210_v60 = vadd.f32 %v6923_v59, %v6748_v45  ;;  %v1957_v61 = vpop.f32.mrb[3].mxu0  ;;  %v2189_v45 = vld [vmem:[#allocation4 + $0x380] sm:$0xff] }
 0x68e   :  { %v10212_v62 = vadd.f32 %v1957_v61, %v1449_v56  ;;  %v2190_v56 = vld [vmem:[#allocation4 + $0x388] sm:$0xff] }
 0x68f   :  { %v10239_v59 = vpack.c.bf16 %v2190_v56, %v2189_v45 }
 0x690   :  { %v1972_v63 = vadd.f32 %v10212_v62, %v10210_v60 }
 0x692   :  { %v1973_v2 = vrot.slane %v1972_v63, 4 }
 0x694   :  { %v1974_v5 = vadd.f32 %v1973_v2, %v1972_v63 }
 0x696   :  { %v1975_v8 = vrot.slane %v1974_v5, 2 }
 0x698   :  { %v1976_v9 = vadd.f32 %v1975_v8, %v1974_v5  ;;  %v5697_v8 = vld [vmem:[%s10735_s5 + $0x2] sm:$0x3] }
 0x69a   :  { %v1977_v10 = vrot.slane %v1976_v9, 1 }
 0x69c   :  { %v1978_v4 = vadd.f32 %v1977_v10, %v1976_v9 }
 0x69e   :  { %6957 = vmatmul.mubr.f32.vlgmr.msra.gmra.mrb[10].mxu1 %v1978_v4 }
 0x69f   :  { %8520 = vmatpush3.bf16.msra.mxu1 %v10018_v14  ;;  %6991 = vmatprep.mubr.msk.f32.mxu1 %vm9778_vm0, %v9779_v1 }
 0x6a0   :  { %8521 = vmatprep.subr.bf16.mxu1 %v9777_v0 }
 0x6a3   :  { %8523 = vmatpush3.bf16.msra.mxu1 %v10023_v18 }
 0x6a4   :  { %8524 = vmatprep.subr.bf16.mxu1 %v9777_v0 }
 0x6a7   :  { %8526 = vmatpush3.bf16.msra.mxu1 %v10029_v22 }
 0x6a8   :  { %8527 = vmatprep.subr.bf16.mxu1 %v9777_v0 }
 0x6ab   :  { %8529 = vmatpush3.bf16.msra.mxu1 %v10033_v25 }
 0x6ac   :  { %8530 = vmatprep.subr.bf16.mxu1 %v9777_v0 }
 0x6af   :  { %8532 = vmatpush3.bf16.msra.mxu1 %v10038_v28 }
 0x6b0   :  { %8533 = vmatprep.subr.bf16.mxu1 %v9777_v0 }
 0x6b3   :  { %8535 = vmatpush3.bf16.msra.mxu1 %v10042_v31 }
 0x6b4   :  { %8536 = vmatprep.subr.bf16.mxu1 %v9777_v0 }
 0x6b7   :  { %8538 = vmatpush3.bf16.msra.mxu1 %v10045_v34 }
 0x6b8   :  { %8539 = vmatprep.subr.bf16.mxu1 %v9777_v0 }
 0x6bb   :  { %8541 = vmatpush3.bf16.msra.mxu1 %v10049_v37 }
 0x6bc   :  { %8543 = vmatprep.subr.bf16.mxu1 %v8542_v33 }
 0x771   :  { %v2045_v7 = vpop.f32.mrb[10].mxu1 }
 0x772   :  { %v10233_v11 = vmul.f32 0.0078125, %v2045_v7  ;;  %v6958_v12 = vpop.f32.mrb[11].mxu1 }
 0x774   :  { %v2053_v13 = vrot.slane %v10233_v11, %v9930_v21 }
 0x776   :  { %v2054_v15 = vsub.f32 %v10212_v62, %v2053_v13  ;;  %v2055_v16 = vsub.f32 %v10210_v60, %v2053_v13 }
 0x778   :  { %v2056_v17 = vmul.f32 %v2054_v15, %v2054_v15  ;;  %v2057_v19 = vmul.f32 %v2055_v16, %v2055_v16 }
 0x77a   :  { %v2058_v32 = vadd.f32 %v2057_v19, %v2056_v17 }
 0x77c   :  { %v2059_v20 = vrot.slane %v2058_v32, 4 }
 0x77e   :  { %v2060_v23 = vadd.f32 %v2059_v20, %v2058_v32 }
 0x780   :  { %v2061_v41 = vrot.slane %v2060_v23, 2 }
 0x782   :  { %v2062_v24 = vadd.f32 %v2061_v41, %v2060_v23 }
 0x784   :  { %v2063_v26 = vrot.slane %v2062_v24, 1 }
 0x786   :  { %v2064_v27 = vadd.f32 %v2063_v26, %v2062_v24 }
 0x788   :  { %6992 = vmatmul.mubr.f32.vlgmr.msra.gmra.mrb[12].mxu1 %v2064_v27 }
 0x789   :  { %8545 = vmatpush3.bf16.msra.mxu1 %v8542_v33 }
 0x78a   :  { %8547 = vmatprep.subr.bf16.mxu1 %v8546_v36 }
 0x78d   :  { %8549 = vmatpush3.bf16.msra.mxu1 %v8546_v36 }
 0x78e   :  { %8551 = vmatprep.subr.bf16.mxu1 %v8550_v58 }
 0x791   :  { %8553 = vmatpush3.bf16.msra.mxu1 %v8550_v58 }
 0x792   :  { %8555 = vmatprep.subr.bf16.mxu1 %v8554_v6 }
 0x795   :  { %8557 = vmatpush3.bf16.msra.mxu1 %v8554_v6 }
 0x796   :  { %8559 = vmatprep.subr.bf16.mxu1 %v8558_v39 }
 0x799   :  { %8561 = vmatpush3.bf16.msra.mxu1 %v8558_v39 }
 0x79a   :  { %8563 = vmatprep.subr.bf16.mxu1 %v8562_v50 }
 0x79d   :  { %8565 = vmatpush3.bf16.msra.mxu1 %v8562_v50 }
 0x79e   :  { %8567 = vmatprep.subr.bf16.mxu1 %v8566_v44 }
 0x7a1   :  { %8569 = vmatpush3.bf16.msra.mxu1 %v8566_v44 }
 0x7a2   :  { %8571 = vmatprep.subr.bf16.mxu1 %v8570_v54 }
 0x7a5   :  { %8573 = vmatpush3.bf16.msra.mxu1 %v8570_v54 }
 0x7a6   :  { %8575 = vmatprep.subr.bf16.mxu1 %v10239_v59 }
 0x85b   :  { %v2131_v61 = vpop.f32.mrb[12].mxu1 }
 0x85c   :  { %v2135_v63 = vmul.f32 0.0078125, %v2131_v61  ;;  %v6993_v2 = vpop.f32.mrb[13].mxu1 }
 0x85d   :  { %v2194_v2 = vld [vmem:[#allocation4 + $0x3a8] sm:$0xff] }
 0x85e   :  { %v2136_v5 = vadd.f32 1e-05, %v2135_v63  ;;  %v2193_v63 = vld [vmem:[#allocation4 + $0x3a0] sm:$0xff] }
 0x860   :  { %9669 = vrsqrt.f32 %v2136_v5 }
 0x86a   :  { %v9670_v9 = vpop.eup %9669 }
 0x86b   :  { %v2138_v10 = vmul.f32 %v9670_v9, %v5697_v8 }
 0x86d   :  { %v2139_v4 = vmul.f32 %v2138_v10, %v10233_v11  ;;  %v2147_v12 = vrot.slane %v2138_v10, %v9930_v21 }
 0x86f   :  { %v2141_v7 = vrot.slane %v2139_v4, 7  ;;  %v2148_v15 = vmul.f32 %v10212_v62, %v2147_v12  ;;  %v2149_v16 = vmul.f32 %v10210_v60, %v2147_v12 }
 0x871   :  { %v2143_v13 = vsub.f32 %v5697_v8, %v2141_v7 }
 0x873   :  { %v2153_v17 = vrot.slane %v2143_v13, %v9942_v55 }
 0x875   :  { %v2154_v19 = vadd.f32 %v2153_v17, %v2148_v15  ;;  %v2155_v32 = vadd.f32 %v2153_v17, %v2149_v16  ;;  %v8582_v16 = vpack.c.bf16 %v2194_v2, %v2193_v63 }
 0x877   :  { %v2156_v20 = vmax.f32 %v2154_v19, 0.0  ;;  %v2157_v23 = vmax.f32 %v2155_v32, 0.0 }
 0x879   :  { %v2160_v41 = vrot.slane %v2156_v20, 3  ;;  %v2164_v24 = vrot.slane %v2156_v20, 1  ;;  %v2168_v26 = vrot.slane %v2156_v20, 7  ;;  %v2172_v27 = vrot.slane %v2156_v20, 5  ;;  %v2195_v20 = vld [vmem:[#allocation4 + $0x3b0] sm:$0xff] }
 0x87a   :  { %v2161_v29 = vrot.slane %v2157_v23, 3  ;;  %v2165_v11 = vrot.slane %v2157_v23, 1  ;;  %v2169_v30 = vrot.slane %v2157_v23, 7  ;;  %v2173_v33 = vrot.slane %v2157_v23, 5 }
 0x87b   :  { %v2176_v35 = vsel %vm388_vm2, %v2160_v41, %v2164_v24  ;;  %v2182_v3 = vsel %vm394_vm4, %v2172_v27, %v2160_v41 }
 0x87c   :  { %v2178_v36 = vsel %vm391_vm3, %v2176_v35, %v2168_v26  ;;  %v2184_v48 = vsel %vm399_vm5, %v2182_v3, %v2164_v24  ;;  %v2177_v40 = vsel %vm388_vm2, %v2161_v29, %v2165_v11  ;;  %v2183_v58 = vsel %vm394_vm4, %v2173_v33, %v2161_v29 }
 0x87d   :  { %v10257_v6 = vsel %vm394_vm4, %v2178_v36, %v2172_v27  ;;  %v10260_v57 = vsel %vm402_vm6, %v2184_v48, %v2168_v26  ;;  %v2179_v42 = vsel %vm391_vm3, %v2177_v40, %v2169_v30  ;;  %v2185_v39 = vsel %vm399_vm5, %v2183_v58, %v2165_v11  ;;  %v2197_v48 = vld [vmem:[#allocation4 + $0x3c0] sm:$0xff]  ;;  %v2198_v40 = vld [vmem:[#allocation4 + $0x3c8] sm:$0xff] }
 0x87e   :  { %v2209_v38 = vrot.slane %v10257_v6, 1  ;;  %v2210_v49 = vrot.slane %v10260_v57, 1  ;;  %v10267_v43 = vsel %vm394_vm4, %v2179_v42, %v2173_v33  ;;  %v2187_v50 = vsel %vm402_vm6, %v2185_v39, %v2169_v30  ;;  %v2200_v42 = vld [vmem:[#allocation4 + $0x3d8] sm:$0xff] }
 0x87f   :  { %v2212_v51 = vrot.slane %v10267_v43, 1  ;;  %v2213_v44 = vrot.slane %v2187_v50, 1  ;;  %v2387_v54 = vrot.slane %v10267_v43, 2  ;;  %v2388_v45 = vrot.slane %v2187_v50, 2 }
 0x880   :  { %v2211_v53 = vsel %vm411_vm7, %v2209_v38, %v2210_v49  ;;  %v2486_v56 = vrot.slane %v10257_v6, 3  ;;  %v2487_v5 = vrot.slane %v10260_v57, 3  ;;  %v2489_v8 = vrot.slane %v10267_v43, 3  ;;  %v2201_v38 = vld [vmem:[#allocation4 + $0x3e0] sm:$0xff]  ;;  %v2202_v49 = vld [vmem:[#allocation4 + $0x3e8] sm:$0xff] }
 0x881   :  { %7026 = vmatprep.mubr.f32.mxu1 %v2211_v53  ;;  %v2214_v61 = vsel %vm411_vm7, %v2212_v51, %v2213_v44  ;;  %v10278_v9 = vsel %vm579_vm8, %v2387_v54, %v2388_v45  ;;  %v2490_v10 = vrot.slane %v2187_v50, 3  ;;  %v2588_v4 = vrot.slane %v10257_v6, 4  ;;  %v2203_v51 = vld [vmem:[#allocation4 + $0x3f0] sm:$0xff]  ;;  %v2204_v44 = vld [vmem:[#allocation4 + $0x3f8] sm:$0xff]  ;;  %v2393_v53 = vld [vmem:[#allocation4 + $0x480] sm:$0xff] }
 0x882   :  { %7027 = vmatmul.mubr.f32.vlgmr.msra.gmra.mrb[14].mxu1 %v2214_v61  ;;  %v2589_v7 = vrot.slane %v10260_v57, 4  ;;  %v10285_v12 = vsel %vm402_vm6, %v2486_v56, %v2487_v5  ;;  %v2591_v13 = vrot.slane %v10267_v43, 4  ;;  %v2592_v15 = vrot.slane %v2187_v50, 4  ;;  %v2394_v54 = vld [vmem:[#allocation4 + $0x488] sm:$0xff]  ;;  %v2395_v56 = vld [vmem:[#allocation4 + $0x490] sm:$0xff]  ;;  %v2396_v61 = vld [vmem:[#allocation4 + $0x498] sm:$0xff] }
 0x883   :  { %8577 = vmatpush3.bf16.msra.mxu1 %v10239_v59  ;;  %7061 = vmatprep.mubr.f32.mxu1 %v10257_v6  ;;  %v10289_v17 = vsel %vm402_vm6, %v2489_v8, %v2490_v10  ;;  %v2690_v32 = vrot.slane %v10257_v6, 5  ;;  %v2196_v59 = vld [vmem:[#allocation4 + $0x3b8] sm:$0xff]  ;;  %v2691_v41 = vrot.slane %v10260_v57, 5  ;;  %v2693_v24 = vrot.slane %v10267_v43, 5  ;;  %v2397_v8 = vld [vmem:[#allocation4 + $0x4a0] sm:$0xff]  ;;  %v2398_v10 = vld [vmem:[#allocation4 + $0x4a8] sm:$0xff] }
 0x884   :  { %8579 = vmatprep.subr.bf16.mxu1 %v8578_v52  ;;  %v10292_v19 = vsel %vm399_vm5, %v2588_v4, %v2589_v7  ;;  %v10296_v23 = vsel %vm399_vm5, %v2591_v13, %v2592_v15  ;;  %v2694_v26 = vrot.slane %v2187_v50, 5  ;;  %v2792_v27 = vrot.slane %v10257_v6, 6  ;;  %v2399_v13 = vld [vmem:[#allocation4 + $0x4b0] sm:$0xff]  ;;  %v2400_v15 = vld [vmem:[#allocation4 + $0x4b8] sm:$0xff] }
 0x885   :  { %v2793_v29 = vrot.slane %v10260_v57, 6  ;;  %v2795_v11 = vrot.slane %v10267_v43, 6  ;;  %v10304_v30 = vsel %vm394_vm4, %v2690_v32, %v2691_v41  ;;  %v2796_v33 = vrot.slane %v2187_v50, 6  ;;  %v2405_v41 = vld [vmem:[#allocation4 + $0x4e0] sm:$0xff] }
 0x886   :  { %v8586_v35 = vpack.c.bf16 %v2196_v59, %v2195_v20  ;;  %v10307_v3 = vsel %vm394_vm4, %v2693_v24, %v2694_v26  ;;  %v8590_v46 = vpack.c.bf16 %v2198_v40, %v2197_v48  ;;  %v8594_v39 = vpack.c.bf16 %v2200_v42, %v2199_v47  ;;  %v2403_v20 = vld [vmem:[#allocation4 + $0x4d0] sm:$0xff]  ;;  %v2404_v59 = vld [vmem:[#allocation4 + $0x4d8] sm:$0xff]  ;;  %v2406_v24 = vld [vmem:[#allocation4 + $0x4e8] sm:$0xff] }
 0x887   :  { %8581 = vmatpush3.bf16.msra.mxu1 %v8578_v52  ;;  %v10310_v36 = vsel %vm391_vm3, %v2792_v27, %v2793_v29  ;;  %v10313_v58 = vsel %vm391_vm3, %v2795_v11, %v2796_v33  ;;  %v8598_v50 = vpack.c.bf16 %v2202_v49, %v2201_v38  ;;  %v8602_v52 = vpack.c.bf16 %v2204_v44, %v2203_v51  ;;  %v2407_v27 = vld [vmem:[#allocation4 + $0x4f0] sm:$0xff]  ;;  %v2408_v29 = vld [vmem:[#allocation4 + $0x4f8] sm:$0xff]  ;;  %v2495_v33 = vld [vmem:[#allocation4 + $0x500] sm:$0xff] }
 0x888   :  { %8583 = vmatprep.subr.bf16.mxu1 %v8582_v16  ;;  %v8606_v45 = vpack.c.bf16 %v2394_v54, %v2393_v53  ;;  %v2384_v63 = vrot.slane %v10257_v6, 2  ;;  %v2385_v2 = vrot.slane %v10260_v57, 2  ;;  %v8610_v5 = vpack.c.bf16 %v2396_v61, %v2395_v56  ;;  %v2402_v57 = vld [vmem:[#allocation4 + $0x4c8] sm:$0xff]  ;;  %v2497_v40 = vld [vmem:[#allocation4 + $0x510] sm:$0xff]  ;;  %v2499_v42 = vld [vmem:[#allocation4 + $0x520] sm:$0xff] }
 0x889   :  { %v8614_v7 = vpack.c.bf16 %v2398_v10, %v2397_v8  ;;  %v8618_v6 = vpack.c.bf16 %v2400_v15, %v2399_v13  ;;  %v8630_v26 = vpack.c.bf16 %v2406_v24, %v2405_v41  ;;  %v8634_v11 = vpack.c.bf16 %v2408_v29, %v2407_v27  ;;  %v2501_v49 = vld [vmem:[#allocation4 + $0x530] sm:$0xff]  ;;  %v2503_v44 = vld [vmem:[#allocation4 + $0x540] sm:$0xff]  ;;  %v2508_v61 = vld [vmem:[#allocation4 + $0x568] sm:$0xff] }
 0x88a   :  { %v2386_v4 = vsel %vm579_vm8, %v2384_v63, %v2385_v2  ;;  %v2505_v54 = vld [vmem:[#allocation4 + $0x550] sm:$0xff]  ;;  %v2507_v56 = vld [vmem:[#allocation4 + $0x560] sm:$0xff]  ;;  %v2510_v2 = vld [vmem:[#allocation4 + $0x578] sm:$0xff] }
 0x88b   :  { %8585 = vmatpush3.bf16.msra.mxu1 %v8582_v16  ;;  %v2401_v16 = vld [vmem:[#allocation4 + $0x4c0] sm:$0xff]  ;;  %v2509_v63 = vld [vmem:[#allocation4 + $0x570] sm:$0xff]  ;;  %v2598_v10 = vld [vmem:[#allocation4 + $0x588] sm:$0xff] }
 0x88c   :  { %8587 = vmatprep.subr.bf16.mxu1 %v8586_v35  ;;  %v8622_v32 = vpack.c.bf16 %v2402_v57, %v2401_v16  ;;  %v2597_v8 = vld [vmem:[#allocation4 + $0x580] sm:$0xff]  ;;  %v2600_v13 = vld [vmem:[#allocation4 + $0x598] sm:$0xff]  ;;  %v2602_v16 = vld [vmem:[#allocation4 + $0x5a8] sm:$0xff] }
 0x88d   :  { %v2606_v41 = vld [vmem:[#allocation4 + $0x5c8] sm:$0xff]  ;;  %v2608_v27 = vld [vmem:[#allocation4 + $0x5d8] sm:$0xff]  ;;  %v2609_v29 = vld [vmem:[#allocation4 + $0x5e0] sm:$0xff] }
 0x88f   :  { %8589 = vmatpush3.bf16.msra.mxu1 %v8586_v35  ;;  %v2496_v35 = vld [vmem:[#allocation4 + $0x508] sm:$0xff] }
 0x890   :  { %8591 = vmatprep.subr.bf16.mxu1 %v8590_v46  ;;  %v8638_v48 = vpack.c.bf16 %v2496_v35, %v2495_v33  ;;  %v2611_v33 = vld [vmem:[#allocation4 + $0x5f0] sm:$0xff]  ;;  %v2612_v35 = vld [vmem:[#allocation4 + $0x5f8] sm:$0xff] }
 0x893   :  { %8593 = vmatpush3.bf16.msra.mxu1 %v8590_v46  ;;  %v2498_v46 = vld [vmem:[#allocation4 + $0x518] sm:$0xff] }
 0x894   :  { %8595 = vmatprep.subr.bf16.mxu1 %v8594_v39  ;;  %v8642_v47 = vpack.c.bf16 %v2498_v46, %v2497_v40  ;;  %v2699_v40 = vld [vmem:[#allocation4 + $0x600] sm:$0xff]  ;;  %v2700_v46 = vld [vmem:[#allocation4 + $0x608] sm:$0xff] }
 0x897   :  { %8597 = vmatpush3.bf16.msra.mxu1 %v8594_v39  ;;  %v2500_v39 = vld [vmem:[#allocation4 + $0x528] sm:$0xff] }
 0x898   :  { %8599 = vmatprep.subr.bf16.mxu1 %v8598_v50  ;;  %v8646_v38 = vpack.c.bf16 %v2500_v39, %v2499_v42  ;;  %v2701_v42 = vld [vmem:[#allocation4 + $0x610] sm:$0xff]  ;;  %v2702_v39 = vld [vmem:[#allocation4 + $0x618] sm:$0xff] }
 0x89b   :  { %8601 = vmatpush3.bf16.msra.mxu1 %v8598_v50  ;;  %v2502_v50 = vld [vmem:[#allocation4 + $0x538] sm:$0xff] }
 0x89c   :  { %8603 = vmatprep.subr.bf16.mxu1 %v8602_v52  ;;  %v8650_v51 = vpack.c.bf16 %v2502_v50, %v2501_v49  ;;  %v2703_v49 = vld [vmem:[#allocation4 + $0x620] sm:$0xff]  ;;  %v2704_v50 = vld [vmem:[#allocation4 + $0x628] sm:$0xff] }
 0x89f   :  { %8605 = vmatpush3.bf16.msra.mxu1 %v8602_v52  ;;  %v2504_v52 = vld [vmem:[#allocation4 + $0x548] sm:$0xff] }
 0x8a0   :  { %8607 = vmatprep.subr.bf16.mxu1 %v8606_v45  ;;  %v8654_v53 = vpack.c.bf16 %v2504_v52, %v2503_v44  ;;  %v2705_v44 = vld [vmem:[#allocation4 + $0x630] sm:$0xff]  ;;  %v2706_v52 = vld [vmem:[#allocation4 + $0x638] sm:$0xff] }
 0x8a2   :  { %7062 = vmatmul.mubr.f32.vlgmr.msra.gmra.mrb[14].mxu1 %v10267_v43  ;;  %v8626_v43 = vpack.c.bf16 %v2404_v59, %v2403_v20  ;;  %v2604_v20 = vld [vmem:[#allocation4 + $0x5b8] sm:$0xff] }
 0x8a3   :  { %8609 = vmatpush3.bf16.msra.mxu1 %v8606_v45  ;;  %7096 = vmatprep.mubr.f32.mxu1 %v2386_v4  ;;  %v2506_v45 = vld [vmem:[#allocation4 + $0x558] sm:$0xff]  ;;  %v8670_v4 = vpack.c.bf16 %v2598_v10, %v2597_v8  ;;  %v2801_v10 = vld [vmem:[#allocation4 + $0x680] sm:$0xff] }
 0x8a4   :  { %8611 = vmatprep.subr.bf16.mxu1 %v8610_v5 }
 0x8a7   :  { %8613 = vmatpush3.bf16.msra.mxu1 %v8610_v5  ;;  %v8666_v5 = vpack.c.bf16 %v2510_v2, %v2509_v63  ;;  %v2712_v63 = vld [vmem:[#allocation4 + $0x668] sm:$0xff]  ;;  %v2713_v2 = vld [vmem:[#allocation4 + $0x670] sm:$0xff] }
 0x8a8   :  { %8615 = vmatprep.subr.bf16.mxu1 %v8614_v7 }
 0x8ab   :  { %8617 = vmatpush3.bf16.msra.mxu1 %v8614_v7  ;;  %v2599_v7 = vld [vmem:[#allocation4 + $0x590] sm:$0xff] }
 0x8ac   :  { %8619 = vmatprep.subr.bf16.mxu1 %v8618_v6  ;;  %v8674_v15 = vpack.c.bf16 %v2600_v13, %v2599_v7  ;;  %v2803_v13 = vld [vmem:[#allocation4 + $0x690] sm:$0xff] }
 0x8af   :  { %8621 = vmatpush3.bf16.msra.mxu1 %v8618_v6  ;;  %v2601_v6 = vld [vmem:[#allocation4 + $0x5a0] sm:$0xff] }
 0x8b0   :  { %8623 = vmatprep.subr.bf16.mxu1 %v8622_v32  ;;  %v8678_v57 = vpack.c.bf16 %v2602_v16, %v2601_v6  ;;  %v2805_v16 = vld [vmem:[#allocation4 + $0x6a0] sm:$0xff] }
 0x8b3   :  { %8625 = vmatpush3.bf16.msra.mxu1 %v8622_v32  ;;  %v2603_v32 = vld [vmem:[#allocation4 + $0x5b0] sm:$0xff] }
 0x8b4   :  { %8627 = vmatprep.subr.bf16.mxu1 %v8626_v43  ;;  %v8682_v59 = vpack.c.bf16 %v2604_v20, %v2603_v32  ;;  %v2807_v20 = vld [vmem:[#allocation4 + $0x6b0] sm:$0xff] }
 0x8b7   :  { %8629 = vmatpush3.bf16.msra.mxu1 %v8626_v43  ;;  %v2605_v43 = vld [vmem:[#allocation4 + $0x5c0] sm:$0xff] }
 0x8b8   :  { %8631 = vmatprep.subr.bf16.mxu1 %v8630_v26  ;;  %v8686_v24 = vpack.c.bf16 %v2606_v41, %v2605_v43  ;;  %v2809_v41 = vld [vmem:[#allocation4 + $0x6c0] sm:$0xff] }
 0x8bb   :  { %8633 = vmatpush3.bf16.msra.mxu1 %v8630_v26  ;;  %v2607_v26 = vld [vmem:[#allocation4 + $0x5d0] sm:$0xff] }
 0x8bc   :  { %8635 = vmatprep.subr.bf16.mxu1 %v8634_v11 }
 0x8bf   :  { %8637 = vmatpush3.bf16.msra.mxu1 %v8634_v11  ;;  %v2610_v11 = vld [vmem:[#allocation4 + $0x5e8] sm:$0xff] }
 0x8c0   :  { %8639 = vmatprep.subr.bf16.mxu1 %v8638_v48 }
 0x8c2   :  { %7097 = vmatmul.mubr.f32.vlgmr.msra.gmra.mrb[14].mxu1 %v10278_v9  ;;  %v8658_v9 = vpack.c.bf16 %v2506_v45, %v2505_v54  ;;  %v2707_v54 = vld [vmem:[#allocation4 + $0x640] sm:$0xff]  ;;  %v2708_v45 = vld [vmem:[#allocation4 + $0x648] sm:$0xff] }
 0x8c3   :  { %8641 = vmatpush3.bf16.msra.mxu1 %v8638_v48  ;;  %7131 = vmatprep.mubr.f32.mxu1 %v10285_v12  ;;  %v8662_v12 = vpack.c.bf16 %v2508_v61, %v2507_v56  ;;  %v8698_v48 = vpack.c.bf16 %v2612_v35, %v2611_v33  ;;  %v2709_v56 = vld [vmem:[#allocation4 + $0x650] sm:$0xff]  ;;  %v2710_v61 = vld [vmem:[#allocation4 + $0x658] sm:$0xff] }
 0x8c4   :  { %8643 = vmatprep.subr.bf16.mxu1 %v8642_v47  ;;  %v2816_v33 = vld [vmem:[#allocation4 + $0x6f8] sm:$0xff] }
 0x8c7   :  { %8645 = vmatpush3.bf16.msra.mxu1 %v8642_v47  ;;  %v8702_v47 = vpack.c.bf16 %v2700_v46, %v2699_v40 }
 0x8c8   :  { %8647 = vmatprep.subr.bf16.mxu1 %v8646_v38 }
 0x8cb   :  { %8649 = vmatpush3.bf16.msra.mxu1 %v8646_v38  ;;  %v8706_v38 = vpack.c.bf16 %v2702_v39, %v2701_v42 }
 0x8cc   :  { %8651 = vmatprep.subr.bf16.mxu1 %v8650_v51 }
 0x8cf   :  { %8653 = vmatpush3.bf16.msra.mxu1 %v8650_v51  ;;  %v8710_v51 = vpack.c.bf16 %v2704_v50, %v2703_v49 }
 0x8d0   :  { %8655 = vmatprep.subr.bf16.mxu1 %v8654_v53 }
 0x8d3   :  { %8657 = vmatpush3.bf16.msra.mxu1 %v8654_v53  ;;  %v8714_v53 = vpack.c.bf16 %v2706_v52, %v2705_v44 }
 0x8d4   :  { %8659 = vmatprep.subr.bf16.mxu1 %v8658_v9 }
 0x8d7   :  { %8661 = vmatpush3.bf16.msra.mxu1 %v8658_v9  ;;  %v8718_v9 = vpack.c.bf16 %v2708_v45, %v2707_v54 }
 0x8d8   :  { %8663 = vmatprep.subr.bf16.mxu1 %v8662_v12 }
 0x8db   :  { %8665 = vmatpush3.bf16.msra.mxu1 %v8662_v12  ;;  %v2711_v12 = vld [vmem:[#allocation4 + $0x660] sm:$0xff] }
 0x8dc   :  { %8667 = vmatprep.subr.bf16.mxu1 %v8666_v5 }
 0x8df   :  { %8669 = vmatpush3.bf16.msra.mxu1 %v8666_v5  ;;  %v2714_v5 = vld [vmem:[#allocation4 + $0x678] sm:$0xff] }
 0x8e0   :  { %8671 = vmatprep.subr.bf16.mxu1 %v8670_v4  ;;  %v8730_v8 = vpack.c.bf16 %v2714_v5, %v2713_v2  ;;  %v3142_v5 = vld [vmem:[#allocation4 + $0x780] sm:$0xff] }
 0x8e2   :  { %7132 = vmatmul.mubr.f32.vlgmr.msra.gmra.mrb[14].mxu1 %v10289_v17  ;;  %v8690_v17 = vpack.c.bf16 %v2608_v27, %v2607_v26  ;;  %v2811_v27 = vld [vmem:[#allocation4 + $0x6d0] sm:$0xff] }
 0x8e3   :  { %8673 = vmatpush3.bf16.msra.mxu1 %v8670_v4  ;;  %7166 = vmatprep.mubr.f32.mxu1 %v10292_v19  ;;  %v8694_v19 = vpack.c.bf16 %v2610_v11, %v2609_v29  ;;  %v2802_v4 = vld [vmem:[#allocation4 + $0x688] sm:$0xff]  ;;  %v2813_v29 = vld [vmem:[#allocation4 + $0x6e0] sm:$0xff] }
 0x8e4   :  { %8675 = vmatprep.subr.bf16.mxu1 %v8674_v15  ;;  %v8734_v7 = vpack.c.bf16 %v2802_v4, %v2801_v10  ;;  %v2814_v11 = vld [vmem:[#allocation4 + $0x6e8] sm:$0xff]  ;;  %v3144_v4 = vld [vmem:[#allocation4 + $0x790] sm:$0xff] }
 0x8e7   :  { %8677 = vmatpush3.bf16.msra.mxu1 %v8674_v15  ;;  %v2804_v15 = vld [vmem:[#allocation4 + $0x698] sm:$0xff] }
 0x8e8   :  { %8679 = vmatprep.subr.bf16.mxu1 %v8678_v57  ;;  %v8738_v6 = vpack.c.bf16 %v2804_v15, %v2803_v13  ;;  %v3146_v15 = vld [vmem:[#allocation4 + $0x7a0] sm:$0xff] }
 0x8eb   :  { %8681 = vmatpush3.bf16.msra.mxu1 %v8678_v57  ;;  %v2806_v57 = vld [vmem:[#allocation4 + $0x6a8] sm:$0xff] }
 0x8ec   :  { %8683 = vmatprep.subr.bf16.mxu1 %v8682_v59  ;;  %v8742_v32 = vpack.c.bf16 %v2806_v57, %v2805_v16  ;;  %v3148_v57 = vld [vmem:[#allocation4 + $0x7b0] sm:$0xff] }
 0x8ef   :  { %8685 = vmatpush3.bf16.msra.mxu1 %v8682_v59  ;;  %v2808_v59 = vld [vmem:[#allocation4 + $0x6b8] sm:$0xff] }
 0x8f0   :  { %8687 = vmatprep.subr.bf16.mxu1 %v8686_v24  ;;  %v8746_v43 = vpack.c.bf16 %v2808_v59, %v2807_v20  ;;  %v3150_v59 = vld [vmem:[#allocation4 + $0x7c0] sm:$0xff] }
 0x8f3   :  { %8689 = vmatpush3.bf16.msra.mxu1 %v8686_v24  ;;  %v2810_v24 = vld [vmem:[#allocation4 + $0x6c8] sm:$0xff] }
 0x8f4   :  { %8691 = vmatprep.subr.bf16.mxu1 %v8690_v17  ;;  %v8750_v26 = vpack.c.bf16 %v2810_v24, %v2809_v41  ;;  %v3152_v24 = vld [vmem:[#allocation4 + $0x7d0] sm:$0xff] }
 0x8f7   :  { %8693 = vmatpush3.bf16.msra.mxu1 %v8690_v17  ;;  %v2812_v17 = vld [vmem:[#allocation4 + $0x6d8] sm:$0xff] }
 0x8f8   :  { %8695 = vmatprep.subr.bf16.mxu1 %v8694_v19 }
 0x8fb   :  { %8697 = vmatpush3.bf16.msra.mxu1 %v8694_v19  ;;  %v2815_v19 = vld [vmem:[#allocation4 + $0x6f0] sm:$0xff] }
 0x8fc   :  { %8699 = vmatprep.subr.bf16.mxu1 %v8698_v48  ;;  %v8762_v35 = vpack.c.bf16 %v2816_v33, %v2815_v19  ;;  %v3113_v33 = vld [vmem:[#allocation4 + $0x700] sm:$0xff] }
 0x8ff   :  { %8701 = vmatpush3.bf16.msra.mxu1 %v8698_v48 }
 0x900   :  { %8703 = vmatprep.subr.bf16.mxu1 %v8702_v47 }
 0x902   :  { %7167 = vmatmul.mubr.f32.vlgmr.msra.gmra.mrb[14].mxu1 %v10296_v23  ;;  %v8722_v23 = vpack.c.bf16 %v2710_v61, %v2709_v56 }
 0x903   :  { %8705 = vmatpush3.bf16.msra.mxu1 %v8702_v47  ;;  %7201 = vmatprep.mubr.f32.mxu1 %v10304_v30  ;;  %v8726_v30 = vpack.c.bf16 %v2712_v63, %v2711_v12 }
 0x904   :  { %8707 = vmatprep.subr.bf16.mxu1 %v8706_v38 }
 0x907   :  { %8709 = vmatpush3.bf16.msra.mxu1 %v8706_v38 }
 0x908   :  { %8711 = vmatprep.subr.bf16.mxu1 %v8710_v51 }
 0x90b   :  { %8713 = vmatpush3.bf16.msra.mxu1 %v8710_v51 }
 0x90c   :  { %8715 = vmatprep.subr.bf16.mxu1 %v8714_v53 }
 0x90f   :  { %8717 = vmatpush3.bf16.msra.mxu1 %v8714_v53 }
 0x910   :  { %8719 = vmatprep.subr.bf16.mxu1 %v8718_v9 }
 0x913   :  { %8721 = vmatpush3.bf16.msra.mxu1 %v8718_v9 }
 0x914   :  { %8723 = vmatprep.subr.bf16.mxu1 %v8722_v23 }
 0x917   :  { %8725 = vmatpush3.bf16.msra.mxu1 %v8722_v23 }
 0x918   :  { %8727 = vmatprep.subr.bf16.mxu1 %v8726_v30 }
 0x91b   :  { %8729 = vmatpush3.bf16.msra.mxu1 %v8726_v30 }
 0x91c   :  { %8731 = vmatprep.subr.bf16.mxu1 %v8730_v8 }
 0x91f   :  { %8733 = vmatpush3.bf16.msra.mxu1 %v8730_v8  ;;  %v3143_v8 = vld [vmem:[#allocation4 + $0x788] sm:$0xff] }
 0x920   :  { %8735 = vmatprep.subr.bf16.mxu1 %v8734_v7  ;;  %v8814_v10 = vpack.c.bf16 %v3143_v8, %v3142_v5 }
 0x922   :  { %7202 = vmatmul.mubr.f32.vlgmr.msra.gmra.mrb[14].mxu1 %v10307_v3  ;;  %v8754_v3 = vpack.c.bf16 %v2812_v17, %v2811_v27  ;;  %v3154_v17 = vld [vmem:[#allocation4 + $0x7e0] sm:$0xff] }
 0x923   :  { %8737 = vmatpush3.bf16.msra.mxu1 %v8734_v7  ;;  %7236 = vmatprep.mubr.f32.mxu1 %v10310_v36  ;;  %v8758_v36 = vpack.c.bf16 %v2814_v11, %v2813_v29  ;;  %v3145_v7 = vld [vmem:[#allocation4 + $0x798] sm:$0xff]  ;;  %v3156_v11 = vld [vmem:[#allocation4 + $0x7f0] sm:$0xff] }
 0x924   :  { %8739 = vmatprep.subr.bf16.mxu1 %v8738_v6  ;;  %v8818_v13 = vpack.c.bf16 %v3145_v7, %v3144_v4 }
 0x927   :  { %8741 = vmatpush3.bf16.msra.mxu1 %v8738_v6  ;;  %v3147_v6 = vld [vmem:[#allocation4 + $0x7a8] sm:$0xff] }
 0x928   :  { %8743 = vmatprep.subr.bf16.mxu1 %v8742_v32  ;;  %v8822_v16 = vpack.c.bf16 %v3147_v6, %v3146_v15 }
 0x92b   :  { %8745 = vmatpush3.bf16.msra.mxu1 %v8742_v32  ;;  %v3149_v32 = vld [vmem:[#allocation4 + $0x7b8] sm:$0xff] }
 0x92c   :  { %8747 = vmatprep.subr.bf16.mxu1 %v8746_v43  ;;  %v8826_v20 = vpack.c.bf16 %v3149_v32, %v3148_v57  ;;  %v3115_v57 = vld [vmem:[#allocation4 + $0x710] sm:$0xff]  ;;  %v3116_v32 = vld [vmem:[#allocation4 + $0x718] sm:$0xff] }
 0x92f   :  { %8749 = vmatpush3.bf16.msra.mxu1 %v8746_v43  ;;  %v3151_v43 = vld [vmem:[#allocation4 + $0x7c8] sm:$0xff] }
 0x930   :  { %8751 = vmatprep.subr.bf16.mxu1 %v8750_v26  ;;  %v8830_v41 = vpack.c.bf16 %v3151_v43, %v3150_v59 }
 0x933   :  { %8753 = vmatpush3.bf16.msra.mxu1 %v8750_v26  ;;  %v3153_v26 = vld [vmem:[#allocation4 + $0x7d8] sm:$0xff] }
 0x934   :  { %8755 = vmatprep.subr.bf16.mxu1 %v8754_v3  ;;  %v8834_v27 = vpack.c.bf16 %v3153_v26, %v3152_v24 }
 0x937   :  { %8757 = vmatpush3.bf16.msra.mxu1 %v8754_v3  ;;  %v3155_v3 = vld [vmem:[#allocation4 + $0x7e8] sm:$0xff] }
 0x938   :  { %8759 = vmatprep.subr.bf16.mxu1 %v8758_v36  ;;  %v8838_v29 = vpack.c.bf16 %v3155_v3, %v3154_v17 }
 0x93b   :  { %8761 = vmatpush3.bf16.msra.mxu1 %v8758_v36  ;;  %v3157_v36 = vld [vmem:[#allocation4 + $0x7f8] sm:$0xff] }
 0x93c   :  { %8763 = vmatprep.subr.bf16.mxu1 %v8762_v35  ;;  %v8842_v19 = vpack.c.bf16 %v3157_v36, %v3156_v11  ;;  %v8850_v11 = vpack.c.bf16 %v3116_v32, %v3115_v57  ;;  %v3123_v32 = vld [vmem:[#allocation4 + $0x750] sm:$0xff] }
 0x93f   :  { %8765 = vmatpush3.bf16.msra.mxu1 %v8762_v35  ;;  %v3114_v35 = vld [vmem:[#allocation4 + $0x708] sm:$0xff] }
 0x940   :  { %9038 = vmatprep.subr.bf16.mxu1 %v9777_v0 }
 0x942   :  { %7237 = vmatmul.mubr.f32.vlgmr.msra.gmra.mrb[14].mxu1 %v10313_v58 }
 0x943   :  { %9040 = vmatpush3.bf16.msra.mxu1 %v10018_v14  ;;  %7586 = vmatprep.mubr.msk.f32.mxu1 %vm9778_vm0, %v9779_v1 }
 0x944   :  { %9041 = vmatprep.subr.bf16.mxu1 %v9777_v0 }
 0x947   :  { %9043 = vmatpush3.bf16.msra.mxu1 %v10023_v18 }
 0x948   :  { %9044 = vmatprep.subr.bf16.mxu1 %v9777_v0 }
 0x94b   :  { %9046 = vmatpush3.bf16.msra.mxu1 %v10029_v22 }
 0x94c   :  { %9047 = vmatprep.subr.bf16.mxu1 %v9777_v0 }
 0x94f   :  { %9049 = vmatpush3.bf16.msra.mxu1 %v10033_v25 }
 0x950   :  { %9050 = vmatprep.subr.bf16.mxu1 %v9777_v0 }
 0x953   :  { %9052 = vmatpush3.bf16.msra.mxu1 %v10038_v28 }
 0x954   :  { %9053 = vmatprep.subr.bf16.mxu1 %v9777_v0 }
 0x957   :  { %9055 = vmatpush3.bf16.msra.mxu1 %v10042_v31 }
 0x958   :  { %9056 = vmatprep.subr.bf16.mxu1 %v9777_v0 }
 0x95b   :  { %9058 = vmatpush3.bf16.msra.mxu1 %v10045_v34 }
 0x95c   :  { %9059 = vmatprep.subr.bf16.mxu1 %v9777_v0 }
 0x95f   :  { %9061 = vmatpush3.bf16.msra.mxu1 %v10049_v37 }
 0x960   :  { %9062 = vmatprep.subr.bf16.mxu1 %v9777_v0 }
 0xa15   :  { %v10347_v58 = vpop.f32.mrb[14].mxu1 }
 0xa16   :  { %v10349_v48 = vpop.f32.mrb[15].mxu1 }
 0xa17   :  { %v2896_v40 = vadd.f32 %v10347_v58, %v10349_v48 }
 0xa19   :  { %v2897_v46 = vrot.slane %v2896_v40, 4 }
 0xa1b   :  { %v2898_v47 = vadd.f32 %v2897_v46, %v2896_v40  ;;  %v10376_v40 = vpack.c.bf16 %v3114_v35, %v3113_v33 }
 0xa1d   :  { %v2899_v42 = vrot.slane %v2898_v47, 2 }
 0xa1f   :  { %v2900_v39 = vadd.f32 %v2899_v42, %v2898_v47 }
 0xa21   :  { %v2901_v38 = vrot.slane %v2900_v39, 1 }
 0xa23   :  { %v2902_v49 = vadd.f32 %v2901_v38, %v2900_v39  ;;  %v5698_v38 = vld [vmem:[%s10735_s5 + $0x4] sm:$0x3] }
 0xa25   :  { %7272 = vmatmul.mubr.f32.vlgmr.msra.gmra.mrb[4].mxu0 %v2902_v49 }
 0xa26   :  { %8792 = vmatpush3.bf16.msra.mxu0 %v10018_v14  ;;  %7306 = vmatprep.mubr.msk.f32.mxu0 %vm9778_vm0, %v9779_v1 }
 0xa27   :  { %8793 = vmatprep.subr.bf16.mxu0 %v9777_v0 }
 0xa2a   :  { %8795 = vmatpush3.bf16.msra.mxu0 %v10023_v18 }
 0xa2b   :  { %8796 = vmatprep.subr.bf16.mxu0 %v9777_v0 }
 0xa2e   :  { %8798 = vmatpush3.bf16.msra.mxu0 %v10029_v22 }
 0xa2f   :  { %8799 = vmatprep.subr.bf16.mxu0 %v9777_v0 }
 0xa32   :  { %8801 = vmatpush3.bf16.msra.mxu0 %v10033_v25 }
 0xa33   :  { %8802 = vmatprep.subr.bf16.mxu0 %v9777_v0 }
 0xa36   :  { %8804 = vmatpush3.bf16.msra.mxu0 %v10038_v28 }
 0xa37   :  { %8805 = vmatprep.subr.bf16.mxu0 %v9777_v0 }
 0xa3a   :  { %8807 = vmatpush3.bf16.msra.mxu0 %v10042_v31 }
 0xa3b   :  { %8808 = vmatprep.subr.bf16.mxu0 %v9777_v0 }
 0xa3e   :  { %8810 = vmatpush3.bf16.msra.mxu0 %v10045_v34 }
 0xa3f   :  { %8811 = vmatprep.subr.bf16.mxu0 %v9777_v0 }
 0xa42   :  { %8813 = vmatpush3.bf16.msra.mxu0 %v10049_v37 }
 0xa43   :  { %8815 = vmatprep.subr.bf16.mxu0 %v8814_v10 }
 0xaf8   :  { %v2969_v50 = vpop.f32.mrb[4].mxu0 }
 0xaf9   :  { %v10370_v51 = vmul.f32 0.0078125, %v2969_v50  ;;  %v7273_v44 = vpop.f32.mrb[5].mxu0 }
 0xafb   :  { %v2977_v52 = vrot.slane %v10370_v51, %v9930_v21 }
 0xafd   :  { %v2978_v53 = vsub.f32 %v10349_v48, %v2977_v52  ;;  %v2979_v54 = vsub.f32 %v10347_v58, %v2977_v52 }
 0xaff   :  { %v2980_v45 = vmul.f32 %v2978_v53, %v2978_v53  ;;  %v2981_v9 = vmul.f32 %v2979_v54, %v2979_v54 }
 0xb01   :  { %v2982_v56 = vadd.f32 %v2981_v9, %v2980_v45 }
 0xb03   :  { %v2983_v61 = vrot.slane %v2982_v56, 4 }
 0xb05   :  { %v2984_v23 = vadd.f32 %v2983_v61, %v2982_v56 }
 0xb07   :  { %v2985_v12 = vrot.slane %v2984_v23, 2 }
 0xb09   :  { %v2986_v63 = vadd.f32 %v2985_v12, %v2984_v23 }
 0xb0b   :  { %v2987_v30 = vrot.slane %v2986_v63, 1 }
 0xb0d   :  { %v2988_v2 = vadd.f32 %v2987_v30, %v2986_v63 }
 0xb0f   :  { %7307 = vmatmul.mubr.f32.vlgmr.msra.gmra.mrb[6].mxu0 %v2988_v2 }
 0xb10   :  { %8817 = vmatpush3.bf16.msra.mxu0 %v8814_v10 }
 0xb11   :  { %8819 = vmatprep.subr.bf16.mxu0 %v8818_v13 }
 0xb14   :  { %8821 = vmatpush3.bf16.msra.mxu0 %v8818_v13 }
 0xb15   :  { %8823 = vmatprep.subr.bf16.mxu0 %v8822_v16 }
 0xb18   :  { %8825 = vmatpush3.bf16.msra.mxu0 %v8822_v16 }
 0xb19   :  { %8827 = vmatprep.subr.bf16.mxu0 %v8826_v20 }
 0xb1c   :  { %8829 = vmatpush3.bf16.msra.mxu0 %v8826_v20 }
 0xb1d   :  { %8831 = vmatprep.subr.bf16.mxu0 %v8830_v41 }
 0xb20   :  { %8833 = vmatpush3.bf16.msra.mxu0 %v8830_v41 }
 0xb21   :  { %8835 = vmatprep.subr.bf16.mxu0 %v8834_v27 }
 0xb24   :  { %8837 = vmatpush3.bf16.msra.mxu0 %v8834_v27 }
 0xb25   :  { %8839 = vmatprep.subr.bf16.mxu0 %v8838_v29 }
 0xb28   :  { %8841 = vmatpush3.bf16.msra.mxu0 %v8838_v29 }
 0xb29   :  { %8843 = vmatprep.subr.bf16.mxu0 %v8842_v19 }
 0xb2c   :  { %8845 = vmatpush3.bf16.msra.mxu0 %v8842_v19 }
 0xb2d   :  { %8847 = vmatprep.subr.bf16.mxu0 %v10376_v40 }
 0xbe2   :  { %v3055_v46 = vpop.f32.mrb[6].mxu0 }
 0xbe3   :  { %v3059_v47 = vmul.f32 0.0078125, %v3055_v46  ;;  %v7308_v42 = vpop.f32.mrb[7].mxu0 }
 0xbe4   :  { %v3118_v42 = vld [vmem:[#allocation4 + $0x728] sm:$0xff] }
 0xbe5   :  { %v3060_v39 = vadd.f32 1e-05, %v3059_v47  ;;  %v3117_v47 = vld [vmem:[#allocation4 + $0x720] sm:$0xff] }
 0xbe7   :  { %9671 = vrsqrt.f32 %v3060_v39 }
 0xbf1   :  { %v9672_v49 = vpop.eup %9671 }
 0xbf2   :  { %v3062_v50 = vmul.f32 %v9672_v49, %v5698_v38 }
 0xbf4   :  { %v3063_v44 = vmul.f32 %v3062_v50, %v10370_v51  ;;  %v3071_v52 = vrot.slane %v3062_v50, %v9930_v21 }
 0xbf6   :  { %v3065_v53 = vrot.slane %v3063_v44, 7  ;;  %v3072_v54 = vmul.f32 %v3071_v52, %v10349_v48  ;;  %v3073_v45 = vmul.f32 %v10347_v58, %v3071_v52 }
 0xbf8   :  { %v3067_v9 = vsub.f32 %v5698_v38, %v3065_v53 }
 0xbfa   :  { %v3077_v56 = vrot.slane %v3067_v9, %v9942_v55  ;;  %v8854_v9 = vpack.c.bf16 %v3118_v42, %v3117_v47 }
 0xbfc   :  { %v3078_v61 = vadd.f32 %v3077_v56, %v3072_v54  ;;  %v3079_v23 = vadd.f32 %v3077_v56, %v3073_v45 }
 0xbfe   :  { %v3080_v12 = vmax.f32 %v3078_v61, 0.0  ;;  %v3081_v63 = vmax.f32 %v3079_v23, 0.0 }
 0xc00   :  { %v3084_v30 = vrot.slane %v3080_v12, 3  ;;  %v3088_v2 = vrot.slane %v3080_v12, 1  ;;  %v3092_v5 = vrot.slane %v3080_v12, 7  ;;  %v3096_v8 = vrot.slane %v3080_v12, 5  ;;  %v3119_v12 = vld [vmem:[#allocation4 + $0x730] sm:$0xff] }
 0xc01   :  { %v3085_v10 = vrot.slane %v3081_v63, 3  ;;  %v3089_v51 = vrot.slane %v3081_v63, 1  ;;  %v3093_v4 = vrot.slane %v3081_v63, 7  ;;  %v3097_v7 = vrot.slane %v3081_v63, 5 }
 0xc02   :  { %v3100_v13 = vsel %vm388_vm2, %v3084_v30, %v3088_v2  ;;  %v3106_v48 = vsel %vm394_vm4, %v3096_v8, %v3084_v30 }
 0xc03   :  { %v3102_v58 = vsel %vm391_vm3, %v3100_v13, %v3092_v5  ;;  %v3108_v15 = vsel %vm399_vm5, %v3106_v48, %v3088_v2  ;;  %v3101_v6 = vsel %vm388_vm2, %v3085_v10, %v3089_v51  ;;  %v3107_v16 = vsel %vm394_vm4, %v3097_v7, %v3085_v10 }
 0xc04   :  { %v10394_v20 = vsel %vm394_vm4, %v3102_v58, %v3096_v8  ;;  %v10397_v59 = vsel %vm402_vm6, %v3108_v15, %v3092_v5  ;;  %v3103_v43 = vsel %vm391_vm3, %v3101_v6, %v3093_v4  ;;  %v3109_v41 = vsel %vm399_vm5, %v3107_v16, %v3089_v51  ;;  %v3121_v15 = vld [vmem:[#allocation4 + $0x740] sm:$0xff]  ;;  %v3122_v6 = vld [vmem:[#allocation4 + $0x748] sm:$0xff] }
 0xc05   :  { %v3133_v24 = vrot.slane %v10394_v20, 1  ;;  %v3134_v26 = vrot.slane %v10397_v59, 1  ;;  %v10404_v27 = vsel %vm394_vm4, %v3103_v43, %v3097_v7  ;;  %v3111_v17 = vsel %vm402_vm6, %v3109_v41, %v3093_v4  ;;  %v3124_v43 = vld [vmem:[#allocation4 + $0x758] sm:$0xff] }
 0xc06   :  { %v3136_v3 = vrot.slane %v10404_v27, 1  ;;  %v3137_v29 = vrot.slane %v3111_v17, 1  ;;  %v3311_v19 = vrot.slane %v10404_v27, 2  ;;  %v3312_v33 = vrot.slane %v3111_v17, 2 }
 0xc07   :  { %v3135_v36 = vsel %vm411_vm7, %v3133_v24, %v3134_v26  ;;  %v3410_v35 = vrot.slane %v10394_v20, 3  ;;  %v3411_v39 = vrot.slane %v10397_v59, 3  ;;  %v3413_v38 = vrot.slane %v10404_v27, 3  ;;  %v3125_v24 = vld [vmem:[#allocation4 + $0x760] sm:$0xff]  ;;  %v3126_v26 = vld [vmem:[#allocation4 + $0x768] sm:$0xff] }
 0xc08   :  { %7341 = vmatprep.mubr.f32.mxu0 %v3135_v36  ;;  %v3138_v46 = vsel %vm411_vm7, %v3136_v3, %v3137_v29  ;;  %v10415_v49 = vsel %vm579_vm8, %v3311_v19, %v3312_v33  ;;  %v3414_v50 = vrot.slane %v3111_v17, 3  ;;  %v3512_v44 = vrot.slane %v10394_v20, 4  ;;  %v3127_v3 = vld [vmem:[#allocation4 + $0x770] sm:$0xff]  ;;  %v3128_v29 = vld [vmem:[#allocation4 + $0x778] sm:$0xff]  ;;  %v3317_v36 = vld [vmem:[#allocation4 + $0x800] sm:$0xff] }
 0xc09   :  { %7342 = vmatmul.mubr.f32.vlgmr.msra.gmra.mrb[8].mxu0 %v3138_v46  ;;  %v3513_v52 = vrot.slane %v10397_v59, 4  ;;  %v10422_v53 = vsel %vm402_vm6, %v3410_v35, %v3411_v39  ;;  %v3515_v54 = vrot.slane %v10404_v27, 4  ;;  %v3516_v45 = vrot.slane %v3111_v17, 4  ;;  %v3318_v19 = vld [vmem:[#allocation4 + $0x808] sm:$0xff]  ;;  %v3319_v35 = vld [vmem:[#allocation4 + $0x810] sm:$0xff]  ;;  %v3320_v46 = vld [vmem:[#allocation4 + $0x818] sm:$0xff] }
 0xc0a   :  { %8849 = vmatpush3.bf16.msra.mxu0 %v10376_v40  ;;  %7376 = vmatprep.mubr.f32.mxu0 %v10394_v20  ;;  %v10426_v56 = vsel %vm402_vm6, %v3413_v38, %v3414_v50  ;;  %v3614_v23 = vrot.slane %v10394_v20, 5  ;;  %v3120_v40 = vld [vmem:[#allocation4 + $0x738] sm:$0xff]  ;;  %v3615_v30 = vrot.slane %v10397_v59, 5  ;;  %v3617_v2 = vrot.slane %v10404_v27, 5  ;;  %v3321_v38 = vld [vmem:[#allocation4 + $0x820] sm:$0xff]  ;;  %v3322_v50 = vld [vmem:[#allocation4 + $0x828] sm:$0xff] }
 0xc0b   :  { %8851 = vmatprep.subr.bf16.mxu0 %v8850_v11  ;;  %v10429_v61 = vsel %vm399_vm5, %v3512_v44, %v3513_v52  ;;  %v10433_v63 = vsel %vm399_vm5, %v3515_v54, %v3516_v45  ;;  %v3618_v5 = vrot.slane %v3111_v17, 5  ;;  %v3716_v8 = vrot.slane %v10394_v20, 6  ;;  %v3323_v54 = vld [vmem:[#allocation4 + $0x830] sm:$0xff]  ;;  %v3324_v45 = vld [vmem:[#allocation4 + $0x838] sm:$0xff] }
 0xc0c   :  { %v3717_v10 = vrot.slane %v10397_v59, 6  ;;  %v3719_v51 = vrot.slane %v10404_v27, 6  ;;  %v10441_v4 = vsel %vm394_vm4, %v3614_v23, %v3615_v30  ;;  %v3720_v7 = vrot.slane %v3111_v17, 6  ;;  %v3329_v30 = vld [vmem:[#allocation4 + $0x860] sm:$0xff] }
 0xc0d   :  { %v8858_v13 = vpack.c.bf16 %v3120_v40, %v3119_v12  ;;  %v10444_v48 = vsel %vm394_vm4, %v3617_v2, %v3618_v5  ;;  %v8862_v57 = vpack.c.bf16 %v3122_v6, %v3121_v15  ;;  %v8866_v41 = vpack.c.bf16 %v3124_v43, %v3123_v32  ;;  %v3327_v12 = vld [vmem:[#allocation4 + $0x850] sm:$0xff]  ;;  %v3328_v40 = vld [vmem:[#allocation4 + $0x858] sm:$0xff]  ;;  %v3330_v2 = vld [vmem:[#allocation4 + $0x868] sm:$0xff] }
 0xc0e   :  { %8853 = vmatpush3.bf16.msra.mxu0 %v8850_v11  ;;  %v10447_v58 = vsel %vm391_vm3, %v3716_v8, %v3717_v10  ;;  %v10450_v16 = vsel %vm391_vm3, %v3719_v51, %v3720_v7  ;;  %v8870_v17 = vpack.c.bf16 %v3126_v26, %v3125_v24  ;;  %v8874_v11 = vpack.c.bf16 %v3128_v29, %v3127_v3  ;;  %v3331_v8 = vld [vmem:[#allocation4 + $0x870] sm:$0xff]  ;;  %v3332_v10 = vld [vmem:[#allocation4 + $0x878] sm:$0xff]  ;;  %v3419_v7 = vld [vmem:[#allocation4 + $0x880] sm:$0xff] }
 0xc0f   :  { %8855 = vmatprep.subr.bf16.mxu0 %v8854_v9  ;;  %v8878_v33 = vpack.c.bf16 %v3318_v19, %v3317_v36  ;;  %v3308_v47 = vrot.slane %v10394_v20, 2  ;;  %v3309_v42 = vrot.slane %v10397_v59, 2  ;;  %v8882_v39 = vpack.c.bf16 %v3320_v46, %v3319_v35  ;;  %v3326_v59 = vld [vmem:[#allocation4 + $0x848] sm:$0xff]  ;;  %v3421_v6 = vld [vmem:[#allocation4 + $0x890] sm:$0xff]  ;;  %v3423_v43 = vld [vmem:[#allocation4 + $0x8a0] sm:$0xff] }
 0xc10   :  { %v8886_v52 = vpack.c.bf16 %v3322_v50, %v3321_v38  ;;  %v8890_v20 = vpack.c.bf16 %v3324_v45, %v3323_v54  ;;  %v8902_v5 = vpack.c.bf16 %v3330_v2, %v3329_v30  ;;  %v8906_v51 = vpack.c.bf16 %v3332_v10, %v3331_v8  ;;  %v3425_v26 = vld [vmem:[#allocation4 + $0x8b0] sm:$0xff]  ;;  %v3427_v29 = vld [vmem:[#allocation4 + $0x8c0] sm:$0xff]  ;;  %v3432_v46 = vld [vmem:[#allocation4 + $0x8e8] sm:$0xff] }
 0xc11   :  { %v3310_v44 = vsel %vm579_vm8, %v3308_v47, %v3309_v42  ;;  %v3429_v19 = vld [vmem:[#allocation4 + $0x8d0] sm:$0xff]  ;;  %v3431_v35 = vld [vmem:[#allocation4 + $0x8e0] sm:$0xff]  ;;  %v3434_v42 = vld [vmem:[#allocation4 + $0x8f8] sm:$0xff] }
 0xc12   :  { %8857 = vmatpush3.bf16.msra.mxu0 %v8854_v9  ;;  %v3325_v9 = vld [vmem:[#allocation4 + $0x840] sm:$0xff]  ;;  %v3433_v47 = vld [vmem:[#allocation4 + $0x8f0] sm:$0xff]  ;;  %v3522_v50 = vld [vmem:[#allocation4 + $0x908] sm:$0xff] }
 0xc13   :  { %8859 = vmatprep.subr.bf16.mxu0 %v8858_v13  ;;  %v8894_v23 = vpack.c.bf16 %v3326_v59, %v3325_v9  ;;  %v3521_v38 = vld [vmem:[#allocation4 + $0x900] sm:$0xff]  ;;  %v3524_v54 = vld [vmem:[#allocation4 + $0x918] sm:$0xff]  ;;  %v3526_v9 = vld [vmem:[#allocation4 + $0x928] sm:$0xff] }
 0xc14   :  { %v3530_v30 = vld [vmem:[#allocation4 + $0x948] sm:$0xff]  ;;  %v3532_v8 = vld [vmem:[#allocation4 + $0x958] sm:$0xff]  ;;  %v3533_v10 = vld [vmem:[#allocation4 + $0x960] sm:$0xff] }
 0xc16   :  { %8861 = vmatpush3.bf16.msra.mxu0 %v8858_v13  ;;  %v3420_v13 = vld [vmem:[#allocation4 + $0x888] sm:$0xff] }
 0xc17   :  { %8863 = vmatprep.subr.bf16.mxu0 %v8862_v57  ;;  %v8910_v15 = vpack.c.bf16 %v3420_v13, %v3419_v7  ;;  %v3535_v7 = vld [vmem:[#allocation4 + $0x970] sm:$0xff]  ;;  %v3536_v13 = vld [vmem:[#allocation4 + $0x978] sm:$0xff] }
 0xc1a   :  { %8865 = vmatpush3.bf16.msra.mxu0 %v8862_v57  ;;  %v3422_v57 = vld [vmem:[#allocation4 + $0x898] sm:$0xff] }
 0xc1b   :  { %8867 = vmatprep.subr.bf16.mxu0 %v8866_v41  ;;  %v8914_v32 = vpack.c.bf16 %v3422_v57, %v3421_v6  ;;  %v3623_v6 = vld [vmem:[#allocation4 + $0x980] sm:$0xff]  ;;  %v3624_v57 = vld [vmem:[#allocation4 + $0x988] sm:$0xff] }
 0xc1e   :  { %8869 = vmatpush3.bf16.msra.mxu0 %v8866_v41  ;;  %v3424_v41 = vld [vmem:[#allocation4 + $0x8a8] sm:$0xff] }
 0xc1f   :  { %8871 = vmatprep.subr.bf16.mxu0 %v8870_v17  ;;  %v8918_v24 = vpack.c.bf16 %v3424_v41, %v3423_v43  ;;  %v3625_v43 = vld [vmem:[#allocation4 + $0x990] sm:$0xff]  ;;  %v3626_v41 = vld [vmem:[#allocation4 + $0x998] sm:$0xff] }
 0xc22   :  { %8873 = vmatpush3.bf16.msra.mxu0 %v8870_v17  ;;  %v3426_v17 = vld [vmem:[#allocation4 + $0x8b8] sm:$0xff] }
 0xc23   :  { %8875 = vmatprep.subr.bf16.mxu0 %v8874_v11  ;;  %v8922_v3 = vpack.c.bf16 %v3426_v17, %v3425_v26  ;;  %v3627_v26 = vld [vmem:[#allocation4 + $0x9a0] sm:$0xff]  ;;  %v3628_v17 = vld [vmem:[#allocation4 + $0x9a8] sm:$0xff] }
 0xc26   :  { %8877 = vmatpush3.bf16.msra.mxu0 %v8874_v11  ;;  %v3428_v11 = vld [vmem:[#allocation4 + $0x8c8] sm:$0xff] }
 0xc27   :  { %8879 = vmatprep.subr.bf16.mxu0 %v8878_v33  ;;  %v8926_v36 = vpack.c.bf16 %v3428_v11, %v3427_v29  ;;  %v3629_v29 = vld [vmem:[#allocation4 + $0x9b0] sm:$0xff]  ;;  %v3630_v11 = vld [vmem:[#allocation4 + $0x9b8] sm:$0xff] }
 0xc29   :  { %7377 = vmatmul.mubr.f32.vlgmr.msra.gmra.mrb[8].mxu0 %v10404_v27  ;;  %v8898_v27 = vpack.c.bf16 %v3328_v40, %v3327_v12  ;;  %v3528_v12 = vld [vmem:[#allocation4 + $0x938] sm:$0xff] }
 0xc2a   :  { %8881 = vmatpush3.bf16.msra.mxu0 %v8878_v33  ;;  %7411 = vmatprep.mubr.f32.mxu0 %v3310_v44  ;;  %v3430_v33 = vld [vmem:[#allocation4 + $0x8d8] sm:$0xff]  ;;  %v8942_v44 = vpack.c.bf16 %v3522_v50, %v3521_v38  ;;  %v3725_v50 = vld [vmem:[#allocation4 + $0xa00] sm:$0xff] }
 0xc2b   :  { %8883 = vmatprep.subr.bf16.mxu0 %v8882_v39 }
 0xc2e   :  { %8885 = vmatpush3.bf16.msra.mxu0 %v8882_v39  ;;  %v8938_v39 = vpack.c.bf16 %v3434_v42, %v3433_v47  ;;  %v3636_v47 = vld [vmem:[#allocation4 + $0x9e8] sm:$0xff]  ;;  %v3637_v42 = vld [vmem:[#allocation4 + $0x9f0] sm:$0xff] }
 0xc2f   :  { %8887 = vmatprep.subr.bf16.mxu0 %v8886_v52 }
 0xc32   :  { %8889 = vmatpush3.bf16.msra.mxu0 %v8886_v52  ;;  %v3523_v52 = vld [vmem:[#allocation4 + $0x910] sm:$0xff] }
 0xc33   :  { %8891 = vmatprep.subr.bf16.mxu0 %v8890_v20  ;;  %v8946_v45 = vpack.c.bf16 %v3524_v54, %v3523_v52  ;;  %v3727_v54 = vld [vmem:[#allocation4 + $0xa10] sm:$0xff] }
 0xc36   :  { %8893 = vmatpush3.bf16.msra.mxu0 %v8890_v20  ;;  %v3525_v20 = vld [vmem:[#allocation4 + $0x920] sm:$0xff] }
 0xc37   :  { %8895 = vmatprep.subr.bf16.mxu0 %v8894_v23  ;;  %v8950_v59 = vpack.c.bf16 %v3526_v9, %v3525_v20  ;;  %v3729_v9 = vld [vmem:[#allocation4 + $0xa20] sm:$0xff] }
 0xc3a   :  { %8897 = vmatpush3.bf16.msra.mxu0 %v8894_v23  ;;  %v3527_v23 = vld [vmem:[#allocation4 + $0x930] sm:$0xff] }
 0xc3b   :  { %8899 = vmatprep.subr.bf16.mxu0 %v8898_v27  ;;  %v8954_v40 = vpack.c.bf16 %v3528_v12, %v3527_v23  ;;  %v3731_v12 = vld [vmem:[#allocation4 + $0xa30] sm:$0xff] }
 0xc3e   :  { %8901 = vmatpush3.bf16.msra.mxu0 %v8898_v27  ;;  %v3529_v27 = vld [vmem:[#allocation4 + $0x940] sm:$0xff] }
 0xc3f   :  { %8903 = vmatprep.subr.bf16.mxu0 %v8902_v5  ;;  %v8958_v2 = vpack.c.bf16 %v3530_v30, %v3529_v27  ;;  %v3733_v30 = vld [vmem:[#allocation4 + $0xa40] sm:$0xff] }
 0xc42   :  { %8905 = vmatpush3.bf16.msra.mxu0 %v8902_v5  ;;  %v3531_v5 = vld [vmem:[#allocation4 + $0x950] sm:$0xff] }
 0xc43   :  { %8907 = vmatprep.subr.bf16.mxu0 %v8906_v51 }
 0xc46   :  { %8909 = vmatpush3.bf16.msra.mxu0 %v8906_v51  ;;  %v3534_v51 = vld [vmem:[#allocation4 + $0x968] sm:$0xff] }
 0xc47   :  { %8911 = vmatprep.subr.bf16.mxu0 %v8910_v15 }
 0xc49   :  { %7412 = vmatmul.mubr.f32.vlgmr.msra.gmra.mrb[8].mxu0 %v10415_v49  ;;  %v8930_v49 = vpack.c.bf16 %v3430_v33, %v3429_v19  ;;  %v3631_v19 = vld [vmem:[#allocation4 + $0x9c0] sm:$0xff]  ;;  %v3632_v33 = vld [vmem:[#allocation4 + $0x9c8] sm:$0xff] }
 0xc4a   :  { %8913 = vmatpush3.bf16.msra.mxu0 %v8910_v15  ;;  %7446 = vmatprep.mubr.f32.mxu0 %v10422_v53  ;;  %v8934_v53 = vpack.c.bf16 %v3432_v46, %v3431_v35  ;;  %v8970_v15 = vpack.c.bf16 %v3536_v13, %v3535_v7  ;;  %v3633_v35 = vld [vmem:[#allocation4 + $0x9d0] sm:$0xff]  ;;  %v3634_v46 = vld [vmem:[#allocation4 + $0x9d8] sm:$0xff] }
 0xc4b   :  { %8915 = vmatprep.subr.bf16.mxu0 %v8914_v32  ;;  %v3740_v7 = vld [vmem:[#allocation4 + $0xa78] sm:$0xff] }
 0xc4e   :  { %8917 = vmatpush3.bf16.msra.mxu0 %v8914_v32  ;;  %v8974_v32 = vpack.c.bf16 %v3624_v57, %v3623_v6 }
 0xc4f   :  { %8919 = vmatprep.subr.bf16.mxu0 %v8918_v24 }
 0xc52   :  { %8921 = vmatpush3.bf16.msra.mxu0 %v8918_v24  ;;  %v8978_v24 = vpack.c.bf16 %v3626_v41, %v3625_v43 }
 0xc53   :  { %8923 = vmatprep.subr.bf16.mxu0 %v8922_v3 }
 0xc56   :  { %8925 = vmatpush3.bf16.msra.mxu0 %v8922_v3  ;;  %v8982_v3 = vpack.c.bf16 %v3628_v17, %v3627_v26 }
 0xc57   :  { %8927 = vmatprep.subr.bf16.mxu0 %v8926_v36 }
 0xc5a   :  { %8929 = vmatpush3.bf16.msra.mxu0 %v8926_v36  ;;  %v8986_v36 = vpack.c.bf16 %v3630_v11, %v3629_v29 }
 0xc5b   :  { %8931 = vmatprep.subr.bf16.mxu0 %v8930_v49 }
 0xc5e   :  { %8933 = vmatpush3.bf16.msra.mxu0 %v8930_v49  ;;  %v8990_v49 = vpack.c.bf16 %v3632_v33, %v3631_v19 }
 0xc5f   :  { %8935 = vmatprep.subr.bf16.mxu0 %v8934_v53 }
 0xc62   :  { %8937 = vmatpush3.bf16.msra.mxu0 %v8934_v53  ;;  %v3635_v53 = vld [vmem:[#allocation4 + $0x9e0] sm:$0xff] }
 0xc63   :  { %8939 = vmatprep.subr.bf16.mxu0 %v8938_v39 }
 0xc66   :  { %8941 = vmatpush3.bf16.msra.mxu0 %v8938_v39  ;;  %v3638_v39 = vld [vmem:[#allocation4 + $0x9f8] sm:$0xff] }
 0xc67   :  { %8943 = vmatprep.subr.bf16.mxu0 %v8942_v44  ;;  %v9002_v38 = vpack.c.bf16 %v3638_v39, %v3637_v42  ;;  %v4068_v39 = vld [vmem:[#allocation4 + $0xb00] sm:$0xff] }
 0xc69   :  { %7447 = vmatmul.mubr.f32.vlgmr.msra.gmra.mrb[8].mxu0 %v10426_v56  ;;  %v8962_v56 = vpack.c.bf16 %v3532_v8, %v3531_v5  ;;  %v3735_v8 = vld [vmem:[#allocation4 + $0xa50] sm:$0xff] }
 0xc6a   :  { %8945 = vmatpush3.bf16.msra.mxu0 %v8942_v44  ;;  %7481 = vmatprep.mubr.f32.mxu0 %v10429_v61  ;;  %v8966_v61 = vpack.c.bf16 %v3534_v51, %v3533_v10  ;;  %v3726_v44 = vld [vmem:[#allocation4 + $0xa08] sm:$0xff]  ;;  %v3737_v10 = vld [vmem:[#allocation4 + $0xa60] sm:$0xff] }
 0xc6b   :  { %8947 = vmatprep.subr.bf16.mxu0 %v8946_v45  ;;  %v9006_v52 = vpack.c.bf16 %v3726_v44, %v3725_v50  ;;  %v3738_v51 = vld [vmem:[#allocation4 + $0xa68] sm:$0xff]  ;;  %v4070_v44 = vld [vmem:[#allocation4 + $0xb10] sm:$0xff] }
 0xc6e   :  { %8949 = vmatpush3.bf16.msra.mxu0 %v8946_v45  ;;  %v3728_v45 = vld [vmem:[#allocation4 + $0xa18] sm:$0xff] }
 0xc6f   :  { %8951 = vmatprep.subr.bf16.mxu0 %v8950_v59  ;;  %v9010_v20 = vpack.c.bf16 %v3728_v45, %v3727_v54  ;;  %v4072_v45 = vld [vmem:[#allocation4 + $0xb20] sm:$0xff] }
 0xc72   :  { %8953 = vmatpush3.bf16.msra.mxu0 %v8950_v59  ;;  %v3730_v59 = vld [vmem:[#allocation4 + $0xa28] sm:$0xff] }
 0xc73   :  { %8955 = vmatprep.subr.bf16.mxu0 %v8954_v40  ;;  %v9014_v23 = vpack.c.bf16 %v3730_v59, %v3729_v9  ;;  %v4074_v59 = vld [vmem:[#allocation4 + $0xb30] sm:$0xff] }
 0xc76   :  { %8957 = vmatpush3.bf16.msra.mxu0 %v8954_v40  ;;  %v3732_v40 = vld [vmem:[#allocation4 + $0xa38] sm:$0xff] }
 0xc77   :  { %8959 = vmatprep.subr.bf16.mxu0 %v8958_v2  ;;  %v9018_v27 = vpack.c.bf16 %v3732_v40, %v3731_v12  ;;  %v4076_v40 = vld [vmem:[#allocation4 + $0xb40] sm:$0xff] }
 0xc7a   :  { %8961 = vmatpush3.bf16.msra.mxu0 %v8958_v2  ;;  %v3734_v2 = vld [vmem:[#allocation4 + $0xa48] sm:$0xff] }
 0xc7b   :  { %8963 = vmatprep.subr.bf16.mxu0 %v8962_v56  ;;  %v9022_v5 = vpack.c.bf16 %v3734_v2, %v3733_v30  ;;  %v4078_v2 = vld [vmem:[#allocation4 + $0xb50] sm:$0xff] }
 0xc7e   :  { %8965 = vmatpush3.bf16.msra.mxu0 %v8962_v56  ;;  %v3736_v56 = vld [vmem:[#allocation4 + $0xa58] sm:$0xff] }
 0xc7f   :  { %8967 = vmatprep.subr.bf16.mxu0 %v8966_v61 }
 0xc82   :  { %8969 = vmatpush3.bf16.msra.mxu0 %v8966_v61  ;;  %v3739_v61 = vld [vmem:[#allocation4 + $0xa70] sm:$0xff] }
 0xc83   :  { %8971 = vmatprep.subr.bf16.mxu0 %v8970_v15  ;;  %v9034_v13 = vpack.c.bf16 %v3740_v7, %v3739_v61  ;;  %v4039_v7 = vld [vmem:[#allocation4 + $0xa80] sm:$0xff] }
 0xc86   :  { %8973 = vmatpush3.bf16.msra.mxu0 %v8970_v15 }
 0xc87   :  { %8975 = vmatprep.subr.bf16.mxu0 %v8974_v32 }
 0xc89   :  { %7482 = vmatmul.mubr.f32.vlgmr.msra.gmra.mrb[8].mxu0 %v10433_v63  ;;  %v8994_v63 = vpack.c.bf16 %v3634_v46, %v3633_v35 }
 0xc8a   :  { %8977 = vmatpush3.bf16.msra.mxu0 %v8974_v32  ;;  %7516 = vmatprep.mubr.f32.mxu0 %v10441_v4  ;;  %v8998_v4 = vpack.c.bf16 %v3636_v47, %v3635_v53 }
 0xc8b   :  { %8979 = vmatprep.subr.bf16.mxu0 %v8978_v24 }
 0xc8e   :  { %8981 = vmatpush3.bf16.msra.mxu0 %v8978_v24 }
 0xc8f   :  { %8983 = vmatprep.subr.bf16.mxu0 %v8982_v3 }
 0xc92   :  { %8985 = vmatpush3.bf16.msra.mxu0 %v8982_v3 }
 0xc93   :  { %8987 = vmatprep.subr.bf16.mxu0 %v8986_v36 }
 0xc96   :  { %8989 = vmatpush3.bf16.msra.mxu0 %v8986_v36 }
 0xc97   :  { %8991 = vmatprep.subr.bf16.mxu0 %v8990_v49 }
 0xc9a   :  { %8993 = vmatpush3.bf16.msra.mxu0 %v8990_v49 }
 0xc9b   :  { %8995 = vmatprep.subr.bf16.mxu0 %v8994_v63 }
 0xc9e   :  { %8997 = vmatpush3.bf16.msra.mxu0 %v8994_v63 }
 0xc9f   :  { %8999 = vmatprep.subr.bf16.mxu0 %v8998_v4 }
 0xca2   :  { %9001 = vmatpush3.bf16.msra.mxu0 %v8998_v4 }
 0xca3   :  { %9003 = vmatprep.subr.bf16.mxu0 %v9002_v38 }
 0xca6   :  { %9005 = vmatpush3.bf16.msra.mxu0 %v9002_v38  ;;  %v4069_v38 = vld [vmem:[#allocation4 + $0xb08] sm:$0xff] }
 0xca7   :  { %9007 = vmatprep.subr.bf16.mxu0 %v9006_v52  ;;  %v9086_v50 = vpack.c.bf16 %v4069_v38, %v4068_v39 }
 0xca9   :  { %7517 = vmatmul.mubr.f32.vlgmr.msra.gmra.mrb[8].mxu0 %v10444_v48  ;;  %v9026_v48 = vpack.c.bf16 %v3736_v56, %v3735_v8  ;;  %v4080_v56 = vld [vmem:[#allocation4 + $0xb60] sm:$0xff] }
 0xcaa   :  { %9009 = vmatpush3.bf16.msra.mxu0 %v9006_v52  ;;  %7551 = vmatprep.mubr.f32.mxu0 %v10447_v58  ;;  %v9030_v58 = vpack.c.bf16 %v3738_v51, %v3737_v10  ;;  %v4071_v52 = vld [vmem:[#allocation4 + $0xb18] sm:$0xff]  ;;  %v4082_v51 = vld [vmem:[#allocation4 + $0xb70] sm:$0xff] }
 0xcab   :  { %9011 = vmatprep.subr.bf16.mxu0 %v9010_v20  ;;  %v9090_v54 = vpack.c.bf16 %v4071_v52, %v4070_v44 }
 0xcae   :  { %9013 = vmatpush3.bf16.msra.mxu0 %v9010_v20  ;;  %v4073_v20 = vld [vmem:[#allocation4 + $0xb28] sm:$0xff] }
 0xcaf   :  { %9015 = vmatprep.subr.bf16.mxu0 %v9014_v23  ;;  %v9094_v9 = vpack.c.bf16 %v4073_v20, %v4072_v45 }
 0xcb2   :  { %9017 = vmatpush3.bf16.msra.mxu0 %v9014_v23  ;;  %v4075_v23 = vld [vmem:[#allocation4 + $0xb38] sm:$0xff] }
 0xcb3   :  { %9019 = vmatprep.subr.bf16.mxu0 %v9018_v27  ;;  %v9098_v12 = vpack.c.bf16 %v4075_v23, %v4074_v59  ;;  %v4041_v59 = vld [vmem:[#allocation4 + $0xa90] sm:$0xff]  ;;  %v4042_v23 = vld [vmem:[#allocation4 + $0xa98] sm:$0xff] }
 0xcb6   :  { %9021 = vmatpush3.bf16.msra.mxu0 %v9018_v27  ;;  %v4077_v27 = vld [vmem:[#allocation4 + $0xb48] sm:$0xff] }
 0xcb7   :  { %9023 = vmatprep.subr.bf16.mxu0 %v9022_v5  ;;  %v9102_v30 = vpack.c.bf16 %v4077_v27, %v4076_v40 }
 0xcba   :  { %9025 = vmatpush3.bf16.msra.mxu0 %v9022_v5  ;;  %v4079_v5 = vld [vmem:[#allocation4 + $0xb58] sm:$0xff] }
 0xcbb   :  { %9027 = vmatprep.subr.bf16.mxu0 %v9026_v48  ;;  %v9106_v8 = vpack.c.bf16 %v4079_v5, %v4078_v2 }
 0xcbe   :  { %9029 = vmatpush3.bf16.msra.mxu0 %v9026_v48  ;;  %v4081_v48 = vld [vmem:[#allocation4 + $0xb68] sm:$0xff] }
 0xcbf   :  { %9031 = vmatprep.subr.bf16.mxu0 %v9030_v58  ;;  %v9110_v10 = vpack.c.bf16 %v4081_v48, %v4080_v56 }
 0xcc2   :  { %9033 = vmatpush3.bf16.msra.mxu0 %v9030_v58  ;;  %v4083_v58 = vld [vmem:[#allocation4 + $0xb78] sm:$0xff] }
 0xcc3   :  { %9035 = vmatprep.subr.bf16.mxu0 %v9034_v13  ;;  %v9114_v61 = vpack.c.bf16 %v4083_v58, %v4082_v51  ;;  %v9122_v51 = vpack.c.bf16 %v4042_v23, %v4041_v59  ;;  %v4049_v23 = vld [vmem:[#allocation4 + $0xad0] sm:$0xff] }
 0xcc6   :  { %9037 = vmatpush3.bf16.msra.mxu0 %v9034_v13  ;;  %v4040_v13 = vld [vmem:[#allocation4 + $0xa88] sm:$0xff] }
 0xcc7   :  { %9310 = vmatprep.subr.bf16.mxu0 %v9777_v0 }
 0xcc9   :  { %7552 = vmatmul.mubr.f32.vlgmr.msra.gmra.mrb[8].mxu0 %v10450_v16 }
 0xcca   :  { %9312 = vmatpush3.bf16.msra.mxu0 %v10018_v14  ;;  %7901 = vmatprep.mubr.msk.f32.mxu0 %vm9778_vm0, %v9779_v1 }
 0xccb   :  { %9313 = vmatprep.subr.bf16.mxu0 %v9777_v0 }
 0xcce   :  { %9315 = vmatpush3.bf16.msra.mxu0 %v10023_v18 }
 0xccf   :  { %9316 = vmatprep.subr.bf16.mxu0 %v9777_v0 }
 0xcd2   :  { %9318 = vmatpush3.bf16.msra.mxu0 %v10029_v22 }
 0xcd3   :  { %9319 = vmatprep.subr.bf16.mxu0 %v9777_v0 }
 0xcd6   :  { %9321 = vmatpush3.bf16.msra.mxu0 %v10033_v25 }
 0xcd7   :  { %9322 = vmatprep.subr.bf16.mxu0 %v9777_v0 }
 0xcda   :  { %9324 = vmatpush3.bf16.msra.mxu0 %v10038_v28 }
 0xcdb   :  { %9325 = vmatprep.subr.bf16.mxu0 %v9777_v0 }
 0xcde   :  { %9327 = vmatpush3.bf16.msra.mxu0 %v10042_v31 }
 0xcdf   :  { %9328 = vmatprep.subr.bf16.mxu0 %v9777_v0 }
 0xce2   :  { %9330 = vmatpush3.bf16.msra.mxu0 %v10045_v34 }
 0xce3   :  { %9331 = vmatprep.subr.bf16.mxu0 %v9777_v0 }
 0xce6   :  { %9333 = vmatpush3.bf16.msra.mxu0 %v10049_v37 }
 0xce7   :  { %9334 = vmatprep.subr.bf16.mxu0 %v9777_v0 }
 0xd9c   :  { %v7553_v16 = vpop.f32.mrb[8].mxu0 }
 0xd9d   :  { %v10485_v15 = vadd.f32 %v10210_v60, %v7553_v16  ;;  %v3807_v6 = vpop.f32.mrb[9].mxu0  ;;  %v10515_v16 = vpack.c.bf16 %v4040_v13, %v4039_v7 }
 0xd9e   :  { %v10488_v57 = vadd.f32 %v10212_v62, %v3807_v6 }
 0xda0   :  { %v3822_v32 = vadd.f32 %v10485_v15, %v10488_v57 }
 0xda2   :  { %v3823_v43 = vrot.slane %v3822_v32, 4 }
 0xda4   :  { %v3824_v41 = vadd.f32 %v3823_v43, %v3822_v32 }
 0xda6   :  { %v3825_v24 = vrot.slane %v3824_v41, 2 }
 0xda8   :  { %v3826_v26 = vadd.f32 %v3825_v24, %v3824_v41  ;;  %v5699_v24 = vld [vmem:[%s10735_s5 + $0x6] sm:$0x3] }
 0xdaa   :  { %v3827_v17 = vrot.slane %v3826_v26, 1 }
 0xdac   :  { %v3828_v3 = vadd.f32 %v3827_v17, %v3826_v26 }
 0xdae   :  { %7587 = vmatmul.mubr.f32.vlgmr.msra.gmra.mrb[16].mxu1 %v3828_v3 }
 0xdaf   :  { %9064 = vmatpush3.bf16.msra.mxu1 %v10018_v14  ;;  %7621 = vmatprep.mubr.msk.f32.mxu1 %vm9778_vm0, %v9779_v1 }
 0xdb0   :  { %9065 = vmatprep.subr.bf16.mxu1 %v9777_v0 }
 0xdb3   :  { %9067 = vmatpush3.bf16.msra.mxu1 %v10023_v18 }
 0xdb4   :  { %9068 = vmatprep.subr.bf16.mxu1 %v9777_v0 }
 0xdb7   :  { %9070 = vmatpush3.bf16.msra.mxu1 %v10029_v22 }
 0xdb8   :  { %9071 = vmatprep.subr.bf16.mxu1 %v9777_v0 }
 0xdbb   :  { %9073 = vmatpush3.bf16.msra.mxu1 %v10033_v25 }
 0xdbc   :  { %9074 = vmatprep.subr.bf16.mxu1 %v9777_v0 }
 0xdbf   :  { %9076 = vmatpush3.bf16.msra.mxu1 %v10038_v28 }
 0xdc0   :  { %9077 = vmatprep.subr.bf16.mxu1 %v9777_v0 }
 0xdc3   :  { %9079 = vmatpush3.bf16.msra.mxu1 %v10042_v31 }
 0xdc4   :  { %9080 = vmatprep.subr.bf16.mxu1 %v9777_v0 }
 0xdc7   :  { %9082 = vmatpush3.bf16.msra.mxu1 %v10045_v34 }
 0xdc8   :  { %9083 = vmatprep.subr.bf16.mxu1 %v9777_v0 }
 0xdcb   :  { %9085 = vmatpush3.bf16.msra.mxu1 %v10049_v37 }
 0xdcc   :  { %9087 = vmatprep.subr.bf16.mxu1 %v9086_v50 }
 0xe81   :  { %v3895_v60 = vpop.f32.mrb[16].mxu1 }
 0xe82   :  { %v10509_v62 = vmul.f32 0.0078125, %v3895_v60  ;;  %v7588_v29 = vpop.f32.mrb[17].mxu1 }
 0xe84   :  { %v3903_v11 = vrot.slane %v10509_v62, %v9930_v21 }
 0xe86   :  { %v3904_v36 = vsub.f32 %v10488_v57, %v3903_v11  ;;  %v3905_v19 = vsub.f32 %v10485_v15, %v3903_v11 }
 0xe88   :  { %v3906_v33 = vmul.f32 %v3904_v36, %v3904_v36  ;;  %v3907_v49 = vmul.f32 %v3905_v19, %v3905_v19 }
 0xe8a   :  { %v3908_v35 = vadd.f32 %v3907_v49, %v3906_v33 }
 0xe8c   :  { %v3909_v46 = vrot.slane %v3908_v35, 4 }
 0xe8e   :  { %v3910_v63 = vadd.f32 %v3909_v46, %v3908_v35 }
 0xe90   :  { %v3911_v53 = vrot.slane %v3910_v63, 2 }
 0xe92   :  { %v3912_v47 = vadd.f32 %v3911_v53, %v3910_v63 }
 0xe94   :  { %v3913_v4 = vrot.slane %v3912_v47, 1 }
 0xe96   :  { %v3914_v42 = vadd.f32 %v3913_v4, %v3912_v47 }
 0xe98   :  { %7622 = vmatmul.mubr.f32.vlgmr.msra.gmra.mrb[18].mxu1 %v3914_v42 }
 0xe99   :  { %9089 = vmatpush3.bf16.msra.mxu1 %v9086_v50 }
 0xe9a   :  { %9091 = vmatprep.subr.bf16.mxu1 %v9090_v54 }
 0xe9d   :  { %9093 = vmatpush3.bf16.msra.mxu1 %v9090_v54 }
 0xe9e   :  { %9095 = vmatprep.subr.bf16.mxu1 %v9094_v9 }
 0xea1   :  { %9097 = vmatpush3.bf16.msra.mxu1 %v9094_v9 }
 0xea2   :  { %9099 = vmatprep.subr.bf16.mxu1 %v9098_v12 }
 0xea5   :  { %9101 = vmatpush3.bf16.msra.mxu1 %v9098_v12 }
 0xea6   :  { %9103 = vmatprep.subr.bf16.mxu1 %v9102_v30 }
 0xea9   :  { %9105 = vmatpush3.bf16.msra.mxu1 %v9102_v30 }
 0xeaa   :  { %9107 = vmatprep.subr.bf16.mxu1 %v9106_v8 }
 0xead   :  { %9109 = vmatpush3.bf16.msra.mxu1 %v9106_v8 }
 0xeae   :  { %9111 = vmatprep.subr.bf16.mxu1 %v9110_v10 }
 0xeb1   :  { %9113 = vmatpush3.bf16.msra.mxu1 %v9110_v10 }
 0xeb2   :  { %9115 = vmatprep.subr.bf16.mxu1 %v9114_v61 }
 0xeb5   :  { %9117 = vmatpush3.bf16.msra.mxu1 %v9114_v61 }
 0xeb6   :  { %9119 = vmatprep.subr.bf16.mxu1 %v10515_v16 }
 0xf6b   :  { %v3981_v6 = vpop.f32.mrb[18].mxu1 }
 0xf6c   :  { %v3985_v32 = vmul.f32 0.0078125, %v3981_v6  ;;  %v7623_v43 = vpop.f32.mrb[19].mxu1 }
 0xf6d   :  { %v4044_v43 = vld [vmem:[#allocation4 + $0xaa8] sm:$0xff] }
 0xf6e   :  { %v3986_v41 = vadd.f32 1e-05, %v3985_v32  ;;  %v4043_v32 = vld [vmem:[#allocation4 + $0xaa0] sm:$0xff] }
 0xf70   :  { %9673 = vrsqrt.f32 %v3986_v41 }
 0xf7a   :  { %v9674_v26 = vpop.eup %9673 }
 0xf7b   :  { %v3988_v17 = vmul.f32 %v9674_v26, %v5699_v24 }
 0xf7d   :  { %v3989_v3 = vmul.f32 %v3988_v17, %v10509_v62  ;;  %v3997_v29 = vrot.slane %v3988_v17, %v9930_v21 }
 0xf7f   :  { %v3991_v60 = vrot.slane %v3989_v3, 7  ;;  %v3998_v36 = vmul.f32 %v3997_v29, %v10488_v57  ;;  %v3999_v19 = vmul.f32 %v3997_v29, %v10485_v15 }
 0xf81   :  { %v3993_v11 = vsub.f32 %v5699_v24, %v3991_v60 }
 0xf83   :  { %v4003_v33 = vrot.slane %v3993_v11, %v9942_v55 }
 0xf85   :  { %v4004_v49 = vadd.f32 %v4003_v33, %v3998_v36  ;;  %v4005_v35 = vadd.f32 %v4003_v33, %v3999_v19  ;;  %v9126_v19 = vpack.c.bf16 %v4044_v43, %v4043_v32 }
 0xf87   :  { %v4006_v46 = vmax.f32 %v4004_v49, 0.0  ;;  %v4007_v63 = vmax.f32 %v4005_v35, 0.0 }
 0xf89   :  { %v4010_v53 = vrot.slane %v4006_v46, 3  ;;  %v4014_v47 = vrot.slane %v4006_v46, 1  ;;  %v4018_v4 = vrot.slane %v4006_v46, 7  ;;  %v4022_v42 = vrot.slane %v4006_v46, 5  ;;  %v4045_v46 = vld [vmem:[#allocation4 + $0xab0] sm:$0xff] }
 0xf8a   :  { %v4011_v39 = vrot.slane %v4007_v63, 3  ;;  %v4015_v62 = vrot.slane %v4007_v63, 1  ;;  %v4019_v38 = vrot.slane %v4007_v63, 7  ;;  %v4023_v50 = vrot.slane %v4007_v63, 5 }
 0xf8b   :  { %v4026_v44 = vsel %vm388_vm2, %v4010_v53, %v4014_v47  ;;  %v4032_v52 = vsel %vm394_vm4, %v4022_v42, %v4010_v53 }
 0xf8c   :  { %v4028_v54 = vsel %vm391_vm3, %v4026_v44, %v4018_v4  ;;  %v4034_v45 = vsel %vm399_vm5, %v4032_v52, %v4014_v47  ;;  %v4027_v20 = vsel %vm388_vm2, %v4011_v39, %v4015_v62  ;;  %v4033_v9 = vsel %vm394_vm4, %v4023_v50, %v4011_v39 }
 0xf8d   :  { %v10533_v12 = vsel %vm394_vm4, %v4028_v54, %v4022_v42  ;;  %v10536_v40 = vsel %vm402_vm6, %v4034_v45, %v4018_v4  ;;  %v4029_v27 = vsel %vm391_vm3, %v4027_v20, %v4019_v38  ;;  %v4035_v30 = vsel %vm399_vm5, %v4033_v9, %v4015_v62  ;;  %v4047_v45 = vld [vmem:[#allocation4 + $0xac0] sm:$0xff]  ;;  %v4048_v20 = vld [vmem:[#allocation4 + $0xac8] sm:$0xff] }
 0xf8e   :  { %v4059_v2 = vrot.slane %v10533_v12, 1  ;;  %v4060_v5 = vrot.slane %v10536_v40, 1  ;;  %v10543_v8 = vsel %vm394_vm4, %v4029_v27, %v4023_v50  ;;  %v4037_v56 = vsel %vm402_vm6, %v4035_v30, %v4019_v38  ;;  %v4050_v27 = vld [vmem:[#allocation4 + $0xad8] sm:$0xff] }
 0xf8f   :  { %v4062_v48 = vrot.slane %v10543_v8, 1  ;;  %v4063_v10 = vrot.slane %v4037_v56, 1  ;;  %v4237_v61 = vrot.slane %v10543_v8, 2  ;;  %v4238_v7 = vrot.slane %v4037_v56, 2 }
 0xf90   :  { %v4061_v58 = vsel %vm411_vm7, %v4059_v2, %v4060_v5  ;;  %v4336_v13 = vrot.slane %v10533_v12, 3  ;;  %v4337_v41 = vrot.slane %v10536_v40, 3  ;;  %v4339_v24 = vrot.slane %v10543_v8, 3  ;;  %v4051_v2 = vld [vmem:[#allocation4 + $0xae0] sm:$0xff]  ;;  %v4052_v5 = vld [vmem:[#allocation4 + $0xae8] sm:$0xff] }
 0xf91   :  { %7656 = vmatprep.mubr.f32.mxu1 %v4061_v58  ;;  %v4064_v6 = vsel %vm411_vm7, %v4062_v48, %v4063_v10  ;;  %v10554_v26 = vsel %vm579_vm8, %v4237_v61, %v4238_v7  ;;  %v4340_v17 = vrot.slane %v4037_v56, 3  ;;  %v4438_v3 = vrot.slane %v10533_v12, 4  ;;  %v4053_v48 = vld [vmem:[#allocation4 + $0xaf0] sm:$0xff]  ;;  %v4054_v10 = vld [vmem:[#allocation4 + $0xaf8] sm:$0xff]  ;;  %v4243_v58 = vld [vmem:[#allocation4 + $0xb80] sm:$0xff] }
 0xf92   :  { %7657 = vmatmul.mubr.f32.vlgmr.msra.gmra.mrb[20].mxu1 %v4064_v6  ;;  %v4439_v60 = vrot.slane %v10536_v40, 4  ;;  %v10561_v29 = vsel %vm402_vm6, %v4336_v13, %v4337_v41  ;;  %v4441_v11 = vrot.slane %v10543_v8, 4  ;;  %v4442_v36 = vrot.slane %v4037_v56, 4  ;;  %v4244_v61 = vld [vmem:[#allocation4 + $0xb88] sm:$0xff]  ;;  %v4245_v13 = vld [vmem:[#allocation4 + $0xb90] sm:$0xff]  ;;  %v4246_v6 = vld [vmem:[#allocation4 + $0xb98] sm:$0xff] }
 0xf93   :  { %9121 = vmatpush3.bf16.msra.mxu1 %v10515_v16  ;;  %7691 = vmatprep.mubr.f32.mxu1 %v10533_v12  ;;  %v10565_v33 = vsel %vm402_vm6, %v4339_v24, %v4340_v17  ;;  %v4540_v35 = vrot.slane %v10533_v12, 5  ;;  %v4046_v16 = vld [vmem:[#allocation4 + $0xab8] sm:$0xff]  ;;  %v4541_v53 = vrot.slane %v10536_v40, 5  ;;  %v4543_v47 = vrot.slane %v10543_v8, 5  ;;  %v4247_v24 = vld [vmem:[#allocation4 + $0xba0] sm:$0xff]  ;;  %v4248_v17 = vld [vmem:[#allocation4 + $0xba8] sm:$0xff] }
 0xf94   :  { %9123 = vmatprep.subr.bf16.mxu1 %v9122_v51  ;;  %v10568_v49 = vsel %vm399_vm5, %v4438_v3, %v4439_v60  ;;  %v10572_v63 = vsel %vm399_vm5, %v4441_v11, %v4442_v36  ;;  %v4544_v4 = vrot.slane %v4037_v56, 5  ;;  %v4642_v42 = vrot.slane %v10533_v12, 6  ;;  %v4249_v11 = vld [vmem:[#allocation4 + $0xbb0] sm:$0xff]  ;;  %v4250_v36 = vld [vmem:[#allocation4 + $0xbb8] sm:$0xff] }
 0xf95   :  { %v4643_v39 = vrot.slane %v10536_v40, 6  ;;  %v4645_v62 = vrot.slane %v10543_v8, 6  ;;  %v10580_v38 = vsel %vm394_vm4, %v4540_v35, %v4541_v53  ;;  %v4646_v50 = vrot.slane %v4037_v56, 6  ;;  %v4255_v53 = vld [vmem:[#allocation4 + $0xbe0] sm:$0xff] }
 0xf96   :  { %v9130_v44 = vpack.c.bf16 %v4046_v16, %v4045_v46  ;;  %v10583_v52 = vsel %vm394_vm4, %v4543_v47, %v4544_v4  ;;  %v9134_v59 = vpack.c.bf16 %v4048_v20, %v4047_v45  ;;  %v9138_v30 = vpack.c.bf16 %v4050_v27, %v4049_v23  ;;  %v4253_v46 = vld [vmem:[#allocation4 + $0xbd0] sm:$0xff]  ;;  %v4254_v16 = vld [vmem:[#allocation4 + $0xbd8] sm:$0xff]  ;;  %v4256_v47 = vld [vmem:[#allocation4 + $0xbe8] sm:$0xff] }
 0xf97   :  { %9125 = vmatpush3.bf16.msra.mxu1 %v9122_v51  ;;  %v10586_v54 = vsel %vm391_vm3, %v4642_v42, %v4643_v39  ;;  %v10589_v9 = vsel %vm391_vm3, %v4645_v62, %v4646_v50  ;;  %v9142_v56 = vpack.c.bf16 %v4052_v5, %v4051_v2  ;;  %v9146_v51 = vpack.c.bf16 %v4054_v10, %v4053_v48  ;;  %v4257_v42 = vld [vmem:[#allocation4 + $0xbf0] sm:$0xff]  ;;  %v4258_v39 = vld [vmem:[#allocation4 + $0xbf8] sm:$0xff]  ;;  %v4345_v50 = vld [vmem:[#allocation4 + $0xc00] sm:$0xff] }
 0xf98   :  { %9127 = vmatprep.subr.bf16.mxu1 %v9126_v19  ;;  %v9150_v7 = vpack.c.bf16 %v4244_v61, %v4243_v58  ;;  %v4234_v32 = vrot.slane %v10533_v12, 2  ;;  %v4235_v43 = vrot.slane %v10536_v40, 2  ;;  %v9154_v41 = vpack.c.bf16 %v4246_v6, %v4245_v13  ;;  %v4252_v40 = vld [vmem:[#allocation4 + $0xbc8] sm:$0xff]  ;;  %v4347_v20 = vld [vmem:[#allocation4 + $0xc10] sm:$0xff]  ;;  %v4349_v27 = vld [vmem:[#allocation4 + $0xc20] sm:$0xff] }
 0xf99   :  { %v9158_v60 = vpack.c.bf16 %v4248_v17, %v4247_v24  ;;  %v9162_v12 = vpack.c.bf16 %v4250_v36, %v4249_v11  ;;  %v9174_v4 = vpack.c.bf16 %v4256_v47, %v4255_v53  ;;  %v9178_v62 = vpack.c.bf16 %v4258_v39, %v4257_v42  ;;  %v4351_v5 = vld [vmem:[#allocation4 + $0xc30] sm:$0xff]  ;;  %v4353_v10 = vld [vmem:[#allocation4 + $0xc40] sm:$0xff]  ;;  %v4358_v6 = vld [vmem:[#allocation4 + $0xc68] sm:$0xff] }
 0xf9a   :  { %v4236_v3 = vsel %vm579_vm8, %v4234_v32, %v4235_v43  ;;  %v4355_v61 = vld [vmem:[#allocation4 + $0xc50] sm:$0xff]  ;;  %v4357_v13 = vld [vmem:[#allocation4 + $0xc60] sm:$0xff]  ;;  %v4360_v43 = vld [vmem:[#allocation4 + $0xc78] sm:$0xff] }
 0xf9b   :  { %9129 = vmatpush3.bf16.msra.mxu1 %v9126_v19  ;;  %v4251_v19 = vld [vmem:[#allocation4 + $0xbc0] sm:$0xff]  ;;  %v4359_v32 = vld [vmem:[#allocation4 + $0xc70] sm:$0xff]  ;;  %v4448_v17 = vld [vmem:[#allocation4 + $0xc88] sm:$0xff] }
 0xf9c   :  { %9131 = vmatprep.subr.bf16.mxu1 %v9130_v44  ;;  %v9166_v35 = vpack.c.bf16 %v4252_v40, %v4251_v19  ;;  %v4447_v24 = vld [vmem:[#allocation4 + $0xc80] sm:$0xff]  ;;  %v4450_v11 = vld [vmem:[#allocation4 + $0xc98] sm:$0xff]  ;;  %v4452_v19 = vld [vmem:[#allocation4 + $0xca8] sm:$0xff] }
 0xf9d   :  { %v4456_v53 = vld [vmem:[#allocation4 + $0xcc8] sm:$0xff]  ;;  %v4458_v42 = vld [vmem:[#allocation4 + $0xcd8] sm:$0xff]  ;;  %v4459_v39 = vld [vmem:[#allocation4 + $0xce0] sm:$0xff] }
 0xf9f   :  { %9133 = vmatpush3.bf16.msra.mxu1 %v9130_v44  ;;  %v4346_v44 = vld [vmem:[#allocation4 + $0xc08] sm:$0xff] }
 0xfa0   :  { %9135 = vmatprep.subr.bf16.mxu1 %v9134_v59  ;;  %v9182_v45 = vpack.c.bf16 %v4346_v44, %v4345_v50  ;;  %v4461_v50 = vld [vmem:[#allocation4 + $0xcf0] sm:$0xff]  ;;  %v4462_v44 = vld [vmem:[#allocation4 + $0xcf8] sm:$0xff] }
 0xfa3   :  { %9137 = vmatpush3.bf16.msra.mxu1 %v9134_v59  ;;  %v4348_v59 = vld [vmem:[#allocation4 + $0xc18] sm:$0xff] }
 0xfa4   :  { %9139 = vmatprep.subr.bf16.mxu1 %v9138_v30  ;;  %v9186_v23 = vpack.c.bf16 %v4348_v59, %v4347_v20  ;;  %v4549_v20 = vld [vmem:[#allocation4 + $0xd00] sm:$0xff]  ;;  %v4550_v59 = vld [vmem:[#allocation4 + $0xd08] sm:$0xff] }
 0xfa7   :  { %9141 = vmatpush3.bf16.msra.mxu1 %v9138_v30  ;;  %v4350_v30 = vld [vmem:[#allocation4 + $0xc28] sm:$0xff] }
 0xfa8   :  { %9143 = vmatprep.subr.bf16.mxu1 %v9142_v56  ;;  %v9190_v2 = vpack.c.bf16 %v4350_v30, %v4349_v27  ;;  %v4551_v27 = vld [vmem:[#allocation4 + $0xd10] sm:$0xff]  ;;  %v4552_v30 = vld [vmem:[#allocation4 + $0xd18] sm:$0xff] }
 0xfab   :  { %9145 = vmatpush3.bf16.msra.mxu1 %v9142_v56  ;;  %v4352_v56 = vld [vmem:[#allocation4 + $0xc38] sm:$0xff] }
 0xfac   :  { %9147 = vmatprep.subr.bf16.mxu1 %v9146_v51  ;;  %v9194_v48 = vpack.c.bf16 %v4352_v56, %v4351_v5  ;;  %v4553_v5 = vld [vmem:[#allocation4 + $0xd20] sm:$0xff]  ;;  %v4554_v56 = vld [vmem:[#allocation4 + $0xd28] sm:$0xff] }
 0xfaf   :  { %9149 = vmatpush3.bf16.msra.mxu1 %v9146_v51  ;;  %v4354_v51 = vld [vmem:[#allocation4 + $0xc48] sm:$0xff] }
 0xfb0   :  { %9151 = vmatprep.subr.bf16.mxu1 %v9150_v7  ;;  %v9198_v58 = vpack.c.bf16 %v4354_v51, %v4353_v10  ;;  %v4555_v10 = vld [vmem:[#allocation4 + $0xd30] sm:$0xff]  ;;  %v4556_v51 = vld [vmem:[#allocation4 + $0xd38] sm:$0xff] }
 0xfb2   :  { %7692 = vmatmul.mubr.f32.vlgmr.msra.gmra.mrb[20].mxu1 %v10543_v8  ;;  %v9170_v8 = vpack.c.bf16 %v4254_v16, %v4253_v46  ;;  %v4454_v46 = vld [vmem:[#allocation4 + $0xcb8] sm:$0xff] }
 0xfb3   :  { %9153 = vmatpush3.bf16.msra.mxu1 %v9150_v7  ;;  %7726 = vmatprep.mubr.f32.mxu1 %v4236_v3  ;;  %v4356_v7 = vld [vmem:[#allocation4 + $0xc58] sm:$0xff]  ;;  %v9214_v3 = vpack.c.bf16 %v4448_v17, %v4447_v24  ;;  %v4651_v17 = vld [vmem:[#allocation4 + $0xd80] sm:$0xff] }
 0xfb4   :  { %9155 = vmatprep.subr.bf16.mxu1 %v9154_v41 }
 0xfb7   :  { %9157 = vmatpush3.bf16.msra.mxu1 %v9154_v41  ;;  %v9210_v41 = vpack.c.bf16 %v4360_v43, %v4359_v32  ;;  %v4562_v32 = vld [vmem:[#allocation4 + $0xd68] sm:$0xff]  ;;  %v4563_v43 = vld [vmem:[#allocation4 + $0xd70] sm:$0xff] }
 0xfb8   :  { %9159 = vmatprep.subr.bf16.mxu1 %v9158_v60 }
 0xfbb   :  { %9161 = vmatpush3.bf16.msra.mxu1 %v9158_v60  ;;  %v4449_v60 = vld [vmem:[#allocation4 + $0xc90] sm:$0xff] }
 0xfbc   :  { %9163 = vmatprep.subr.bf16.mxu1 %v9162_v12  ;;  %v9218_v36 = vpack.c.bf16 %v4450_v11, %v4449_v60  ;;  %v4653_v11 = vld [vmem:[#allocation4 + $0xd90] sm:$0xff] }
 0xfbf   :  { %9165 = vmatpush3.bf16.msra.mxu1 %v9162_v12  ;;  %v4451_v12 = vld [vmem:[#allocation4 + $0xca0] sm:$0xff] }
 0xfc0   :  { %9167 = vmatprep.subr.bf16.mxu1 %v9166_v35  ;;  %v9222_v40 = vpack.c.bf16 %v4452_v19, %v4451_v12  ;;  %v4655_v19 = vld [vmem:[#allocation4 + $0xda0] sm:$0xff] }
 0xfc3   :  { %9169 = vmatpush3.bf16.msra.mxu1 %v9166_v35  ;;  %v4453_v35 = vld [vmem:[#allocation4 + $0xcb0] sm:$0xff] }
 0xfc4   :  { %9171 = vmatprep.subr.bf16.mxu1 %v9170_v8  ;;  %v9226_v16 = vpack.c.bf16 %v4454_v46, %v4453_v35  ;;  %v4657_v46 = vld [vmem:[#allocation4 + $0xdb0] sm:$0xff] }
 0xfc7   :  { %9173 = vmatpush3.bf16.msra.mxu1 %v9170_v8  ;;  %v4455_v8 = vld [vmem:[#allocation4 + $0xcc0] sm:$0xff] }
 0xfc8   :  { %9175 = vmatprep.subr.bf16.mxu1 %v9174_v4  ;;  %v9230_v47 = vpack.c.bf16 %v4456_v53, %v4455_v8  ;;  %v4659_v53 = vld [vmem:[#allocation4 + $0xdc0] sm:$0xff] }
 0xfcb   :  { %9177 = vmatpush3.bf16.msra.mxu1 %v9174_v4  ;;  %v4457_v4 = vld [vmem:[#allocation4 + $0xcd0] sm:$0xff] }
 0xfcc   :  { %9179 = vmatprep.subr.bf16.mxu1 %v9178_v62 }
 0xfcf   :  { %9181 = vmatpush3.bf16.msra.mxu1 %v9178_v62  ;;  %v4460_v62 = vld [vmem:[#allocation4 + $0xce8] sm:$0xff] }
 0xfd0   :  { %9183 = vmatprep.subr.bf16.mxu1 %v9182_v45 }
 0xfd2   :  { %7727 = vmatmul.mubr.f32.vlgmr.msra.gmra.mrb[20].mxu1 %v10554_v26  ;;  %v9202_v26 = vpack.c.bf16 %v4356_v7, %v4355_v61  ;;  %v4557_v61 = vld [vmem:[#allocation4 + $0xd40] sm:$0xff]  ;;  %v4558_v7 = vld [vmem:[#allocation4 + $0xd48] sm:$0xff] }
 0xfd3   :  { %9185 = vmatpush3.bf16.msra.mxu1 %v9182_v45  ;;  %7761 = vmatprep.mubr.f32.mxu1 %v10561_v29  ;;  %v9206_v29 = vpack.c.bf16 %v4358_v6, %v4357_v13  ;;  %v9242_v45 = vpack.c.bf16 %v4462_v44, %v4461_v50  ;;  %v4559_v13 = vld [vmem:[#allocation4 + $0xd50] sm:$0xff]  ;;  %v4560_v6 = vld [vmem:[#allocation4 + $0xd58] sm:$0xff] }
 0xfd4   :  { %9187 = vmatprep.subr.bf16.mxu1 %v9186_v23  ;;  %v4666_v50 = vld [vmem:[#allocation4 + $0xdf8] sm:$0xff] }
 0xfd7   :  { %9189 = vmatpush3.bf16.msra.mxu1 %v9186_v23  ;;  %v9246_v23 = vpack.c.bf16 %v4550_v59, %v4549_v20 }
 0xfd8   :  { %9191 = vmatprep.subr.bf16.mxu1 %v9190_v2 }
 0xfdb   :  { %9193 = vmatpush3.bf16.msra.mxu1 %v9190_v2  ;;  %v9250_v2 = vpack.c.bf16 %v4552_v30, %v4551_v27 }
 0xfdc   :  { %9195 = vmatprep.subr.bf16.mxu1 %v9194_v48 }
 0xfdf   :  { %9197 = vmatpush3.bf16.msra.mxu1 %v9194_v48  ;;  %v9254_v48 = vpack.c.bf16 %v4554_v56, %v4553_v5 }
 0xfe0   :  { %9199 = vmatprep.subr.bf16.mxu1 %v9198_v58 }
 0xfe3   :  { %9201 = vmatpush3.bf16.msra.mxu1 %v9198_v58  ;;  %v9258_v58 = vpack.c.bf16 %v4556_v51, %v4555_v10 }
 0xfe4   :  { %9203 = vmatprep.subr.bf16.mxu1 %v9202_v26 }
 0xfe7   :  { %9205 = vmatpush3.bf16.msra.mxu1 %v9202_v26  ;;  %v9262_v26 = vpack.c.bf16 %v4558_v7, %v4557_v61  ;;  %v4992_v61 = vld [vmem:[#allocation4 + $0xe80] sm:$0xff]  ;;  %v4993_v7 = vld [vmem:[#allocation4 + $0xe88] sm:$0xff] }
 0xfe8   :  { %9207 = vmatprep.subr.bf16.mxu1 %v9206_v29 }
 0xfeb   :  { %9209 = vmatpush3.bf16.msra.mxu1 %v9206_v29  ;;  %v4561_v29 = vld [vmem:[#allocation4 + $0xd60] sm:$0xff] }
 0xfec   :  { %9211 = vmatprep.subr.bf16.mxu1 %v9210_v41 }
 0xfef   :  { %9213 = vmatpush3.bf16.msra.mxu1 %v9210_v41  ;;  %v4564_v41 = vld [vmem:[#allocation4 + $0xd78] sm:$0xff] }
 0xff0   :  { %9215 = vmatprep.subr.bf16.mxu1 %v9214_v3  ;;  %v9274_v24 = vpack.c.bf16 %v4564_v41, %v4563_v43  ;;  %v4998_v43 = vld [vmem:[#allocation4 + $0xeb0] sm:$0xff]  ;;  %v4999_v41 = vld [vmem:[#allocation4 + $0xeb8] sm:$0xff] }
 0xff2   :  { %7762 = vmatmul.mubr.f32.vlgmr.msra.gmra.mrb[20].mxu1 %v10565_v33  ;;  %v9234_v33 = vpack.c.bf16 %v4458_v42, %v4457_v4  ;;  %v4661_v42 = vld [vmem:[#allocation4 + $0xdd0] sm:$0xff] }
 0xff3   :  { %9217 = vmatpush3.bf16.msra.mxu1 %v9214_v3  ;;  %7796 = vmatprep.mubr.f32.mxu1 %v10568_v49  ;;  %v9238_v49 = vpack.c.bf16 %v4460_v62, %v4459_v39  ;;  %v4652_v3 = vld [vmem:[#allocation4 + $0xd88] sm:$0xff]  ;;  %v4663_v39 = vld [vmem:[#allocation4 + $0xde0] sm:$0xff] }
 0xff4   :  { %9219 = vmatprep.subr.bf16.mxu1 %v9218_v36  ;;  %v9278_v60 = vpack.c.bf16 %v4652_v3, %v4651_v17  ;;  %v4664_v62 = vld [vmem:[#allocation4 + $0xde8] sm:$0xff]  ;;  %v5000_v17 = vld [vmem:[#allocation4 + $0xec0] sm:$0xff] }
 0xff5   :  { %v5001_v3 = vld [vmem:[#allocation4 + $0xec8] sm:$0xff] }
 0xff7   :  { %9221 = vmatpush3.bf16.msra.mxu1 %v9218_v36  ;;  %v4654_v36 = vld [vmem:[#allocation4 + $0xd98] sm:$0xff] }
 0xff8   :  { %9223 = vmatprep.subr.bf16.mxu1 %v9222_v40  ;;  %v9282_v12 = vpack.c.bf16 %v4654_v36, %v4653_v11  ;;  %v5002_v11 = vld [vmem:[#allocation4 + $0xed0] sm:$0xff]  ;;  %v5003_v36 = vld [vmem:[#allocation4 + $0xed8] sm:$0xff] }
 0xffb   :  { %9225 = vmatpush3.bf16.msra.mxu1 %v9222_v40  ;;  %v4656_v40 = vld [vmem:[#allocation4 + $0xda8] sm:$0xff] }
 0xffc   :  { %9227 = vmatprep.subr.bf16.mxu1 %v9226_v16  ;;  %v9286_v35 = vpack.c.bf16 %v4656_v40, %v4655_v19  ;;  %v5004_v19 = vld [vmem:[#allocation4 + $0xee0] sm:$0xff]  ;;  %v5005_v40 = vld [vmem:[#allocation4 + $0xee8] sm:$0xff] }
 0xfff   :  { %9229 = vmatpush3.bf16.msra.mxu1 %v9226_v16  ;;  %v4658_v16 = vld [vmem:[#allocation4 + $0xdb8] sm:$0xff] }
0x1000   :  { %9231 = vmatprep.subr.bf16.mxu1 %v9230_v47  ;;  %v9290_v8 = vpack.c.bf16 %v4658_v16, %v4657_v46  ;;  %v5006_v46 = vld [vmem:[#allocation4 + $0xef0] sm:$0xff]  ;;  %v5007_v16 = vld [vmem:[#allocation4 + $0xef8] sm:$0xff] }
0x1003   :  { %9233 = vmatpush3.bf16.msra.mxu1 %v9230_v47  ;;  %v4660_v47 = vld [vmem:[#allocation4 + $0xdc8] sm:$0xff] }
0x1004   :  { %9235 = vmatprep.subr.bf16.mxu1 %v9234_v33  ;;  %v9294_v4 = vpack.c.bf16 %v4660_v47, %v4659_v53  ;;  %v4963_v53 = vld [vmem:[#allocation4 + $0xe00] sm:$0xff]  ;;  %v4964_v47 = vld [vmem:[#allocation4 + $0xe08] sm:$0xff] }
0x1007   :  { %9237 = vmatpush3.bf16.msra.mxu1 %v9234_v33  ;;  %v4662_v33 = vld [vmem:[#allocation4 + $0xdd8] sm:$0xff] }
0x1008   :  { %9239 = vmatprep.subr.bf16.mxu1 %v9238_v49 }
0x100b   :  { %9241 = vmatpush3.bf16.msra.mxu1 %v9238_v49  ;;  %v4665_v49 = vld [vmem:[#allocation4 + $0xdf0] sm:$0xff] }
0x100c   :  { %9243 = vmatprep.subr.bf16.mxu1 %v9242_v45  ;;  %v9306_v44 = vpack.c.bf16 %v4666_v50, %v4665_v49 }
0x100f   :  { %9245 = vmatpush3.bf16.msra.mxu1 %v9242_v45 }
0x1010   :  { %9247 = vmatprep.subr.bf16.mxu1 %v9246_v23 }
0x1012   :  { %7797 = vmatmul.mubr.f32.vlgmr.msra.gmra.mrb[20].mxu1 %v10572_v63  ;;  %v9266_v63 = vpack.c.bf16 %v4560_v6, %v4559_v13  ;;  %v4994_v13 = vld [vmem:[#allocation4 + $0xe90] sm:$0xff]  ;;  %v4995_v6 = vld [vmem:[#allocation4 + $0xe98] sm:$0xff] }
0x1013   :  { %9249 = vmatpush3.bf16.msra.mxu1 %v9246_v23  ;;  %7831 = vmatprep.mubr.f32.mxu1 %v10580_v38  ;;  %v9270_v38 = vpack.c.bf16 %v4562_v32, %v4561_v29  ;;  %v4996_v29 = vld [vmem:[#allocation4 + $0xea0] sm:$0xff]  ;;  %v4997_v32 = vld [vmem:[#allocation4 + $0xea8] sm:$0xff] }
0x1014   :  { %9251 = vmatprep.subr.bf16.mxu1 %v9250_v2 }
0x1017   :  { %9253 = vmatpush3.bf16.msra.mxu1 %v9250_v2 }
0x1018   :  { %9255 = vmatprep.subr.bf16.mxu1 %v9254_v48 }
0x101b   :  { %9257 = vmatpush3.bf16.msra.mxu1 %v9254_v48 }
0x101c   :  { %9259 = vmatprep.subr.bf16.mxu1 %v9258_v58 }
0x101f   :  { %9261 = vmatpush3.bf16.msra.mxu1 %v9258_v58 }
0x1020   :  { %9263 = vmatprep.subr.bf16.mxu1 %v9262_v26 }
0x1023   :  { %9265 = vmatpush3.bf16.msra.mxu1 %v9262_v26  ;;  %v9358_v26 = vpack.c.bf16 %v4993_v7, %v4992_v61 }
0x1024   :  { %9267 = vmatprep.subr.bf16.mxu1 %v9266_v63 }
0x1027   :  { %9269 = vmatpush3.bf16.msra.mxu1 %v9266_v63  ;;  %v9362_v63 = vpack.c.bf16 %v4995_v6, %v4994_v13 }
0x1028   :  { %9271 = vmatprep.subr.bf16.mxu1 %v9270_v38 }
0x102b   :  { %9273 = vmatpush3.bf16.msra.mxu1 %v9270_v38  ;;  %v9366_v38 = vpack.c.bf16 %v4997_v32, %v4996_v29 }
0x102c   :  { %9275 = vmatprep.subr.bf16.mxu1 %v9274_v24 }
0x102f   :  { %9277 = vmatpush3.bf16.msra.mxu1 %v9274_v24  ;;  %v9370_v24 = vpack.c.bf16 %v4999_v41, %v4998_v43 }
0x1030   :  { %9279 = vmatprep.subr.bf16.mxu1 %v9278_v60 }
0x1032   :  { %7832 = vmatmul.mubr.f32.vlgmr.msra.gmra.mrb[20].mxu1 %v10583_v52  ;;  %v9298_v52 = vpack.c.bf16 %v4662_v33, %v4661_v42 }
0x1033   :  { %9281 = vmatpush3.bf16.msra.mxu1 %v9278_v60  ;;  %7866 = vmatprep.mubr.f32.mxu1 %v10586_v54  ;;  %v9302_v54 = vpack.c.bf16 %v4664_v62, %v4663_v39  ;;  %v9374_v60 = vpack.c.bf16 %v5001_v3, %v5000_v17  ;;  %v5700_v62 = vld [vmem:[%s10735_s5 + $0x8] sm:$0x3] }
0x1034   :  { %9283 = vmatprep.subr.bf16.mxu1 %v9282_v12 }
0x1037   :  { %9285 = vmatpush3.bf16.msra.mxu1 %v9282_v12  ;;  %v9378_v12 = vpack.c.bf16 %v5003_v36, %v5002_v11  ;;  %v4967_v11 = vld [vmem:[#allocation4 + $0xe20] sm:$0xff]  ;;  %v4968_v36 = vld [vmem:[#allocation4 + $0xe28] sm:$0xff] }
0x1038   :  { %9287 = vmatprep.subr.bf16.mxu1 %v9286_v35 }
0x103b   :  { %9289 = vmatpush3.bf16.msra.mxu1 %v9286_v35  ;;  %v9382_v35 = vpack.c.bf16 %v5005_v40, %v5004_v19 }
0x103c   :  { %9291 = vmatprep.subr.bf16.mxu1 %v9290_v8 }
0x103f   :  { %9293 = vmatpush3.bf16.msra.mxu1 %v9290_v8  ;;  %v9386_v8 = vpack.c.bf16 %v5007_v16, %v5006_v46 }
0x1040   :  { %9295 = vmatprep.subr.bf16.mxu1 %v9294_v4 }
0x1043   :  { %9297 = vmatpush3.bf16.msra.mxu1 %v9294_v4  ;;  %v10633_v4 = vpack.c.bf16 %v4964_v47, %v4963_v53 }
0x1044   :  { %9299 = vmatprep.subr.bf16.mxu1 %v9298_v52 }
0x1047   :  { %9301 = vmatpush3.bf16.msra.mxu1 %v9298_v52 }
0x1048   :  { %9303 = vmatprep.subr.bf16.mxu1 %v9302_v54 }
0x104b   :  { %9305 = vmatpush3.bf16.msra.mxu1 %v9302_v54 }
0x104c   :  { %9307 = vmatprep.subr.bf16.mxu1 %v9306_v44 }
0x104f   :  { %9309 = vmatpush3.bf16.msra.mxu1 %v9306_v44 }
0x1052   :  { %7867 = vmatmul.mubr.f32.vlgmr.msra.gmra.mrb[20].mxu1 %v10589_v9 }
0x1125   :  { %v10604_v45 = vpop.f32.mrb[20].mxu1 }
0x1126   :  { %v10606_v20 = vpop.f32.mrb[21].mxu1 }
0x1127   :  { %v4746_v59 = vadd.f32 %v10604_v45, %v10606_v20 }
0x1129   :  { %v4747_v23 = vrot.slane %v4746_v59, 4 }
0x112b   :  { %v4748_v27 = vadd.f32 %v4747_v23, %v4746_v59 }
0x112d   :  { %v4749_v30 = vrot.slane %v4748_v27, 2 }
0x112f   :  { %v4750_v2 = vadd.f32 %v4749_v30, %v4748_v27 }
0x1131   :  { %v4751_v5 = vrot.slane %v4750_v2, 1 }
0x1133   :  { %v4752_v56 = vadd.f32 %v4751_v5, %v4750_v2 }
0x1135   :  { %7902 = vmatmul.mubr.f32.vlgmr.msra.gmra.mrb[10].mxu0 %v4752_v56 }
0x1136   :  { %9336 = vmatpush3.bf16.msra.mxu0 %v10018_v14  ;;  %7936 = vmatprep.mubr.msk.f32.mxu0 %vm9778_vm0, %v9779_v1 }
0x1137   :  { %9337 = vmatprep.subr.bf16.mxu0 %v9777_v0 }
0x113a   :  { %9339 = vmatpush3.bf16.msra.mxu0 %v10023_v18 }
0x113b   :  { %9340 = vmatprep.subr.bf16.mxu0 %v9777_v0 }
0x113e   :  { %9342 = vmatpush3.bf16.msra.mxu0 %v10029_v22 }
0x113f   :  { %9343 = vmatprep.subr.bf16.mxu0 %v9777_v0 }
0x1142   :  { %9345 = vmatpush3.bf16.msra.mxu0 %v10033_v25 }
0x1143   :  { %9346 = vmatprep.subr.bf16.mxu0 %v9777_v0 }
0x1146   :  { %9348 = vmatpush3.bf16.msra.mxu0 %v10038_v28 }
0x1147   :  { %9349 = vmatprep.subr.bf16.mxu0 %v9777_v0 }
0x114a   :  { %9351 = vmatpush3.bf16.msra.mxu0 %v10042_v31 }
0x114b   :  { %9352 = vmatprep.subr.bf16.mxu0 %v9777_v0 }
0x114e   :  { %9354 = vmatpush3.bf16.msra.mxu0 %v10045_v34 }
0x114f   :  { %9355 = vmatprep.subr.bf16.mxu0 %v9777_v0 }
0x1152   :  { %9357 = vmatpush3.bf16.msra.mxu0 %v10049_v37 }
0x1153   :  { %9359 = vmatprep.subr.bf16.mxu0 %v9358_v26 }
0x1208   :  { %v4819_v1 = vpop.f32.mrb[10].mxu0 }
0x1209   :  { %v10627_v14 = vmul.f32 0.0078125, %v4819_v1  ;;  %v7903_v18 = vpop.f32.mrb[11].mxu0 }
0x120b   :  { %v4827_v22 = vrot.slane %v10627_v14, %v9930_v21 }
0x120d   :  { %v4828_v25 = vsub.f32 %v10606_v20, %v4827_v22  ;;  %v4829_v28 = vsub.f32 %v10604_v45, %v4827_v22 }
0x120f   :  { %v4830_v31 = vmul.f32 %v4828_v25, %v4828_v25  ;;  %v4831_v9 = vmul.f32 %v4829_v28, %v4829_v28 }
0x1211   :  { %v4832_v48 = vadd.f32 %v4831_v9, %v4830_v31 }
0x1213   :  { %v4833_v10 = vrot.slane %v4832_v48, 4 }
0x1215   :  { %v4834_v34 = vadd.f32 %v4833_v10, %v4832_v48 }
0x1217   :  { %v4835_v51 = vrot.slane %v4834_v34, 2 }
0x1219   :  { %v4836_v0 = vadd.f32 %v4835_v51, %v4834_v34 }
0x121b   :  { %v4837_v58 = vrot.slane %v4836_v0, 1 }
0x121d   :  { %v4838_v37 = vadd.f32 %v4837_v58, %v4836_v0  ;;  %v4965_v0 = vld [vmem:[#allocation4 + $0xe10] sm:$0xff]  ;;  %v4966_v58 = vld [vmem:[#allocation4 + $0xe18] sm:$0xff] }
0x121e   :  { %v9394_v43 = vpack.c.bf16 %v4966_v58, %v4965_v0  ;;  %v5169_v58 = vld [vmem:[#allocation4 + $0xf10] sm:$0xff] }
0x121f   :  { %7937 = vmatmul.mubr.f32.vlgmr.msra.gmra.mrb[12].mxu0 %v4838_v37 }
0x1220   :  { %9361 = vmatpush3.bf16.msra.mxu0 %v9358_v26 }
0x1221   :  { %9363 = vmatprep.subr.bf16.mxu0 %v9362_v63 }
0x1224   :  { %9365 = vmatpush3.bf16.msra.mxu0 %v9362_v63 }
0x1225   :  { %9367 = vmatprep.subr.bf16.mxu0 %v9366_v38 }
0x1228   :  { %9369 = vmatpush3.bf16.msra.mxu0 %v9366_v38 }
0x1229   :  { %9371 = vmatprep.subr.bf16.mxu0 %v9370_v24 }
0x122c   :  { %9373 = vmatpush3.bf16.msra.mxu0 %v9370_v24 }
0x122d   :  { %9375 = vmatprep.subr.bf16.mxu0 %v9374_v60 }
0x1230   :  { %9377 = vmatpush3.bf16.msra.mxu0 %v9374_v60 }
0x1231   :  { %9379 = vmatprep.subr.bf16.mxu0 %v9378_v12 }
0x1234   :  { %9381 = vmatpush3.bf16.msra.mxu0 %v9378_v12 }
0x1235   :  { %9383 = vmatprep.subr.bf16.mxu0 %v9382_v35 }
0x1238   :  { %9385 = vmatpush3.bf16.msra.mxu0 %v9382_v35 }
0x1239   :  { %9387 = vmatprep.subr.bf16.mxu0 %v9386_v8 }
0x123c   :  { %9389 = vmatpush3.bf16.msra.mxu0 %v9386_v8 }
0x123d   :  { %9391 = vmatprep.subr.bf16.mxu0 %v10633_v4 }
0x12f2   :  { %v4905_v42 = vpop.f32.mrb[12].mxu0 }
0x12f3   :  { %v4909_v33 = vmul.f32 0.0078125, %v4905_v42  ;;  %v7938_v52 = vpop.f32.mrb[13].mxu0  ;;  %v9398_v42 = vpack.c.bf16 %v4968_v36, %v4967_v11  ;;  %v5178_v11 = vld [vmem:[#allocation4 + $0xf58] sm:$0xff]  ;;  %v5179_v36 = vld [vmem:[#allocation4 + $0xf60] sm:$0xff] }
0x12f5   :  { %v4910_v39 = vadd.f32 1e-05, %v4909_v33 }
0x12f7   :  { %9675 = vrsqrt.f32 %v4910_v39 }
0x1301   :  { %v9676_v54 = vpop.eup %9675 }
0x1302   :  { %v4912_v49 = vmul.f32 %v9676_v54, %v5700_v62 }
0x1304   :  { %v4913_v50 = vmul.f32 %v4912_v49, %v10627_v14  ;;  %v4921_v44 = vrot.slane %v4912_v49, %v9930_v21 }
0x1306   :  { %v4915_v59 = vrot.slane %v4913_v50, 7  ;;  %v4922_v23 = vmul.f32 %v4921_v44, %v10606_v20  ;;  %v4923_v27 = vmul.f32 %v10604_v45, %v4921_v44 }
0x1308   :  { %v4917_v30 = vsub.f32 %v5700_v62, %v4915_v59  ;;  %v4969_v62 = vld [vmem:[#allocation4 + $0xe30] sm:$0xff] }
0x130a   :  { %v4927_v2 = vrot.slane %v4917_v30, %v9942_v55 }
0x130c   :  { %v4928_v5 = vadd.f32 %v4927_v2, %v4922_v23  ;;  %v4929_v56 = vadd.f32 %v4927_v2, %v4923_v27 }
0x130e   :  { %v4930_v1 = vmax.f32 %v4928_v5, 0.0  ;;  %v4931_v18 = vmax.f32 %v4929_v56, 0.0 }
0x1310   :  { %v4934_v22 = vrot.slane %v4930_v1, 3  ;;  %v4938_v25 = vrot.slane %v4930_v1, 1  ;;  %v4942_v28 = vrot.slane %v4930_v1, 7  ;;  %v4946_v31 = vrot.slane %v4930_v1, 5 }
0x1311   :  { %v4935_v9 = vrot.slane %v4931_v18, 3  ;;  %v4939_v14 = vrot.slane %v4931_v18, 1  ;;  %v4943_v48 = vrot.slane %v4931_v18, 7  ;;  %v4947_v21 = vrot.slane %v4931_v18, 5  ;;  %v4971_v18 = vld [vmem:[#allocation4 + $0xe40] sm:$0xff] }
0x1312   :  { %v4950_v10 = vsel %vm388_vm2, %v4934_v22, %v4938_v25  ;;  %v4956_v20 = vsel %vm394_vm4, %v4946_v31, %v4934_v22  ;;  %v4972_v22 = vld [vmem:[#allocation4 + $0xe48] sm:$0xff] }
0x1313   :  { %v4952_v45 = vsel %vm391_vm3, %v4950_v10, %v4942_v28  ;;  %v4958_v55 = vsel %vm399_vm5, %v4956_v20, %v4938_v25  ;;  %v4951_v34 = vsel %vm388_vm2, %v4935_v9, %v4939_v14  ;;  %v4957_v51 = vsel %vm394_vm4, %v4947_v21, %v4935_v9  ;;  %v4974_v9 = vld [vmem:[#allocation4 + $0xe58] sm:$0xff]  ;;  %v4977_v20 = vld [vmem:[#allocation4 + $0xe70] sm:$0xff] }
0x1314   :  { %v10651_v37 = vsel %vm394_vm4, %v4952_v45, %v4946_v31  ;;  %v10654_v61 = vsel %vm402_vm6, %v4958_v55, %v4942_v28  ;;  %v4953_v7 = vsel %vm391_vm3, %v4951_v34, %v4943_v48  ;;  %v4959_v26 = vsel %vm399_vm5, %v4957_v51, %v4939_v14  ;;  %v4973_v31 = vld [vmem:[#allocation4 + $0xe50] sm:$0xff]  ;;  %v4978_v45 = vld [vmem:[#allocation4 + $0xe78] sm:$0xff]  ;;  %v5167_v34 = vld [vmem:[#allocation4 + $0xf00] sm:$0xff] }
0x1315   :  { %v4983_v13 = vrot.slane %v10651_v37, 1  ;;  %v4984_v6 = vrot.slane %v10654_v61, 1  ;;  %v10661_v63 = vsel %vm394_vm4, %v4953_v7, %v4947_v21  ;;  %v4961_v29 = vsel %vm402_vm6, %v4959_v26, %v4943_v48  ;;  %v4975_v48 = vld [vmem:[#allocation4 + $0xe60] sm:$0xff]  ;;  %v4976_v21 = vld [vmem:[#allocation4 + $0xe68] sm:$0xff]  ;;  %v5170_v7 = vld [vmem:[#allocation4 + $0xf18] sm:$0xff] }
0x1316   :  { %v4986_v32 = vrot.slane %v10661_v63, 1  ;;  %v4987_v38 = vrot.slane %v4961_v29, 1  ;;  %v5161_v24 = vrot.slane %v10661_v63, 2  ;;  %v5162_v17 = vrot.slane %v4961_v29, 2  ;;  %v5168_v51 = vld [vmem:[#allocation4 + $0xf08] sm:$0xff] }
0x1317   :  { %v4985_v41 = vsel %vm411_vm7, %v4983_v13, %v4984_v6  ;;  %v5260_v3 = vrot.slane %v10651_v37, 3  ;;  %v5261_v12 = vrot.slane %v10654_v61, 3  ;;  %v5263_v19 = vrot.slane %v10661_v63, 3 }
0x1318   :  { %7971 = vmatprep.mubr.f32.mxu0 %v4985_v41  ;;  %v4988_v60 = vsel %vm411_vm7, %v4986_v32, %v4987_v38  ;;  %v10672_v40 = vsel %vm579_vm8, %v5161_v24, %v5162_v17  ;;  %v5264_v35 = vrot.slane %v4961_v29, 3  ;;  %v5362_v46 = vrot.slane %v10651_v37, 4  ;;  %v5172_v32 = vld [vmem:[#allocation4 + $0xf28] sm:$0xff]  ;;  %v5173_v41 = vld [vmem:[#allocation4 + $0xf30] sm:$0xff]  ;;  %v5174_v24 = vld [vmem:[#allocation4 + $0xf38] sm:$0xff] }
0x1319   :  { %7972 = vmatmul.mubr.f32.vlgmr.msra.gmra.mrb[14].mxu0 %v4988_v60  ;;  %v5363_v16 = vrot.slane %v10654_v61, 4  ;;  %v10679_v8 = vsel %vm402_vm6, %v5260_v3, %v5261_v12  ;;  %v5365_v53 = vrot.slane %v10661_v63, 4  ;;  %v5366_v47 = vrot.slane %v4961_v29, 4  ;;  %v5175_v17 = vld [vmem:[#allocation4 + $0xf40] sm:$0xff]  ;;  %v5177_v60 = vld [vmem:[#allocation4 + $0xf50] sm:$0xff]  ;;  %v5180_v12 = vld [vmem:[#allocation4 + $0xf68] sm:$0xff] }
0x131a   :  { %9393 = vmatpush3.bf16.msra.mxu0 %v10633_v4  ;;  %8006 = vmatprep.mubr.f32.mxu0 %v10651_v37  ;;  %v10683_v33 = vsel %vm402_vm6, %v5263_v19, %v5264_v35  ;;  %v5464_v39 = vrot.slane %v10651_v37, 5  ;;  %v4970_v4 = vld [vmem:[#allocation4 + $0xe38] sm:$0xff]  ;;  %v5465_v49 = vrot.slane %v10654_v61, 5  ;;  %v5467_v50 = vrot.slane %v10661_v63, 5  ;;  %v5181_v35 = vld [vmem:[#allocation4 + $0xf70] sm:$0xff] }
0x131b   :  { %9395 = vmatprep.subr.bf16.mxu0 %v9394_v43  ;;  %v10686_v52 = vsel %vm399_vm5, %v5362_v46, %v5363_v16  ;;  %v10690_v54 = vsel %vm399_vm5, %v5365_v53, %v5366_v47  ;;  %v5468_v44 = vrot.slane %v4961_v29, 5  ;;  %v5566_v59 = vrot.slane %v10651_v37, 6  ;;  %v5182_v46 = vld [vmem:[#allocation4 + $0xf78] sm:$0xff]  ;;  %v5269_v53 = vld [vmem:[#allocation4 + $0xf80] sm:$0xff]  ;;  %v5270_v47 = vld [vmem:[#allocation4 + $0xf88] sm:$0xff] }
0x131c   :  { %v5567_v23 = vrot.slane %v10654_v61, 6  ;;  %v5569_v27 = vrot.slane %v10661_v63, 6  ;;  %v10698_v30 = vsel %vm394_vm4, %v5464_v39, %v5465_v49  ;;  %v5570_v2 = vrot.slane %v4961_v29, 6  ;;  %v5171_v29 = vld [vmem:[#allocation4 + $0xf20] sm:$0xff]  ;;  %v5271_v39 = vld [vmem:[#allocation4 + $0xf90] sm:$0xff] }
0x131d   :  { %v9402_v5 = vpack.c.bf16 %v4970_v4, %v4969_v62  ;;  %v10701_v56 = vsel %vm394_vm4, %v5467_v50, %v5468_v44  ;;  %v9406_v28 = vpack.c.bf16 %v4972_v22, %v4971_v18  ;;  %v9410_v14 = vpack.c.bf16 %v4974_v9, %v4973_v31  ;;  %v5272_v62 = vld [vmem:[#allocation4 + $0xf98] sm:$0xff]  ;;  %v5273_v49 = vld [vmem:[#allocation4 + $0xfa0] sm:$0xff]  ;;  %v5274_v50 = vld [vmem:[#allocation4 + $0xfa8] sm:$0xff] }
0x131e   :  { %9397 = vmatpush3.bf16.msra.mxu0 %v9394_v43  ;;  %v10704_v1 = vsel %vm391_vm3, %v5566_v59, %v5567_v23  ;;  %v10707_v25 = vsel %vm391_vm3, %v5569_v27, %v5570_v2  ;;  %v9414_v10 = vpack.c.bf16 %v4976_v21, %v4975_v48  ;;  %v9418_v55 = vpack.c.bf16 %v4978_v45, %v4977_v20  ;;  %v5275_v59 = vld [vmem:[#allocation4 + $0xfb0] sm:$0xff]  ;;  %v5276_v23 = vld [vmem:[#allocation4 + $0xfb8] sm:$0xff]  ;;  %v5277_v2 = vld [vmem:[#allocation4 + $0xfc0] sm:$0xff] }
0x131f   :  { %9399 = vmatprep.subr.bf16.mxu0 %v9398_v42  ;;  %v9422_v0 = vpack.c.bf16 %v5168_v51, %v5167_v34  ;;  %v5158_v26 = vrot.slane %v10651_v37, 2  ;;  %v5159_v13 = vrot.slane %v10654_v61, 2  ;;  %v9426_v6 = vpack.c.bf16 %v5170_v7, %v5169_v58  ;;  %v5176_v61 = vld [vmem:[#allocation4 + $0xf48] sm:$0xff]  ;;  %v5279_v22 = vld [vmem:[#allocation4 + $0xfd0] sm:$0xff]  ;;  %v5281_v31 = vld [vmem:[#allocation4 + $0xfe0] sm:$0xff] }
0x1320   :  { %v9430_v43 = vpack.c.bf16 %v5172_v32, %v5171_v29  ;;  %v9434_v37 = vpack.c.bf16 %v5174_v24, %v5173_v41  ;;  %v9438_v3 = vpack.c.bf16 %v5176_v61, %v5175_v17  ;;  %v9446_v19 = vpack.c.bf16 %v5180_v12, %v5179_v36  ;;  %v5282_v9 = vld [vmem:[#allocation4 + $0xfe8] sm:$0xff]  ;;  %v5284_v48 = vld [vmem:[#allocation4 + $0xff8] sm:$0xff]  ;;  %v5379_v29 = vld [vmem:[#allocation4 + $0x1040] sm:$0xff] }
0x1321   :  { %v5160_v38 = vsel %vm579_vm8, %v5158_v26, %v5159_v13  ;;  %v9450_v16 = vpack.c.bf16 %v5182_v46, %v5181_v35  ;;  %v9458_v4 = vpack.c.bf16 %v5272_v62, %v5271_v39  ;;  %v9462_v44 = vpack.c.bf16 %v5274_v50, %v5273_v49  ;;  %v5372_v20 = vld [vmem:[#allocation4 + $0x1008] sm:$0xff]  ;;  %v5374_v34 = vld [vmem:[#allocation4 + $0x1018] sm:$0xff]  ;;  %v5377_v26 = vld [vmem:[#allocation4 + $0x1030] sm:$0xff] }
0x1322   :  { %9401 = vmatpush3.bf16.msra.mxu0 %v9398_v42  ;;  %v9454_v42 = vpack.c.bf16 %v5270_v47, %v5269_v53  ;;  %v9466_v27 = vpack.c.bf16 %v5276_v23, %v5275_v59  ;;  %v5376_v58 = vld [vmem:[#allocation4 + $0x1028] sm:$0xff]  ;;  %v5378_v13 = vld [vmem:[#allocation4 + $0x1038] sm:$0xff]  ;;  %v5383_v24 = vld [vmem:[#allocation4 + $0x1060] sm:$0xff] }
0x1323   :  { %9403 = vmatprep.subr.bf16.mxu0 %v9402_v5  ;;  %v5380_v32 = vld [vmem:[#allocation4 + $0x1048] sm:$0xff]  ;;  %v5382_v41 = vld [vmem:[#allocation4 + $0x1058] sm:$0xff]  ;;  %v5385_v17 = vld [vmem:[#allocation4 + $0x1070] sm:$0xff] }
0x1324   :  { %v5386_v61 = vld [vmem:[#allocation4 + $0x1078] sm:$0xff]  ;;  %v5475_v36 = vld [vmem:[#allocation4 + $0x1090] sm:$0xff]  ;;  %v5477_v35 = vld [vmem:[#allocation4 + $0x10a0] sm:$0xff] }
0x1325   :  { %v5476_v12 = vld [vmem:[#allocation4 + $0x1098] sm:$0xff]  ;;  %v5478_v46 = vld [vmem:[#allocation4 + $0x10a8] sm:$0xff]  ;;  %v5479_v53 = vld [vmem:[#allocation4 + $0x10b0] sm:$0xff] }
0x1326   :  { %9405 = vmatpush3.bf16.msra.mxu0 %v9402_v5  ;;  %v5278_v5 = vld [vmem:[#allocation4 + $0xfc8] sm:$0xff]  ;;  %v5480_v47 = vld [vmem:[#allocation4 + $0x10b8] sm:$0xff]  ;;  %v5481_v39 = vld [vmem:[#allocation4 + $0x10c0] sm:$0xff] }
0x1327   :  { %9407 = vmatprep.subr.bf16.mxu0 %v9406_v28  ;;  %v9470_v18 = vpack.c.bf16 %v5278_v5, %v5277_v2  ;;  %v5482_v62 = vld [vmem:[#allocation4 + $0x10c8] sm:$0xff]  ;;  %v5483_v49 = vld [vmem:[#allocation4 + $0x10d0] sm:$0xff]  ;;  %v5484_v50 = vld [vmem:[#allocation4 + $0x10d8] sm:$0xff] }
0x1328   :  { %v5486_v59 = vld [vmem:[#allocation4 + $0x10e8] sm:$0xff]  ;;  %v5487_v23 = vld [vmem:[#allocation4 + $0x10f0] sm:$0xff]  ;;  %v5575_v5 = vld [vmem:[#allocation4 + $0x1100] sm:$0xff] }
0x132a   :  { %9409 = vmatpush3.bf16.msra.mxu0 %v9406_v28  ;;  %v5280_v28 = vld [vmem:[#allocation4 + $0xfd8] sm:$0xff] }
0x132b   :  { %9411 = vmatprep.subr.bf16.mxu0 %v9410_v14 }
0x132e   :  { %9413 = vmatpush3.bf16.msra.mxu0 %v9410_v14  ;;  %v5283_v14 = vld [vmem:[#allocation4 + $0xff0] sm:$0xff] }
0x132f   :  { %9415 = vmatprep.subr.bf16.mxu0 %v9414_v10  ;;  %v9482_v21 = vpack.c.bf16 %v5284_v48, %v5283_v14  ;;  %v5581_v48 = vld [vmem:[#allocation4 + $0x1130] sm:$0xff] }
0x1332   :  { %9417 = vmatpush3.bf16.msra.mxu0 %v9414_v10  ;;  %v5371_v10 = vld [vmem:[#allocation4 + $0x1000] sm:$0xff] }
0x1333   :  { %9419 = vmatprep.subr.bf16.mxu0 %v9418_v55  ;;  %v9486_v45 = vpack.c.bf16 %v5372_v20, %v5371_v10  ;;  %v5583_v20 = vld [vmem:[#allocation4 + $0x1140] sm:$0xff] }
0x1336   :  { %9421 = vmatpush3.bf16.msra.mxu0 %v9418_v55  ;;  %v5373_v55 = vld [vmem:[#allocation4 + $0x1010] sm:$0xff] }
0x1337   :  { %9423 = vmatprep.subr.bf16.mxu0 %v9422_v0  ;;  %v9490_v51 = vpack.c.bf16 %v5374_v34, %v5373_v55  ;;  %v5585_v34 = vld [vmem:[#allocation4 + $0x1150] sm:$0xff] }
0x1339   :  { %8007 = vmatmul.mubr.f32.vlgmr.msra.gmra.mrb[14].mxu0 %v10661_v63  ;;  %v9442_v63 = vpack.c.bf16 %v5178_v11, %v5177_v60  ;;  %v5473_v60 = vld [vmem:[#allocation4 + $0x1080] sm:$0xff]  ;;  %v5474_v11 = vld [vmem:[#allocation4 + $0x1088] sm:$0xff] }
0x133a   :  { %9425 = vmatpush3.bf16.msra.mxu0 %v9422_v0  ;;  %8041 = vmatprep.mubr.f32.mxu0 %v5160_v38  ;;  %v5375_v0 = vld [vmem:[#allocation4 + $0x1020] sm:$0xff]  ;;  %v9502_v38 = vpack.c.bf16 %v5380_v32, %v5379_v29 }
0x133b   :  { %9427 = vmatprep.subr.bf16.mxu0 %v9426_v6  ;;  %v9494_v7 = vpack.c.bf16 %v5376_v58, %v5375_v0  ;;  %v5587_v0 = vld [vmem:[#allocation4 + $0x1160] sm:$0xff]  ;;  %v5588_v58 = vld [vmem:[#allocation4 + $0x1168] sm:$0xff] }
0x133e   :  { %9429 = vmatpush3.bf16.msra.mxu0 %v9426_v6  ;;  %v9498_v6 = vpack.c.bf16 %v5378_v13, %v5377_v26  ;;  %v5590_v26 = vld [vmem:[#allocation4 + $0x1178] sm:$0xff] }
0x133f   :  { %9431 = vmatprep.subr.bf16.mxu0 %v9430_v43 }
0x1342   :  { %9433 = vmatpush3.bf16.msra.mxu0 %v9430_v43  ;;  %v5381_v43 = vld [vmem:[#allocation4 + $0x1050] sm:$0xff] }
0x1343   :  { %9435 = vmatprep.subr.bf16.mxu0 %v9434_v37 }
0x1346   :  { %9437 = vmatpush3.bf16.msra.mxu0 %v9434_v37  ;;  %v5384_v37 = vld [vmem:[#allocation4 + $0x1068] sm:$0xff] }
0x1347   :  { %9439 = vmatprep.subr.bf16.mxu0 %v9438_v3 }
0x134a   :  { %9441 = vmatpush3.bf16.msra.mxu0 %v9438_v3  ;;  %v9514_v3 = vpack.c.bf16 %v5386_v61, %v5385_v17 }
0x134b   :  { %9443 = vmatprep.subr.bf16.mxu0 %v9442_v63 }
0x134e   :  { %9445 = vmatpush3.bf16.msra.mxu0 %v9442_v63  ;;  %v9518_v63 = vpack.c.bf16 %v5474_v11, %v5473_v60 }
0x134f   :  { %9447 = vmatprep.subr.bf16.mxu0 %v9446_v19 }
0x1352   :  { %9449 = vmatpush3.bf16.msra.mxu0 %v9446_v19  ;;  %v9522_v19 = vpack.c.bf16 %v5476_v12, %v5475_v36 }
0x1353   :  { %9451 = vmatprep.subr.bf16.mxu0 %v9450_v16 }
0x1356   :  { %9453 = vmatpush3.bf16.msra.mxu0 %v9450_v16  ;;  %v9526_v16 = vpack.c.bf16 %v5478_v46, %v5477_v35 }
0x1357   :  { %9455 = vmatprep.subr.bf16.mxu0 %v9454_v42 }
0x1359   :  { %8042 = vmatmul.mubr.f32.vlgmr.msra.gmra.mrb[14].mxu0 %v10672_v40  ;;  %v9474_v40 = vpack.c.bf16 %v5280_v28, %v5279_v22  ;;  %v5577_v28 = vld [vmem:[#allocation4 + $0x1110] sm:$0xff] }
0x135a   :  { %9457 = vmatpush3.bf16.msra.mxu0 %v9454_v42  ;;  %8076 = vmatprep.mubr.f32.mxu0 %v10679_v8  ;;  %v9478_v8 = vpack.c.bf16 %v5282_v9, %v5281_v31  ;;  %v9530_v42 = vpack.c.bf16 %v5480_v47, %v5479_v53  ;;  %v5579_v9 = vld [vmem:[#allocation4 + $0x1120] sm:$0xff] }
0x135b   :  { %9459 = vmatprep.subr.bf16.mxu0 %v9458_v4 }
0x135e   :  { %9461 = vmatpush3.bf16.msra.mxu0 %v9458_v4  ;;  %v9534_v4 = vpack.c.bf16 %v5482_v62, %v5481_v39 }
0x135f   :  { %9463 = vmatprep.subr.bf16.mxu0 %v9462_v44 }
0x1362   :  { %9465 = vmatpush3.bf16.msra.mxu0 %v9462_v44  ;;  %v5485_v44 = vld [vmem:[#allocation4 + $0x10e0] sm:$0xff] }
0x1363   :  { %9467 = vmatprep.subr.bf16.mxu0 %v9466_v27 }
0x1366   :  { %9469 = vmatpush3.bf16.msra.mxu0 %v9466_v27  ;;  %v5488_v27 = vld [vmem:[#allocation4 + $0x10f8] sm:$0xff] }
0x1367   :  { %9471 = vmatprep.subr.bf16.mxu0 %v9470_v18  ;;  %v9546_v2 = vpack.c.bf16 %v5488_v27, %v5487_v23 }
0x136a   :  { %9473 = vmatpush3.bf16.msra.mxu0 %v9470_v18  ;;  %v5576_v18 = vld [vmem:[#allocation4 + $0x1108] sm:$0xff] }
0x136b   :  { %9475 = vmatprep.subr.bf16.mxu0 %v9474_v40  ;;  %v9550_v22 = vpack.c.bf16 %v5576_v18, %v5575_v5 }
0x136e   :  { %9477 = vmatpush3.bf16.msra.mxu0 %v9474_v40  ;;  %v5578_v40 = vld [vmem:[#allocation4 + $0x1118] sm:$0xff] }
0x136f   :  { %9479 = vmatprep.subr.bf16.mxu0 %v9478_v8  ;;  %v9554_v31 = vpack.c.bf16 %v5578_v40, %v5577_v28 }
0x1372   :  { %9481 = vmatpush3.bf16.msra.mxu0 %v9478_v8  ;;  %v5580_v8 = vld [vmem:[#allocation4 + $0x1128] sm:$0xff] }
0x1373   :  { %9483 = vmatprep.subr.bf16.mxu0 %v9482_v21  ;;  %v9558_v14 = vpack.c.bf16 %v5580_v8, %v5579_v9 }
0x1376   :  { %9485 = vmatpush3.bf16.msra.mxu0 %v9482_v21  ;;  %v5582_v21 = vld [vmem:[#allocation4 + $0x1138] sm:$0xff] }
0x1377   :  { %9487 = vmatprep.subr.bf16.mxu0 %v9486_v45  ;;  %v9562_v10 = vpack.c.bf16 %v5582_v21, %v5581_v48 }
0x1379   :  { %8077 = vmatmul.mubr.f32.vlgmr.msra.gmra.mrb[14].mxu0 %v10683_v33  ;;  %v9506_v33 = vpack.c.bf16 %v5382_v41, %v5381_v43 }
0x137a   :  { %9489 = vmatpush3.bf16.msra.mxu0 %v9486_v45  ;;  %8111 = vmatprep.mubr.f32.mxu0 %v10686_v52  ;;  %v9510_v52 = vpack.c.bf16 %v5384_v37, %v5383_v24  ;;  %v5584_v45 = vld [vmem:[#allocation4 + $0x1148] sm:$0xff] }
0x137b   :  { %9491 = vmatprep.subr.bf16.mxu0 %v9490_v51  ;;  %v9566_v55 = vpack.c.bf16 %v5584_v45, %v5583_v20 }
0x137e   :  { %9493 = vmatpush3.bf16.msra.mxu0 %v9490_v51  ;;  %v5586_v51 = vld [vmem:[#allocation4 + $0x1158] sm:$0xff] }
0x137f   :  { %9495 = vmatprep.subr.bf16.mxu0 %v9494_v7 }
0x1382   :  { %9497 = vmatpush3.bf16.msra.mxu0 %v9494_v7  ;;  %v5589_v7 = vld [vmem:[#allocation4 + $0x1170] sm:$0xff] }
0x1383   :  { %9499 = vmatprep.subr.bf16.mxu0 %v9498_v6  ;;  %v9578_v13 = vpack.c.bf16 %v5590_v26, %v5589_v7 }
0x1386   :  { %9501 = vmatpush3.bf16.msra.mxu0 %v9498_v6 }
0x1387   :  { %9503 = vmatprep.subr.bf16.mxu0 %v9502_v38 }
0x138a   :  { %9505 = vmatpush3.bf16.msra.mxu0 %v9502_v38 }
0x138b   :  { %9507 = vmatprep.subr.bf16.mxu0 %v9506_v33 }
0x138e   :  { %9509 = vmatpush3.bf16.msra.mxu0 %v9506_v33 }
0x138f   :  { %9511 = vmatprep.subr.bf16.mxu0 %v9510_v52 }
0x1392   :  { %9513 = vmatpush3.bf16.msra.mxu0 %v9510_v52 }
0x1393   :  { %9515 = vmatprep.subr.bf16.mxu0 %v9514_v3 }
0x1396   :  { %9517 = vmatpush3.bf16.msra.mxu0 %v9514_v3 }
0x1397   :  { %9519 = vmatprep.subr.bf16.mxu0 %v9518_v63 }
0x1399   :  { %8112 = vmatmul.mubr.f32.vlgmr.msra.gmra.mrb[14].mxu0 %v10690_v54  ;;  %v9538_v54 = vpack.c.bf16 %v5484_v50, %v5483_v49 }
0x139a   :  { %9521 = vmatpush3.bf16.msra.mxu0 %v9518_v63  ;;  %8146 = vmatprep.mubr.f32.mxu0 %v10698_v30  ;;  %v9542_v30 = vpack.c.bf16 %v5486_v59, %v5485_v44 }
0x139b   :  { %9523 = vmatprep.subr.bf16.mxu0 %v9522_v19 }
0x139e   :  { %9525 = vmatpush3.bf16.msra.mxu0 %v9522_v19 }
0x139f   :  { %9527 = vmatprep.subr.bf16.mxu0 %v9526_v16 }
0x13a2   :  { %9529 = vmatpush3.bf16.msra.mxu0 %v9526_v16 }
0x13a3   :  { %9531 = vmatprep.subr.bf16.mxu0 %v9530_v42 }
0x13a6   :  { %9533 = vmatpush3.bf16.msra.mxu0 %v9530_v42 }
0x13a7   :  { %9535 = vmatprep.subr.bf16.mxu0 %v9534_v4 }
0x13aa   :  { %9537 = vmatpush3.bf16.msra.mxu0 %v9534_v4 }
0x13ab   :  { %9539 = vmatprep.subr.bf16.mxu0 %v9538_v54 }
0x13ae   :  { %9541 = vmatpush3.bf16.msra.mxu0 %v9538_v54 }
0x13af   :  { %9543 = vmatprep.subr.bf16.mxu0 %v9542_v30 }
0x13b2   :  { %9545 = vmatpush3.bf16.msra.mxu0 %v9542_v30 }
0x13b3   :  { %9547 = vmatprep.subr.bf16.mxu0 %v9546_v2 }
0x13b6   :  { %9549 = vmatpush3.bf16.msra.mxu0 %v9546_v2 }
0x13b7   :  { %9551 = vmatprep.subr.bf16.mxu0 %v9550_v22 }
0x13b9   :  { %8147 = vmatmul.mubr.f32.vlgmr.msra.gmra.mrb[14].mxu0 %v10701_v56  ;;  %v9570_v56 = vpack.c.bf16 %v5586_v51, %v5585_v34 }
0x13ba   :  { %9553 = vmatpush3.bf16.msra.mxu0 %v9550_v22  ;;  %8181 = vmatprep.mubr.f32.mxu0 %v10704_v1  ;;  %v9574_v1 = vpack.c.bf16 %v5588_v58, %v5587_v0 }
0x13bb   :  { %9555 = vmatprep.subr.bf16.mxu0 %v9554_v31 }
0x13be   :  { %9557 = vmatpush3.bf16.msra.mxu0 %v9554_v31 }
0x13bf   :  { %9559 = vmatprep.subr.bf16.mxu0 %v9558_v14 }
0x13c2   :  { %9561 = vmatpush3.bf16.msra.mxu0 %v9558_v14 }
0x13c3   :  { %9563 = vmatprep.subr.bf16.mxu0 %v9562_v10 }
0x13c6   :  { %9565 = vmatpush3.bf16.msra.mxu0 %v9562_v10 }
0x13c7   :  { %9567 = vmatprep.subr.bf16.mxu0 %v9566_v55 }
0x13ca   :  { %9569 = vmatpush3.bf16.msra.mxu0 %v9566_v55 }
0x13cb   :  { %9571 = vmatprep.subr.bf16.mxu0 %v9570_v56 }
0x13ce   :  { %9573 = vmatpush3.bf16.msra.mxu0 %v9570_v56 }
0x13cf   :  { %9575 = vmatprep.subr.bf16.mxu0 %v9574_v1 }
0x13d2   :  { %9577 = vmatpush3.bf16.msra.mxu0 %v9574_v1 }
0x13d3   :  { %9579 = vmatprep.subr.bf16.mxu0 %v9578_v13 }
0x13d6   :  { %9581 = vmatpush3.bf16.msra.mxu0 %v9578_v13 }
0x13d9   :  { %8182 = vmatmul.mubr.f32.vlgmr.msra.gmra.mrb[14].mxu0 %v10707_v25 }
0x14ac   :  { %v8183_v6 = vpop.f32.mrb[14].mxu0 }
0x14ad   :  { %v5669_v29 = vadd.f32 %v8183_v6, %v10485_v15  ;;  %v5657_v32 = vpop.f32.mrb[15].mxu0 }
0x14ae   :  { %v5668_v38 = vadd.f32 %v5657_v32, %v10488_v57 }
0x14af   :  { %5671 = vst [vmem:[%s10738_s8 + $0x8] sm:$0xff] %v5669_v29 }
0x14b0   :  { %5670 = vst [vmem:[%s10738_s8] sm:$0xff] %v5668_v38 }
0x14b1   :  { %5676 = vsyncpa [#allocation3], 1 }
0x14b2   :  { %5677 = vsyncpa [#allocation5], 1 }
0x14b3   :  { %5678 = vsyncpa [#allocation8], 1 }

</bundles_post_ra>
